<compile_context>
chip_gen: v7x
topology: tpu7x:2x2x1
jax: 0.10.0
libtpu: 0.0.40
codegen_flags: <defaults>
</compile_context>

<pallas_src>
import functools

import jax
import jax.numpy as jnp
from jax.experimental import pallas as pl
from jax.experimental.pallas import tpu as pltpu

LN_EPS = 1e-5  # torch.nn.LayerNorm default


def _round_up(x, m):
    return (x + m - 1) // m * m


def _bandsplit_kernel(xre_ref, xim_ref, gre_ref, gim_ref, bre_ref, bim_ref,
                      wre_ref, wim_ref, bias_ref, o_ref, *, feat):
    """Fused LayerNorm(2*n_bins) + Linear(embed_dim), frame-major.

    xre_ref/xim_ref: (1, n_bins, tile_t)  real / imag planes of the spectrogram tile
    gre/gim/bre/bim: (n_bins, 1)          LayerNorm affine params (even/odd features)
    wre/wim:         (embed_dim, n_bins)  Linear weight split into even/odd columns
    bias_ref:        (embed_dim, 1)       Linear bias
    o_ref:           (1, embed_dim, tile_t)
    """
    xre = xre_ref[0].astype(jnp.float32)          # (n_bins, tile_t)
    xim = xim_ref[0].astype(jnp.float32)

    # LayerNorm over the interleaved [re0, im0, re1, im1, ...] feature vector of each
    # frame == moments over the union of the re and im planes (order-independent).
    inv_feat = 1.0 / feat
    s = jnp.sum(xre, axis=0, keepdims=True) + jnp.sum(xim, axis=0, keepdims=True)
    mean = s * inv_feat                            # (1, tile_t)
    cre = xre - mean
    cim = xim - mean
    ss = (jnp.sum(cre * cre, axis=0, keepdims=True)
          + jnp.sum(cim * cim, axis=0, keepdims=True))
    var = ss * inv_feat                            # biased variance, like torch
    inv = jax.lax.rsqrt(var + LN_EPS)              # (1, tile_t), EUP rsqrt

    a_re = cre * inv * gre_ref[...] + bre_ref[...]  # (n_bins, tile_t)
    a_im = cim * inv * gim_ref[...] + bim_ref[...]

    # Two MXU matmuls: (embed, n_bins) @ (n_bins, tile_t); lane-dense N = tile_t.
    y = jnp.dot(wre_ref[...], a_re, preferred_element_type=jnp.float32)
    y = y + jnp.dot(wim_ref[...], a_im, preferred_element_type=jnp.float32)
    y = y + bias_ref[...]                          # (embed, 1) broadcast over frames
    o_ref[0] = y.astype(o_ref.dtype)


def _bandsplit_call(x_re, x_im, gre, gim, bre, bim, wre, wim, bias, *, tile_t):
    B, n_bins, t_pad = x_re.shape
    embed_dim = wre.shape[0]
    feat = 2 * n_bins
    grid = (B, t_pad // tile_t)

    kernel = functools.partial(_bandsplit_kernel, feat=float(feat))
    return pl.pallas_call(
        kernel,
        out_shape=jax.ShapeDtypeStruct((B, embed_dim, t_pad), jnp.float32),
        grid_spec=pltpu.PrefetchScalarGridSpec(
            num_scalar_prefetch=0,
            grid=grid,
            in_specs=[
                pl.BlockSpec((1, n_bins, tile_t), lambda b, t: (b, 0, t)),
                pl.BlockSpec((1, n_bins, tile_t), lambda b, t: (b, 0, t)),
                pl.BlockSpec((n_bins, 1), lambda b, t: (0, 0)),
                pl.BlockSpec((n_bins, 1), lambda b, t: (0, 0)),
                pl.BlockSpec((n_bins, 1), lambda b, t: (0, 0)),
                pl.BlockSpec((n_bins, 1), lambda b, t: (0, 0)),
                pl.BlockSpec((embed_dim, n_bins), lambda b, t: (0, 0)),
                pl.BlockSpec((embed_dim, n_bins), lambda b, t: (0, 0)),
                pl.BlockSpec((embed_dim, 1), lambda b, t: (0, 0)),
            ],
            out_specs=pl.BlockSpec((1, embed_dim, tile_t), lambda b, t: (b, 0, t)),
        ),
        compiler_params=pltpu.CompilerParams(
            dimension_semantics=("parallel", "parallel"),
            vmem_limit_bytes=32 * 1024 * 1024),
    )(x_re, x_im, gre, gim, bre, bim, wre, wim, bias)


def band_split_block(x_complex, params, *, tile_t=512):
    """Forward pass of BandSplitBlock.

    Args:
      x_complex: complex array of shape (*batch_shape, n_bins, n_frames)
      params: dict with 'ln_weight' (2*n_bins,), 'ln_bias' (2*n_bins,),
              'lin_weight' (embed_dim, 2*n_bins), 'lin_bias' (embed_dim,)
      tile_t: requested frames per grid step (rounded to a multiple of 128).

    Returns:
      float32 array of shape (*batch_shape, embed_dim, n_frames)
    """
    assert jnp.iscomplexobj(x_complex), "Complex spectrogram is expected."
    *batch_shape, n_bins, n_frames = x_complex.shape
    embed_dim = params["lin_weight"].shape[0]

    B = 1
    for d in batch_shape:
        B *= d

    x = x_complex.reshape(B, n_bins, n_frames)
    x_re = jnp.real(x).astype(jnp.float32)   # (B, n_bins, n_frames)
    x_im = jnp.imag(x).astype(jnp.float32)

    # Lane-dense frame tile (multiple of 128); pad frames instead of asserting.
    tile_t = _round_up(min(tile_t, _round_up(n_frames, 128)), 128)
    t_pad = _round_up(n_frames, tile_t)
    if t_pad != n_frames:
        pad = ((0, 0), (0, 0), (0, t_pad - n_frames))
        x_re = jnp.pad(x_re, pad)
        x_im = jnp.pad(x_im, pad)

    # Split the interleaved feature axis [re0, im0, re1, im1, ...] into re/im halves.
    gamma = params["ln_weight"].astype(jnp.float32)
    beta = params["ln_bias"].astype(jnp.float32)
    gre = gamma[0::2].reshape(n_bins, 1)
    gim = gamma[1::2].reshape(n_bins, 1)
    bre = beta[0::2].reshape(n_bins, 1)
    bim = beta[1::2].reshape(n_bins, 1)
    w = params["lin_weight"].astype(jnp.float32)        # (embed_dim, 2*n_bins)
    wre = w[:, 0::2]                                    # (embed_dim, n_bins)
    wim = w[:, 1::2]
    bias = params["lin_bias"].astype(jnp.float32).reshape(embed_dim, 1)

    y = _bandsplit_call(x_re, x_im, gre, gim, bre, bim, wre, wim, bias, tile_t=tile_t)
    y = y[:, :, :n_frames]                              # drop padded frames
    return y.reshape(*batch_shape, embed_dim, n_frames)


def band_split_block_ref(x_complex, params):
    """Pure-JAX reference (mirrors the torch view_as_real / permute / LN / Linear path)."""
    *batch_shape, n_bins, n_frames = x_complex.shape
    embed_dim = params["lin_weight"].shape[0]
    feat = 2 * n_bins
    B = 1
    for d in batch_shape:
        B *= d
    x = x_complex.reshape(B, n_bins, n_frames)
    xr = jnp.stack([jnp.real(x), jnp.imag(x)], axis=-1).astype(jnp.float32)
    xr = jnp.transpose(xr, (0, 2, 1, 3)).reshape(B, n_frames, feat)
    mean = jnp.mean(xr, axis=-1, keepdims=True)
    var = jnp.mean((xr - mean) ** 2, axis=-1, keepdims=True)
    xn = (xr - mean) / jnp.sqrt(var + LN_EPS)
    xn = xn * params["ln_weight"] + params["ln_bias"]
    y = xn @ params["lin_weight"].T + params["lin_bias"]
    y = jnp.transpose(y, (0, 2, 1))
    return y.reshape(*batch_shape, embed_dim, n_frames)


def init_params(key, n_bins, embed_dim):
    feat = 2 * n_bins
    k_gamma, k_beta, k_w, k_b = jax.random.split(key, 4)
    bound = 1.0 / jnp.sqrt(feat)
    return {
        "ln_weight": 1.0 + 0.1 * jax.random.normal(k_gamma, (feat,), jnp.float32),
        "ln_bias": 0.1 * jax.random.normal(k_beta, (feat,), jnp.float32),
        "lin_weight": jax.random.uniform(
            k_w, (embed_dim, feat), jnp.float32, -bound, bound),
        "lin_bias": jax.random.uniform(
            k_b, (embed_dim,), jnp.float32, -bound, bound),
    }


if __name__ == "__main__":
    key = jax.random.PRNGKey(0)
    k_in_re, k_in_im, k_param = jax.random.split(key, 3)

    batch = 2
    n_bins = 128        # feat = 256 -> effective MXU contraction 2*128
    n_frames = 300      # not a multiple of 128: exercises the frame-padding path
    embed_dim = 128

    x_re = jax.random.normal(k_in_re, (batch, n_bins, n_frames), jnp.float32)
    x_im = jax.random.normal(k_in_im, (batch, n_bins, n_frames), jnp.float32)
    x_complex = x_re + 1j * x_im  # (batch, n_bins, n_frames), complex64

    params = init_params(k_param, n_bins, embed_dim)

    out = band_split_block(x_complex, params, tile_t=512)
    out = jax.block_until_ready(out)

    ref = band_split_block_ref(x_complex, params)
    assert out.shape == (batch, embed_dim, n_frames), out.shape
    assert jnp.allclose(out, ref, atol=2e-4, rtol=2e-4), "mismatch vs reference"

    print("KERNEL_OK")
</pallas_src>

<mosaic_0001>
module attributes {stable_mosaic.version = 11 : i64} {
  func.func @_bandsplit_kernel(%arg0: i32, %arg1: i32, %arg2: memref<1x128x384xf32, #tpu.memory_space<vmem>>, %arg3: memref<1x128x384xf32, #tpu.memory_space<vmem>>, %arg4: memref<128x1xf32, #tpu.memory_space<vmem>>, %arg5: memref<128x1xf32, #tpu.memory_space<vmem>>, %arg6: memref<128x1xf32, #tpu.memory_space<vmem>>, %arg7: memref<128x1xf32, #tpu.memory_space<vmem>>, %arg8: memref<128x128xf32, #tpu.memory_space<vmem>>, %arg9: memref<128x128xf32, #tpu.memory_space<vmem>>, %arg10: memref<128x1xf32, #tpu.memory_space<vmem>>, %arg11: memref<1x128x384xf32, #tpu.memory_space<vmem>>) attributes {dimension_semantics = [#tpu.dimension_semantics<parallel>, #tpu.dimension_semantics<parallel>], iteration_bounds = array<i64: 2, 1>, scalar_prefetch = 0 : i64, scratch_operands = 0 : i64, tpu.core_type = #tpu.core_type<tc>, window_params = [{transform_indices = @transform_0, window_bounds = array<i64: 1, 128, 384>}, {transform_indices = @transform_1, window_bounds = array<i64: 1, 128, 384>}, {pipeline_mode = #tpu.pipeline_mode<synchronous>, transform_indices = @transform_2, window_bounds = array<i64: 128, 1>}, {pipeline_mode = #tpu.pipeline_mode<synchronous>, transform_indices = @transform_3, window_bounds = array<i64: 128, 1>}, {pipeline_mode = #tpu.pipeline_mode<synchronous>, transform_indices = @transform_4, window_bounds = array<i64: 128, 1>}, {pipeline_mode = #tpu.pipeline_mode<synchronous>, transform_indices = @transform_5, window_bounds = array<i64: 128, 1>}, {pipeline_mode = #tpu.pipeline_mode<synchronous>, transform_indices = @transform_6, window_bounds = array<i64: 128, 128>}, {pipeline_mode = #tpu.pipeline_mode<synchronous>, transform_indices = @transform_7, window_bounds = array<i64: 128, 128>}, {pipeline_mode = #tpu.pipeline_mode<synchronous>, transform_indices = @transform_8, window_bounds = array<i64: 128, 1>}, {transform_indices = @transform_9, window_bounds = array<i64: 1, 128, 384>}]} {
    %c0 = arith.constant 0 : index
    %c0_0 = arith.constant 0 : index
    %c0_1 = arith.constant 0 : index
    %0 = vector.load %arg2[%c0, %c0_0, %c0_1] : memref<1x128x384xf32, #tpu.memory_space<vmem>>, vector<1x128x384xf32>
    %1 = vector.shape_cast %0 : vector<1x128x384xf32> to vector<128x384xf32>
    %c0_2 = arith.constant 0 : index
    %c0_3 = arith.constant 0 : index
    %c0_4 = arith.constant 0 : index
    %2 = vector.load %arg3[%c0_2, %c0_3, %c0_4] : memref<1x128x384xf32, #tpu.memory_space<vmem>>, vector<1x128x384xf32>
    %3 = vector.shape_cast %2 : vector<1x128x384xf32> to vector<128x384xf32>
    %cst = arith.constant dense<0.000000e+00> : vector<384xf32>
    %4 = vector.multi_reduction <add>, %1, %cst [0] : vector<128x384xf32> to vector<384xf32>
    %5 = vector.shape_cast %4 : vector<384xf32> to vector<1x384xf32>
    %cst_5 = arith.constant dense<0.000000e+00> : vector<384xf32>
    %6 = vector.multi_reduction <add>, %3, %cst_5 [0] : vector<128x384xf32> to vector<384xf32>
    %7 = vector.shape_cast %6 : vector<384xf32> to vector<1x384xf32>
    %8 = arith.addf %5, %7 : vector<1x384xf32>
    %cst_6 = arith.constant 3.906250e-03 : f32
    %9 = vector.broadcast %cst_6 : f32 to vector<1x384xf32>
    %10 = arith.mulf %8, %9 : vector<1x384xf32>
    %11 = vector.broadcast %10 : vector<1x384xf32> to vector<128x384xf32>
    %12 = arith.subf %1, %11 : vector<128x384xf32>
    %13 = vector.broadcast %10 : vector<1x384xf32> to vector<128x384xf32>
    %14 = arith.subf %3, %13 : vector<128x384xf32>
    %15 = arith.mulf %12, %12 : vector<128x384xf32>
    %cst_7 = arith.constant dense<0.000000e+00> : vector<384xf32>
    %16 = vector.multi_reduction <add>, %15, %cst_7 [0] : vector<128x384xf32> to vector<384xf32>
    %17 = vector.shape_cast %16 : vector<384xf32> to vector<1x384xf32>
    %18 = arith.mulf %14, %14 : vector<128x384xf32>
    %cst_8 = arith.constant dense<0.000000e+00> : vector<384xf32>
    %19 = vector.multi_reduction <add>, %18, %cst_8 [0] : vector<128x384xf32> to vector<384xf32>
    %20 = vector.shape_cast %19 : vector<384xf32> to vector<1x384xf32>
    %21 = arith.addf %17, %20 : vector<1x384xf32>
    %cst_9 = arith.constant 3.906250e-03 : f32
    %22 = vector.broadcast %cst_9 : f32 to vector<1x384xf32>
    %23 = arith.mulf %21, %22 : vector<1x384xf32>
    %cst_10 = arith.constant 9.99999974E-6 : f32
    %24 = vector.broadcast %cst_10 : f32 to vector<1x384xf32>
    %25 = arith.addf %23, %24 : vector<1x384xf32>
    %26 = math.rsqrt %25 : vector<1x384xf32>
    %27 = vector.broadcast %26 : vector<1x384xf32> to vector<128x384xf32>
    %28 = arith.mulf %12, %27 : vector<128x384xf32>
    %c0_11 = arith.constant 0 : index
    %c0_12 = arith.constant 0 : index
    %29 = vector.load %arg4[%c0_11, %c0_12] : memref<128x1xf32, #tpu.memory_space<vmem>>, vector<128x1xf32>
    %30 = vector.broadcast %29 : vector<128x1xf32> to vector<128x384xf32>
    %31 = arith.mulf %28, %30 : vector<128x384xf32>
    %c0_13 = arith.constant 0 : index
    %c0_14 = arith.constant 0 : index
    %32 = vector.load %arg6[%c0_13, %c0_14] : memref<128x1xf32, #tpu.memory_space<vmem>>, vector<128x1xf32>
    %33 = vector.broadcast %32 : vector<128x1xf32> to vector<128x384xf32>
    %34 = arith.addf %31, %33 : vector<128x384xf32>
    %35 = vector.broadcast %26 : vector<1x384xf32> to vector<128x384xf32>
    %36 = arith.mulf %14, %35 : vector<128x384xf32>
    %c0_15 = arith.constant 0 : index
    %c0_16 = arith.constant 0 : index
    %37 = vector.load %arg5[%c0_15, %c0_16] : memref<128x1xf32, #tpu.memory_space<vmem>>, vector<128x1xf32>
    %38 = vector.broadcast %37 : vector<128x1xf32> to vector<128x384xf32>
    %39 = arith.mulf %36, %38 : vector<128x384xf32>
    %c0_17 = arith.constant 0 : index
    %c0_18 = arith.constant 0 : index
    %40 = vector.load %arg7[%c0_17, %c0_18] : memref<128x1xf32, #tpu.memory_space<vmem>>, vector<128x1xf32>
    %41 = vector.broadcast %40 : vector<128x1xf32> to vector<128x384xf32>
    %42 = arith.addf %39, %41 : vector<128x384xf32>
    %c0_19 = arith.constant 0 : index
    %c0_20 = arith.constant 0 : index
    %43 = vector.load %arg8[%c0_19, %c0_20] : memref<128x128xf32, #tpu.memory_space<vmem>>, vector<128x128xf32>
    %cst_21 = arith.constant dense<0.000000e+00> : vector<128x384xf32>
    %44 = tpu.matmul %43, %34, %cst_21 {dimension_numbers = #tpu.dot_dimension_numbers<[1], [0], [0], [1], [0, 0, 1, 1], [], []>} : vector<128x128xf32>, vector<128x384xf32>, vector<128x384xf32> -> vector<128x384xf32>
    %c0_22 = arith.constant 0 : index
    %c0_23 = arith.constant 0 : index
    %45 = vector.load %arg9[%c0_22, %c0_23] : memref<128x128xf32, #tpu.memory_space<vmem>>, vector<128x128xf32>
    %cst_24 = arith.constant dense<0.000000e+00> : vector<128x384xf32>
    %46 = tpu.matmul %45, %42, %cst_24 {dimension_numbers = #tpu.dot_dimension_numbers<[1], [0], [0], [1], [0, 0, 1, 1], [], []>} : vector<128x128xf32>, vector<128x384xf32>, vector<128x384xf32> -> vector<128x384xf32>
    %47 = arith.addf %44, %46 : vector<128x384xf32>
    %c0_25 = arith.constant 0 : index
    %c0_26 = arith.constant 0 : index
    %48 = vector.load %arg10[%c0_25, %c0_26] : memref<128x1xf32, #tpu.memory_space<vmem>>, vector<128x1xf32>
    %49 = vector.broadcast %48 : vector<128x1xf32> to vector<128x384xf32>
    %50 = arith.addf %47, %49 : vector<128x384xf32>
    %c0_27 = arith.constant 0 : index
    %c0_28 = arith.constant 0 : index
    %c0_29 = arith.constant 0 : index
    %51 = vector.load %arg11[%c0_27, %c0_28, %c0_29] : memref<1x128x384xf32, #tpu.memory_space<vmem>>, vector<1x128x384xf32>
    %52 = vector.shape_cast %51 : vector<1x128x384xf32> to vector<128x384xf32>
    %53 = vector.shape_cast %50 : vector<128x384xf32> to vector<1x128x384xf32>
    tpu.vector_store %arg11[%c0_27, %c0_28, %c0_29], %53 {strides = array<i32>} : memref<1x128x384xf32, #tpu.memory_space<vmem>>, vector<1x128x384xf32>,
    return
  }
  func.func @transform_0(%arg0: i32, %arg1: i32) -> (i32, i32, i32) {
    %c0_i32 = arith.constant 0 : i32
    %c0_i32_0 = arith.constant 0 : i32
    return %arg0, %c0_i32, %arg1 : i32, i32, i32
  }
  func.func @transform_1(%arg0: i32, %arg1: i32) -> (i32, i32, i32) {
    %c0_i32 = arith.constant 0 : i32
    %c0_i32_0 = arith.constant 0 : i32
    return %arg0, %c0_i32, %arg1 : i32, i32, i32
  }
  func.func @transform_2(%arg0: i32, %arg1: i32) -> (i32, i32) {
    %c0_i32 = arith.constant 0 : i32
    %c0_i32_0 = arith.constant 0 : i32
    %c0_i32_1 = arith.constant 0 : i32
    return %c0_i32, %c0_i32_0 : i32, i32
  }
  func.func @transform_3(%arg0: i32, %arg1: i32) -> (i32, i32) {
    %c0_i32 = arith.constant 0 : i32
    %c0_i32_0 = arith.constant 0 : i32
    %c0_i32_1 = arith.constant 0 : i32
    return %c0_i32, %c0_i32_0 : i32, i32
  }
  func.func @transform_4(%arg0: i32, %arg1: i32) -> (i32, i32) {
    %c0_i32 = arith.constant 0 : i32
    %c0_i32_0 = arith.constant 0 : i32
    %c0_i32_1 = arith.constant 0 : i32
    return %c0_i32, %c0_i32_0 : i32, i32
  }
  func.func @transform_5(%arg0: i32, %arg1: i32) -> (i32, i32) {
    %c0_i32 = arith.constant 0 : i32
    %c0_i32_0 = arith.constant 0 : i32
    %c0_i32_1 = arith.constant 0 : i32
    return %c0_i32, %c0_i32_0 : i32, i32
  }
  func.func @transform_6(%arg0: i32, %arg1: i32) -> (i32, i32) {
    %c0_i32 = arith.constant 0 : i32
    %c0_i32_0 = arith.constant 0 : i32
    %c0_i32_1 = arith.constant 0 : i32
    return %c0_i32, %c0_i32_0 : i32, i32
  }
  func.func @transform_7(%arg0: i32, %arg1: i32) -> (i32, i32) {
    %c0_i32 = arith.constant 0 : i32
    %c0_i32_0 = arith.constant 0 : i32
    %c0_i32_1 = arith.constant 0 : i32
    return %c0_i32, %c0_i32_0 : i32, i32
  }
  func.func @transform_8(%arg0: i32, %arg1: i32) -> (i32, i32) {
    %c0_i32 = arith.constant 0 : i32
    %c0_i32_0 = arith.constant 0 : i32
    %c0_i32_1 = arith.constant 0 : i32
    return %c0_i32, %c0_i32_0 : i32, i32
  }
  func.func @transform_9(%arg0: i32, %arg1: i32) -> (i32, i32, i32) {
    %c0_i32 = arith.constant 0 : i32
    %c0_i32_0 = arith.constant 0 : i32
    return %arg0, %c0_i32, %arg1 : i32, i32, i32
  }
}

</mosaic_0001>

<bundles_post_ra>
// kernel: tpu_custom_call.1
= control target key start
LH: loop header
LB: loop body
LE: loop exit
PB: predicated region body
PF: predicated region fallthrough
CT: control target
= control target key end

     0   :  { %s5627_s0 = inlined_call_operand.hbm [shape: f32[2,128,384], index: 0, kind: input, shape index: {}]   ;;  %s5628_s1 = inlined_call_operand.hbm [shape: f32[2,128,384], index: 1, kind: input, shape index: {}]   ;;  %s5629_s2 = inlined_call_operand.vmem [shape: f32[128,1], index: 2, kind: input, shape index: {}]   ;;  %s5630_s3 = inlined_call_operand.vmem [shape: f32[128,1], index: 3, kind: input, shape index: {}]   ;;  %s5631_s4 = inlined_call_operand.vmem [shape: f32[128,1], index: 4, kind: input, shape index: {}]   ;;  %s5632_s5 = inlined_call_operand.vmem [shape: f32[128,1], index: 5, kind: input, shape index: {}]   ;;  %s5633_s6 = inlined_call_operand.vmem [shape: f32[128,128], index: 6, kind: input, shape index: {}]   ;;  %s5634_s7 = inlined_call_operand.vmem [shape: f32[128,128], index: 7, kind: input, shape index: {}]   ;;  %s5635_s8 = inlined_call_operand.vmem [shape: f32[128,1], index: 8, kind: input, shape index: {}]   ;;  %s5636_s9 = inlined_call_operand.hbm [shape: f32[2,128,384], index: 9, kind: output, shape index: {}]  }
   0x1   :  { %5804 = sst [smem:[#allocation111_spill]] %s5627_s0 }
   0x2   :  { %14 = vsyncpa [#allocation3], 0 }
   0x3   :  { %16 = vsyncpa [#allocation3 + $0x1], 0 }
   0x4   :  { %17 = vsyncpa [#allocation6], 0 }
   0x5   :  { %19 = vsyncpa [#allocation6 + $0x1], 0 }
   0x6   :  { %20 = vsyncpa [#allocation4], 0 }
   0x7   :  { %22 = vsyncpa [#allocation4 + $0x1], 0  ;;  %s3283_s30 = smov 0   ;;  %s3285_s10 = smov 0  }
   0x8   :  { %s3287_s11 = smov 0   ;;  %s3289_s12 = smov 0  }
   0x9   :  { %s3291_s13 = smov 0   ;;  %s3293_s14 = smov 0  }
   0xa LB: > { %5805 = sst [smem:[#allocation11_spill]] %s3210_s11  ;;  %s2611_s15 = sadd.s32 4294967295, %s3222_s14   ;;  %s3222_s14 = sphi %s3293_s14, %s28_s14   ;;  %s3218_s13 = sphi %s3291_s13, %s6178_s13   ;;  %s3214_s12 = sphi %s3289_s12, %s6177_s12   ;;  %s3210_s11 = sphi %s3287_s11, %s6173_s11   ;;  %s3206_s10 = sphi %s3285_s10, %s6176_s10   ;;  %s3202_s30 = sphi %s3283_s30, %s6175_s30  }
   0xb   : > { %s2612_s16 = sadd.s32 4294967294, %s3222_s14   ;;  %s40_s17 = sadd.s32 1, %s3218_s13 }
   0xc   : > { %s49_s18 = sadd.s32 1, %s3210_s11  ;;  %p42_p0 = scmp.ge.s32.totalorder %s40_s17, 2 }
   0xd   : > { %p56_p1 = scmp.ne.s32.totalorder %s3210_s11, %s3206_s10  ;;  %p57_p2 = scmp.eq.s32.totalorder %s3222_s14, 0 }
   0xe   : > { %p62_p3 = scmp.ne.s32.totalorder %s3206_s10, %s3202_s30  ;;  %s6180_s17 = smov (%p42_p0, %s40_s17), 0 }
   0xf   : > { %5806 = sst [smem:[#allocation12_spill]] %s6180_s17  ;;  %p3324_p4 = por %p57_p2, %p56_p1 }
  0x10   : > { %p63_p5 = scmp.eq.s32.totalorder %s2611_s15, 0  ;;  %s44_s20 = ssub.s32 %s3218_s13, %s6180_s17 }
  0x11   : > { %p263_p6 = scmp.eq.s32.totalorder %s2611_s15, 1  ;;  %p47_p7 = scmp.eq.s32.totalorder %s44_s20, 0 }
  0x12   : > { %p3330_p8 = por %p63_p5, %p62_p3  ;;  %p269_p10 = scmp.eq.s32.totalorder %s2612_s16, 1 }
  0x13   : > { %p3334_p9 = por %p263_p6, %p56_p1  ;;  %p3012_p13 = scmp.lt.s32.totalorder %s3222_s14, 2 }
  0x14   : > { %s5808_s21 = scalar_select %p3330_p8, 1, 0 }
  0x15   : > { %s5809_s22 = scalar_select %p3334_p9, 1, 0 }
  0x16   : > { %s3339_s23 = scalar_select %p47_p7, %s3210_s11, %s49_s18  }
  0x17   : > { %p3341_p11 = por %p269_p10, %p62_p3  ;;  %s3348_s25 = sand.u32 1, %s3210_s11  }
  0x18   : > { %5810 = sst [smem:[#allocation13_spill]] %s3339_s23  ;;  %s2989_s26 = smul.u32 384, %s3348_s25 }
  0x19   : > { %s5811_s24 = scalar_select %p3341_p11, 1, 0 }
  0x1a   : > { %s5638_s27 = smul.u32 6144, %s3218_s13  ;;  %p3354_p0 = pnand %p3012_p13, %p3324_p4 }
  0x1b   : > { %5812 = sst [smem:[#allocation14_spill]] %s5811_s24  ;;  %s5814_s0 = sld [smem:[#allocation111_spill]] }
  0x1c   : > { %s314_s18 = scalar_lea.vmem [#allocation2], %s2989_s26  ;;  %s311_s19 = scalar_lea.sflag [#allocation3], %s3348_s25 }
  0x1d   : > { %s323_s20 = sshll.u32 %s314_s18, 4  ;;  %p3078_p3 = pneg %p3354_p0  ;;  %s3367_s20 = int_to_ptr.vmem [resolvable:$true] %s323_s20 }
  0x21   : > { %s3363_s16 = scalar_lea.hbm %s5814_s0, %s5638_s27  ;;  %s3081_s27 = scalar_lea.hbm %s5814_s0, 12288 }
  0x22   : > { %s3076_s17 = scalar_lea.hbm %s3363_s16, 6144  ;;  %p3082_p6 = scmp.lt.u32.totalorder %s3363_s16, %s5814_s0 }
  0x23   : > { %p3077_p2 = scmp.ne.s32.totalorder %s3363_s16, %s3076_s17  ;;  %p3083_p7 = scmp.lt.u32.totalorder %s3081_s27, %s3076_s17 }
  0x24   : > { %p3085_p13 = scmp.lt.u32.totalorder %s3076_s17, %s3363_s16 }
  0x25   : > { %p3079_p4 = pnand %p3078_p3, %p3077_p2  ;;  %p3084_p10 = por %p3083_p7, %p3082_p6 }
  0x27   : > { %p3080_p5 = pneg %p3079_p4  ;;  %p3086_p12 = por %p3085_p13, %p3084_p10 }
  0x29   : > { %p3087_p1 = pnand %p3086_p12, %p3080_p5 }
  0x2b   : > { %3090 = shalt.err (!%p3087_p1)
}
  0x2c   : > { %s3091_s18 = scalar_lea.vmem %s3367_s20, 6144  ;;  %s3224_s29 = smov [#allocation2]  }
  0x2d   : > { %p3092_p2 = scmp.ne.s32.totalorder %s3367_s20, %s3091_s18  ;;  %s3096_s15 = sshll.u32 %s3224_s29, 4  ;;  %s3097_s15 = int_to_ptr.vmem [resolvable:$false] %s3096_s15 }
  0x2e   : > { %s3098_s11 = scalar_lea.vmem %s3097_s15, 12288  ;;  %p3099_p9 = scmp.lt.s32.totalorder %s3367_s20, %s3097_s15 }
  0x2f   : > { %p3094_p4 = pnand %p3092_p2, %p3078_p3  ;;  %p3100_p6 = scmp.lt.s32.totalorder %s3098_s11, %s3091_s18 }
  0x31   : > { %p3095_p11 = pneg %p3094_p4  ;;  %p3101_p7 = por %p3100_p6, %p3099_p9 }
  0x33   : > { %p3102_p10 = pnand %p3101_p7, %p3095_p11 }
  0x35   : > { %3105 = shalt.err (!%p3102_p10)
}
  0x36   : > { %s5642_s17 = smov 384   ;;  %s3226_s23 = smov 24  }
  0x37   : > { %3004 = dma.hbm_to_vmem [thread:$0]  (!%p3354_p0), %s3363_s16, 6144, %s3367_s20, %s311_s19, %s5642_s17, %s5642_s17, %s3226_s23  }
  0x38   : > { %p354_p9 = scmp.lt.s32.totalorder %s3222_s14, 3  ;;  %s5815_s27 = smul.u32 6144, %s3218_s13 }
  0x39   : > { %p5816_p11 = scmp.ge.s32.totalorder %s3222_s14, 1  ;;  %s337_s0 = scalar_lea.vmem [#allocation5], %s2989_s26 }
  0x3a   : > { %s3407_s15 = scalar_lea.hbm %s5628_s1, %s5815_s27  ;;  %s346_s24 = sshll.u32 %s337_s0, 4  ;;  %s3417_s24 = int_to_ptr.vmem [resolvable:$true] %s346_s24 }
  0x3b   : > { %p3411_p12 = pnand %p5816_p11, %p354_p9  ;;  %s334_s16 = scalar_lea.sflag [#allocation6], %s3348_s25 }
  0x3c   : > { %s3106_s20 = scalar_lea.hbm %s3407_s15, 6144  ;;  %s3111_s18 = scalar_lea.hbm %s5628_s1, 12288 }
  0x3d   : > { %p3107_p1 = scmp.ne.s32.totalorder %s3407_s15, %s3106_s20  ;;  %p3112_p2 = scmp.lt.u32.totalorder %s3407_s15, %s5628_s1 }
  0x3e   : > { %p3113_p4 = scmp.lt.u32.totalorder %s3111_s18, %s3106_s20  ;;  %p3115_p7 = scmp.lt.u32.totalorder %s3106_s20, %s3407_s15 }
  0x3f   : > { %p3109_p5 = pnand %p3107_p1, %p3078_p3 }
  0x40   : > { %p3114_p6 = por %p3113_p4, %p3112_p2 }
  0x41   : > { %p3110_p13 = pneg %p3109_p5 }
  0x42   : > { %p3116_p10 = por %p3115_p7, %p3114_p6 }
  0x44   : > { %p3117_p9 = pnand %p3116_p10, %p3110_p13 }
  0x46   : > { %3120 = shalt.err (!%p3117_p9)
}
  0x47   : > { %s3121_s0 = scalar_lea.vmem %s3417_s24, 6144  ;;  %s3227_s26 = smov [#allocation5]  }
  0x48   : > { %p3122_p11 = scmp.ne.s32.totalorder %s3417_s24, %s3121_s0  ;;  %s3126_s19 = sshll.u32 %s3227_s26, 4  ;;  %s3127_s19 = int_to_ptr.vmem [resolvable:$false] %s3126_s19 }
  0x49   : > { %s3128_s17 = scalar_lea.vmem %s3127_s19, 12288  ;;  %p3129_p8 = scmp.lt.s32.totalorder %s3417_s24, %s3127_s19 }
  0x4a   : > { %p3124_p1 = pnand %p3122_p11, %p3078_p3  ;;  %p3130_p2 = scmp.lt.s32.totalorder %s3128_s17, %s3121_s0 }
  0x4c   : > { %p3125_p5 = pneg %p3124_p1  ;;  %p3131_p4 = por %p3130_p2, %p3129_p8 }
  0x4e   : > { %p3132_p6 = pnand %p3131_p4, %p3125_p5 }
  0x50   : > { %3135 = shalt.err (!%p3132_p6)
}
  0x51   : > { %s5818_s20 = smov 384   ;;  %358 = sbr.rel (%p3411_p12) target bundleno = 701 (0x2bd), region = 56 }
  0x52   : > { %3007 = dma.hbm_to_vmem [thread:$0]  (!%p3354_p0), %s3407_s15, 6144, %s3417_s24, %s334_s16, %s5818_s20, %s5818_s20, %s3226_s23  }
  0x58   : > { %s3451_s27 = sand.u32 1, %s3206_s10   ;;  %p5819_p8 = scmp.ne.s32.totalorder %s5808_s21, 0 }
  0x59   : > { %s3454_s18 = smul.u32 384, %s3451_s27  ;;  %s361_s28 = scalar_lea.sflag [#allocation3], %s3451_s27 }
  0x5b   : > { %s3458_s29 = scalar_lea.vmem [#allocation2], %s3454_s18 }
  0x5c   : > { %3189 = dma.done.wait (%p5819_p8), %s361_s28, 6144  }
  0x5d   : > { %3191 = vsyncadd (%p5819_p8), %s361_s28, 4294961152  ;;  %s370_s24 = scalar_lea.sflag [#allocation6], %s3451_s27  ;;  %s3466_s25 = scalar_lea.vmem [#allocation5], %s3454_s18 }
  0x5e   : > { %3193 = dma.done.wait (%p5819_p8), %s370_s24, 6144  }
  0x5f   : > { %3195 = vsyncadd (%p5819_p8), %s370_s24, 4294961152  ;;  %v3228_v0 = vmov 0   ;;  %v1502_v1 = vld [vmem:[%s5632_s5] sm:$0xff]  ;;  %v1503_v3 = vld [vmem:[%s5632_s5 + $0x8] sm:$0xff]  ;;  %s5480_s20 = scalar_lea.vmem [#allocation7], %s3454_s18  ;;  %s2994_s18 = smul.u32 6144, %s3214_s12 }
  0x60   : > { %3069 = vset.pattern.permute.xlu1 %v3228_v0  ;;  %3068 = vset.pattern.permute.xlu0 %v3228_v0  ;;  %v1358_v2 = vld [vmem:[%s5630_s3] sm:$0xff]  ;;  %v1359_v4 = vld [vmem:[%s5630_s3 + $0x8] sm:$0xff]  ;;  %v1361_v5 = vld [vmem:[%s5630_s3 + $0x18] sm:$0xff]  ;;  %s2498_s28 = sshll.u32 %s5480_s20, 4  ;;  %s2483_s12 = scalar_lea.sflag [#allocation4], %s3451_s27  ;;  %s5576_s28 = int_to_ptr.vmem [resolvable:$true] %s2498_s28 }
  0x61   : > { %1520 = vperm.xlu1 %3069, %v1502_v1   ;;  %1376 = vperm.xlu0 %3068, %v1358_v2   ;;  %v1360_v6 = vld [vmem:[%s5630_s3 + $0x10] sm:$0xff]  ;;  %v1505_v7 = vld [vmem:[%s5632_s5 + $0x18] sm:$0xff]  ;;  %v1363_v9 = vld [vmem:[%s5630_s3 + $0x28] sm:$0xff]  ;;  %s5573_s23 = scalar_lea.hbm %s5636_s9, %s2994_s18  ;;  %s3136_s15 = scalar_lea.vmem %s5576_s28, 6144 }
  0x62   : > { %v1504_v8 = vld [vmem:[%s5632_s5 + $0x10] sm:$0xff]  ;;  %v1362_v10 = vld [vmem:[%s5630_s3 + $0x20] sm:$0xff]  ;;  %v1507_v11 = vld [vmem:[%s5632_s5 + $0x28] sm:$0xff]  ;;  %p3137_p0 = scmp.ne.s32.totalorder %s5576_s28, %s3136_s15  ;;  %p6168_p3 = scmp.ne.s32.totalorder %s5809_s22, 0 }
  0x63   : > { %v1506_v12 = vld [vmem:[%s5632_s5 + $0x20] sm:$0xff]  ;;  %v1365_v13 = vld [vmem:[%s5630_s3 + $0x38] sm:$0xff]  ;;  %v1364_v14 = vld [vmem:[%s5630_s3 + $0x30] sm:$0xff]  ;;  %s3230_s11 = smov [#allocation7]  }
  0x64   : > { %v3515_v15 = vld [vmem:[%s3458_s29] sm:$0xff]  ;;  %v3518_v16 = vld [vmem:[%s3458_s29 + $0x8] sm:$0xff]  ;;  %v3521_v17 = vld [vmem:[%s3458_s29 + $0x10] sm:$0xff]  ;;  %p3138_p12 = pnand %p3137_p0, %p6168_p3  ;;  %s3140_s16 = sshll.u32 %s3230_s11, 4  ;;  %s3141_s16 = int_to_ptr.vmem [resolvable:$false] %s3140_s16 }
  0x65   : > { %1525 = vperm.xlu1 %3069, %v1503_v3   ;;  %1381 = vperm.xlu0 %3068, %v1359_v4   ;;  %v3524_v18 = vld [vmem:[%s3458_s29 + $0x18] sm:$0xff]  ;;  %v3527_v19 = vld [vmem:[%s3458_s29 + $0x20] sm:$0xff]  ;;  %v3530_v20 = vld [vmem:[%s3458_s29 + $0x28] sm:$0xff]  ;;  %p3143_p7 = scmp.lt.s32.totalorder %s5576_s28, %s3141_s16 }
  0x66   : > { %v3533_v21 = vld [vmem:[%s3458_s29 + $0x30] sm:$0xff]  ;;  %v3536_v22 = vld [vmem:[%s3458_s29 + $0x38] sm:$0xff]  ;;  %v512_v23 = vadd.f32 %v3524_v18, %v3515_v15  ;;  %v533_v24 = vadd.f32 %v3527_v19, %v3518_v16  ;;  %v3543_v25 = vld [vmem:[%s3458_s29 + $0x40] sm:$0xff]  ;;  %v554_v28 = vadd.f32 %v3530_v20, %v3521_v17  ;;  %p3139_p13 = pneg %p3138_p12 }
  0x67   : > { %v3546_v26 = vld [vmem:[%s3458_s29 + $0x48] sm:$0xff]  ;;  %v3549_v27 = vld [vmem:[%s3458_s29 + $0x50] sm:$0xff]  ;;  %v1509_v29 = vld [vmem:[%s5632_s5 + $0x38] sm:$0xff] }
  0x68   : > { %v3557_v30 = vld [vmem:[%s3458_s29 + $0x58] sm:$0xff]  ;;  %v513_v31 = vadd.f32 %v512_v23, %v3533_v21  ;;  %v534_v32 = vadd.f32 %v533_v24, %v3536_v22  ;;  %v1508_v33 = vld [vmem:[%s5632_s5 + $0x30] sm:$0xff]  ;;  %v3565_v34 = vld [vmem:[%s3458_s29 + $0x60] sm:$0xff]  ;;  %v555_v36 = vadd.f32 %v554_v28, %v3543_v25 }
  0x69   : > { %1391 = vperm.xlu1 %3069, %v1361_v5   ;;  %1386 = vperm.xlu0 %3068, %v1360_v6   ;;  %v3568_v35 = vld [vmem:[%s3458_s29 + $0x68] sm:$0xff]  ;;  %v3572_v37 = vld [vmem:[%s3458_s29 + $0x70] sm:$0xff]  ;;  %v3577_v40 = vld [vmem:[%s3458_s29 + $0x78] sm:$0xff] }
  0x6a   : > { %v514_v38 = vadd.f32 %v513_v31, %v3546_v26  ;;  %v535_v39 = vadd.f32 %v534_v32, %v3549_v27  ;;  %v3580_v41 = vld [vmem:[%s3458_s29 + $0x80] sm:$0xff]  ;;  %v556_v42 = vadd.f32 %v555_v36, %v3557_v30  ;;  %v1367_v43 = vld [vmem:[%s5630_s3 + $0x48] sm:$0xff]  ;;  %v3595_v48 = vld [vmem:[%s3458_s29 + $0x90] sm:$0xff] }
  0x6b   : > { %v3587_v44 = vld [vmem:[%s3458_s29 + $0x88] sm:$0xff]  ;;  %v1366_v47 = vld [vmem:[%s5630_s3 + $0x40] sm:$0xff]  ;;  %v3598_v49 = vld [vmem:[%s3458_s29 + $0x98] sm:$0xff] }
  0x6c   : > { %v515_v45 = vadd.f32 %v514_v38, %v3565_v34  ;;  %v536_v46 = vadd.f32 %v535_v39, %v3568_v35  ;;  %v557_v50 = vadd.f32 %v556_v42, %v3572_v37  ;;  %v3602_v51 = vld [vmem:[%s3458_s29 + $0xa0] sm:$0xff]  ;;  %v3607_v54 = vld [vmem:[%s3458_s29 + $0xa8] sm:$0xff]  ;;  %v3610_v55 = vld [vmem:[%s3458_s29 + $0xb0] sm:$0xff] }
  0x6d   : > { %1535 = vperm.xlu1 %3069, %v1505_v7   ;;  %1530 = vperm.xlu0 %3068, %v1504_v8   ;;  %v1511_v57 = vld [vmem:[%s5632_s5 + $0x48] sm:$0xff]  ;;  %v3617_v58 = vld [vmem:[%s3458_s29 + $0xb8] sm:$0xff]  ;;  %v1510_v61 = vld [vmem:[%s5632_s5 + $0x40] sm:$0xff] }
  0x6e   : > { %v516_v52 = vadd.f32 %v515_v45, %v3577_v40  ;;  %v537_v53 = vadd.f32 %v536_v46, %v3580_v41  ;;  %v558_v56 = vadd.f32 %v557_v50, %v3587_v44  ;;  %v3625_v62 = vld [vmem:[%s3458_s29 + $0xc0] sm:$0xff]  ;;  %v3628_v63 = vld [vmem:[%s3458_s29 + $0xc8] sm:$0xff]  ;;  %v3632_v1 = vld [vmem:[%s3458_s29 + $0xd0] sm:$0xff] }
  0x6f   : > { %v3635_v2 = vld [vmem:[%s3458_s29 + $0xd8] sm:$0xff]  ;;  %v3638_v3 = vld [vmem:[%s3458_s29 + $0xe0] sm:$0xff]  ;;  %v1368_v7 = vld [vmem:[%s5630_s3 + $0x50] sm:$0xff] }
  0x70   : > { %v517_v59 = vadd.f32 %v516_v52, %v3595_v48  ;;  %v538_v60 = vadd.f32 %v537_v53, %v3598_v49  ;;  %v559_v0 = vadd.f32 %v558_v56, %v3602_v51  ;;  %v1369_v6 = vld [vmem:[%s5630_s3 + $0x58] sm:$0xff]  ;;  %v3649_v8 = vld [vmem:[%s3458_s29 + $0xe8] sm:$0xff]  ;;  %v3670_v28 = vld [vmem:[%s3466_s25 + $0x10] sm:$0xff] }
  0x71   : > { %1401 = vperm.xlu1 %3069, %v1363_v9   ;;  %1396 = vperm.xlu0 %3068, %v1362_v10   ;;  %v3652_v9 = vld [vmem:[%s3458_s29 + $0xf0] sm:$0xff]  ;;  %v3655_v10 = vld [vmem:[%s3458_s29 + $0xf8] sm:$0xff]  ;;  %5822 = vst [vmem:[#allocation17_spill] sm:$0xff] %v3670_v28  ;;  %v3676_v31 = vld [vmem:[%s3466_s25 + $0x20] sm:$0xff] }
  0x72   : > { %v518_v4 = vadd.f32 %v517_v59, %v3607_v54  ;;  %v539_v5 = vadd.f32 %v538_v60, %v3610_v55  ;;  %5824 = vst [vmem:[#allocation19_spill] sm:$0xff] %v3676_v31  ;;  %v3683_v36 = vld [vmem:[%s3466_s25 + $0x30] sm:$0xff]  ;;  %v3686_v38 = vld [vmem:[%s3466_s25 + $0x38] sm:$0xff]  ;;  %v3701_v50 = vld [vmem:[%s3466_s25 + $0x40] sm:$0xff] }
  0x73   : > { %5826 = vst [vmem:[#allocation21_spill] sm:$0xff] %v3683_v36  ;;  %5827 = vst [vmem:[#allocation22_spill] sm:$0xff] %v3686_v38  ;;  %v1513_v46 = vld [vmem:[%s5632_s5 + $0x58] sm:$0xff]  ;;  %v3704_v52 = vld [vmem:[%s3466_s25 + $0x48] sm:$0xff] }
  0x74   : > { %v519_v23 = vadd.f32 %v518_v4, %v3625_v62  ;;  %v540_v24 = vadd.f32 %v539_v5, %v3628_v63  ;;  %5828 = vst [vmem:[#allocation23_spill] sm:$0xff] %v3701_v50  ;;  %5829 = vst [vmem:[#allocation24_spill] sm:$0xff] %v3704_v52  ;;  %v3713_v59 = vld [vmem:[%s3466_s25 + $0x50] sm:$0xff]  ;;  %v3716_v60 = vld [vmem:[%s3466_s25 + $0x58] sm:$0xff] }
  0x75   : > { %1545 = vperm.xlu1 %3069, %v1507_v11   ;;  %1540 = vperm.xlu0 %3068, %v1506_v12   ;;  %v560_v11 = vadd.f32 %v559_v0, %v3617_v58  ;;  %v3659_v12 = vld [vmem:[%s3458_s29 + $0x100] sm:$0xff]  ;;  %5830 = vst [vmem:[#allocation25_spill] sm:$0xff] %v3713_v59  ;;  %5831 = vst [vmem:[#allocation26_spill] sm:$0xff] %v3716_v60  ;;  %v1512_v5 = vld [vmem:[%s5632_s5 + $0x50] sm:$0xff] }
  0x76   : > { %v520_v39 = vadd.f32 %v519_v23, %v3635_v2  ;;  %v541_v42 = vadd.f32 %v540_v24, %v3638_v3 }
  0x77   : > { %v561_v32 = vadd.f32 %v560_v11, %v3632_v1 }
  0x78   : > { %v542_v0 = vadd.f32 %v541_v42, %v3655_v10 }
  0x79   : > { %1411 = vperm.xlu1 %3069, %v1365_v13   ;;  %1406 = vperm.xlu0 %3068, %v1364_v14   ;;  %v3662_v13 = vld [vmem:[%s3466_s25] sm:$0xff]  ;;  %v3665_v14 = vld [vmem:[%s3466_s25 + $0x8] sm:$0xff]  ;;  %v562_v53 = vadd.f32 %v561_v32, %v3649_v8 }
  0x7a   : > { %5820 = vst [vmem:[#allocation15_spill] sm:$0xff] %v3662_v13  ;;  %5821 = vst [vmem:[#allocation16_spill] sm:$0xff] %v3665_v14  ;;  %v596_v45 = vadd.f32 %v3676_v31, %v3665_v14  ;;  %v3734_v32 = vld [vmem:[%s3466_s25 + $0x68] sm:$0xff] }
  0x7b   : > { %v563_v11 = vadd.f32 %v562_v53, %v3659_v12  ;;  %5833 = vst [vmem:[#allocation28_spill] sm:$0xff] %v3734_v32  ;;  %v3747_v53 = vld [vmem:[%s3466_s25 + $0x78] sm:$0xff] }
  0x7c   : > { %v597_v23 = vadd.f32 %v596_v45, %v3686_v38  ;;  %5835 = vst [vmem:[#allocation30_spill] sm:$0xff] %v3747_v53  ;;  %v3757_v38 = vld [vmem:[%s3466_s25 + $0x80] sm:$0xff] }
  0x7d   : > { %1555 = vperm.xlu1 %3069, %v1509_v29   ;;  %1550 = vperm.xlu0 %3068, %v1508_v33   ;;  %v3673_v29 = vld [vmem:[%s3466_s25 + $0x18] sm:$0xff]  ;;  %v3680_v33 = vld [vmem:[%s3466_s25 + $0x28] sm:$0xff]  ;;  %5837 = vst [vmem:[#allocation32_spill] sm:$0xff] %v3757_v38 }
  0x7e   : > { %5823 = vst [vmem:[#allocation18_spill] sm:$0xff] %v3673_v29  ;;  %5825 = vst [vmem:[#allocation20_spill] sm:$0xff] %v3680_v33  ;;  %v617_v56 = vadd.f32 %v3680_v33, %v3670_v28  ;;  %v3760_v33 = vld [vmem:[%s3466_s25 + $0x88] sm:$0xff]  ;;  %v3802_v28 = vld [vmem:[%s3466_s25 + $0xb8] sm:$0xff] }
  0x7f   : > { %5838 = vst [vmem:[#allocation33_spill] sm:$0xff] %v3760_v33  ;;  %5847 = vst [vmem:[#allocation42_spill] sm:$0xff] %v3802_v28 }
  0x80   : > { %v618_v24 = vadd.f32 %v617_v56, %v3701_v50  ;;  %v598_v50 = vadd.f32 %v597_v23, %v3713_v59  ;;  %v3768_v23 = vld [vmem:[%s3458_s29 + $0x130] sm:$0xff]  ;;  %v3786_v59 = vld [vmem:[%s3458_s29 + $0x138] sm:$0xff] }
  0x81   : > { %1421 = vperm.xlu1 %3069, %v1367_v43   ;;  %1416 = vperm.xlu0 %3068, %v1366_v47   ;;  %v575_v43 = vadd.f32 %v3673_v29, %v3662_v13  ;;  %v3698_v47 = vld [vmem:[%s3458_s29 + $0x108] sm:$0xff]  ;;  %5839 = vst [vmem:[#allocation34_spill] sm:$0xff] %v3768_v23  ;;  %5843 = vst [vmem:[#allocation38_spill] sm:$0xff] %v3786_v59  ;;  %v3831_v13 = vld [vmem:[%s3466_s25 + $0xd8] sm:$0xff] }
  0x82   : > { %v3789_v29 = vld [vmem:[%s3466_s25 + $0xa8] sm:$0xff]  ;;  %5852 = vst [vmem:[#allocation47_spill] sm:$0xff] %v3831_v13 }
  0x83   : > { %v576_v4 = vadd.f32 %v575_v43, %v3683_v36  ;;  %v1371_v43 = vld [vmem:[%s5630_s3 + $0x68] sm:$0xff]  ;;  %v3744_v36 = vld [vmem:[%s3458_s29 + $0x120] sm:$0xff]  ;;  %5844 = vst [vmem:[#allocation39_spill] sm:$0xff] %v3789_v29 }
  0x85   : > { %1565 = vperm.xlu1 %3069, %v1511_v57   ;;  %1560 = vperm.xlu0 %3068, %v1510_v61   ;;  %v3710_v57 = vld [vmem:[%s3458_s29 + $0x110] sm:$0xff]  ;;  %v521_v61 = vadd.f32 %v520_v39, %v3652_v9  ;;  %v577_v42 = vadd.f32 %v576_v4, %v3704_v52  ;;  %v619_v4 = vadd.f32 %v618_v24, %v3716_v60  ;;  %v3754_v52 = vld [vmem:[%s3458_s29 + $0x128] sm:$0xff]  ;;  %v3776_v60 = vld [vmem:[%s3466_s25 + $0x98] sm:$0xff] }
  0x86   : > { %v3737_v39 = vld [vmem:[%s3466_s25 + $0x70] sm:$0xff]  ;;  %v543_v56 = vadd.f32 %v542_v0, %v3710_v57  ;;  %5836 = vst [vmem:[#allocation31_spill] sm:$0xff] %v3754_v52  ;;  %v1370_v0 = vld [vmem:[%s5630_s3 + $0x60] sm:$0xff]  ;;  %5841 = vst [vmem:[#allocation36_spill] sm:$0xff] %v3776_v60 }
  0x87   : > { %5834 = vst [vmem:[#allocation29_spill] sm:$0xff] %v3737_v39  ;;  %v522_v45 = vadd.f32 %v521_v61, %v3698_v47  ;;  %v620_v24 = vadd.f32 %v619_v4, %v3737_v39 }
  0x88   : > { %v544_v4 = vadd.f32 %v543_v56, %v3754_v52  ;;  %v1514_v56 = vld [vmem:[%s5632_s5 + $0x60] sm:$0xff] }
  0x89   : > { %1431 = vperm.xlu1 %3069, %v1369_v6   ;;  %1426 = vperm.xlu0 %3068, %v1368_v7   ;;  %v3725_v6 = vld [vmem:[%s3458_s29 + $0x118] sm:$0xff]  ;;  %v3728_v7 = vld [vmem:[%s3466_s25 + $0x60] sm:$0xff] }
  0x8a   : > { %5832 = vst [vmem:[#allocation27_spill] sm:$0xff] %v3728_v7  ;;  %v564_v61 = vadd.f32 %v563_v11, %v3725_v6  ;;  %v578_v31 = vadd.f32 %v577_v42, %v3728_v7  ;;  %v3779_v11 = vld [vmem:[%s3466_s25 + $0xa0] sm:$0xff]  ;;  %v1515_v7 = vld [vmem:[%s5632_s5 + $0x68] sm:$0xff] }
  0x8b   : > { %5842 = vst [vmem:[#allocation37_spill] sm:$0xff] %v3779_v11 }
  0x8c   : > { %v579_v42 = vadd.f32 %v578_v31, %v3747_v53  ;;  %v621_v31 = vadd.f32 %v620_v24, %v3760_v33  ;;  %v3796_v53 = vld [vmem:[%s3458_s29 + $0x140] sm:$0xff]  ;;  %v3818_v33 = vld [vmem:[%s3466_s25 + $0xc8] sm:$0xff] }
  0x8d   : > { %1575 = vperm.xlu1 %3069, %v1513_v46   ;;  %1570 = vperm.xlu0 %3068, %v1512_v5   ;;  %v3771_v46 = vld [vmem:[%s3466_s25 + $0x90] sm:$0xff]  ;;  %v599_v5 = vadd.f32 %v598_v50, %v3734_v32  ;;  %v523_v50 = vadd.f32 %v522_v45, %v3744_v36  ;;  %5845 = vst [vmem:[#allocation40_spill] sm:$0xff] %v3796_v53  ;;  %5850 = vst [vmem:[#allocation45_spill] sm:$0xff] %v3818_v33 }
  0x8e   : > { %5840 = vst [vmem:[#allocation35_spill] sm:$0xff] %v3771_v46  ;;  %v3799_v32 = vld [vmem:[%s3466_s25 + $0xb0] sm:$0xff]  ;;  %v565_v45 = vadd.f32 %v564_v61, %v3768_v23  ;;  %v580_v14 = vadd.f32 %v579_v42, %v3771_v46  ;;  %v622_v24 = vadd.f32 %v621_v31, %v3779_v11  ;;  %v1373_v46 = vld [vmem:[%s5630_s3 + $0x78] sm:$0xff]  ;;  %v545_v31 = vadd.f32 %v544_v4, %v3796_v53  ;;  %v3844_v23 = vld [vmem:[%s3466_s25 + $0xe8] sm:$0xff] }
  0x8f   : > { %v600_v39 = vadd.f32 %v599_v5, %v3757_v38  ;;  %5846 = vst [vmem:[#allocation41_spill] sm:$0xff] %v3799_v32  ;;  %v3810_v5 = vld [vmem:[%s3458_s29 + $0x148] sm:$0xff]  ;;  %v3821_v61 = vld [vmem:[%s3466_s25 + $0xd0] sm:$0xff]  ;;  %5855 = vst [vmem:[#allocation50_spill] sm:$0xff] %v3844_v23 }
  0x90   : > { %5848 = vst [vmem:[#allocation43_spill] sm:$0xff] %v3810_v5  ;;  %5851 = vst [vmem:[#allocation46_spill] sm:$0xff] %v3821_v61  ;;  %v581_v42 = vadd.f32 %v580_v14, %v3789_v29  ;;  %v3828_v38 = vld [vmem:[%s3458_s29 + $0x150] sm:$0xff]  ;;  %v623_v14 = vadd.f32 %v622_v24, %v3802_v28  ;;  %v3838_v29 = vld [vmem:[%s3458_s29 + $0x158] sm:$0xff] }
  0x91   : > { %1441 = vperm.xlu1 %3069, %v1371_v43   ;;  %1436 = vperm.xlu0 %3068, %v1370_v0   ;;  %v3813_v43 = vld [vmem:[%s3466_s25 + $0xc0] sm:$0xff]  ;;  %v601_v0 = vadd.f32 %v600_v39, %v3776_v60  ;;  %v524_v39 = vadd.f32 %v523_v50, %v3786_v59  ;;  %5853 = vst [vmem:[#allocation48_spill] sm:$0xff] %v3838_v29  ;;  %v1372_v4 = vld [vmem:[%s5630_s3 + $0x70] sm:$0xff]  ;;  %v3860_v28 = vld [vmem:[%s3466_s25 + $0xf8] sm:$0xff] }
  0x92   : > { %5849 = vst [vmem:[#allocation44_spill] sm:$0xff] %v3813_v43  ;;  %v3841_v60 = vld [vmem:[%s3466_s25 + $0xe0] sm:$0xff]  ;;  %v566_v50 = vadd.f32 %v565_v45, %v3810_v5  ;;  %v582_v59 = vadd.f32 %v581_v42, %v3813_v43  ;;  %v624_v24 = vadd.f32 %v623_v14, %v3821_v61  ;;  %5858 = vst [vmem:[#allocation53_spill] sm:$0xff] %v3860_v28  ;;  %v1517_v43 = vld [vmem:[%s5632_s5 + $0x78] sm:$0xff] }
  0x93   : > { %v602_v11 = vadd.f32 %v601_v0, %v3799_v32  ;;  %5854 = vst [vmem:[#allocation49_spill] sm:$0xff] %v3841_v60  ;;  %v3852_v0 = vld [vmem:[%s3458_s29 + $0x160] sm:$0xff]  ;;  %v3870_v32 = vld [vmem:[%s3458_s29 + $0x168] sm:$0xff]  ;;  %v546_v14 = vadd.f32 %v545_v31, %v3838_v29  ;;  %v3886_v53 = vld [vmem:[%s3466_s25 + $0x118] sm:$0xff] }
  0x94   : > { %5856 = vst [vmem:[#allocation51_spill] sm:$0xff] %v3852_v0  ;;  %v3863_v45 = vld [vmem:[%s3466_s25 + $0x100] sm:$0xff]  ;;  %v583_v42 = vadd.f32 %v582_v59, %v3831_v13  ;;  %5860 = vst [vmem:[#allocation55_spill] sm:$0xff] %v3870_v32  ;;  %v3873_v5 = vld [vmem:[%s3466_s25 + $0x108] sm:$0xff]  ;;  %v625_v59 = vadd.f32 %v624_v24, %v3844_v23  ;;  %v567_v52 = vadd.f32 %v566_v50, %v3852_v0 }
  0x95   : > { %1585 = vperm.xlu1 %3069, %v1515_v7   ;;  %1580 = vperm.xlu0 %3068, %v1514_v56   ;;  %v3855_v7 = vld [vmem:[%s3466_s25 + $0xf0] sm:$0xff]  ;;  %v603_v56 = vadd.f32 %v602_v11, %v3818_v33  ;;  %5859 = vst [vmem:[#allocation54_spill] sm:$0xff] %v3863_v45  ;;  %5861 = vst [vmem:[#allocation56_spill] sm:$0xff] %v3873_v5  ;;  %v525_v11 = vadd.f32 %v524_v39, %v3828_v38  ;;  %v3902_v23 = vld [vmem:[%s3466_s25 + $0x128] sm:$0xff] }
  0x96   : > { %5857 = vst [vmem:[#allocation52_spill] sm:$0xff] %v3855_v7  ;;  %v3880_v13 = vld [vmem:[%s3458_s29 + $0x170] sm:$0xff]  ;;  %5864 = vst [vmem:[#allocation59_spill] sm:$0xff] %v3886_v53  ;;  %v584_v39 = vadd.f32 %v583_v42, %v3855_v7  ;;  %v626_v24 = vadd.f32 %v625_v59, %v3863_v45  ;;  %v3909_v7 = vld [vmem:[%s3466_s25 + $0x138] sm:$0xff] }
  0x97   : > { %v604_v61 = vadd.f32 %v603_v56, %v3841_v60  ;;  %5862 = vst [vmem:[#allocation57_spill] sm:$0xff] %v3880_v13  ;;  %v3883_v33 = vld [vmem:[%s3466_s25 + $0x110] sm:$0xff]  ;;  %v3894_v56 = vld [vmem:[%s3458_s29 + $0x178] sm:$0xff]  ;;  %5867 = vst [vmem:[#allocation62_spill] sm:$0xff] %v3902_v23  ;;  %v526_v60 = vadd.f32 %v525_v11, %v3870_v32  ;;  %v547_v0 = vadd.f32 %v546_v14, %v3880_v13  ;;  %s3142_s29 = scalar_lea.vmem %s3141_s16, 12288 }
  0x98   : > { %5863 = vst [vmem:[#allocation58_spill] sm:$0xff] %v3883_v33  ;;  %v1516_v31 = vld [vmem:[%s5632_s5 + $0x70] sm:$0xff]  ;;  %5865 = vst [vmem:[#allocation60_spill] sm:$0xff] %v3894_v56  ;;  %v585_v42 = vadd.f32 %v584_v39, %v3873_v5  ;;  %v3916_v59 = vld [vmem:[%s3466_s25 + $0x140] sm:$0xff]  ;;  %v568_v39 = vadd.f32 %v567_v52, %v3894_v56  ;;  %p3144_p10 = scmp.lt.s32.totalorder %s3142_s29, %s3136_s15 }
  0x99   : > { %1451 = vperm.xlu1 %3069, %v1373_v46   ;;  %1446 = vperm.xlu0 %3068, %v1372_v4   ;;  %v3897_v46 = vld [vmem:[%s3466_s25 + $0x120] sm:$0xff]  ;;  %v605_v4 = vadd.f32 %v604_v61, %v3860_v28  ;;  %v3905_v50 = vld [vmem:[%s3466_s25 + $0x130] sm:$0xff]  ;;  %5869 = vst [vmem:[#allocation64_spill] sm:$0xff] %v3909_v7  ;;  %v627_v61 = vadd.f32 %v626_v24, %v3886_v53  ;;  %5870 = vst [vmem:[#allocation65_spill] sm:$0xff] %v3916_v59  ;;  %v527_v53 = vrot.slane %v526_v60, 4 }
  0x9a   : > { %5866 = vst [vmem:[#allocation61_spill] sm:$0xff] %v3897_v46  ;;  %5868 = vst [vmem:[#allocation63_spill] sm:$0xff] %v3905_v50  ;;  %v3919_v45 = vld [vmem:[%s3466_s25 + $0x148] sm:$0xff]  ;;  %v586_v5 = vadd.f32 %v585_v42, %v3897_v46  ;;  %v1022_v14 = vld [vmem:[%s5629_s2] sm:$0xff]  ;;  %p3145_p9 = por %p3144_p10, %p3143_p7 }
  0x9b   : > { %v606_v29 = vadd.f32 %v605_v4, %v3883_v33  ;;  %5871 = vst [vmem:[#allocation66_spill] sm:$0xff] %v3919_v45  ;;  %v1023_v11 = vld [vmem:[%s5629_s2 + $0x8] sm:$0xff]  ;;  %v628_v4 = vadd.f32 %v627_v61, %v3905_v50  ;;  %v3935_v24 = vld [vmem:[%s3466_s25 + $0x158] sm:$0xff]  ;;  %v3938_v52 = vld [vmem:[%s3466_s25 + $0x160] sm:$0xff]  ;;  %v548_v33 = vrot.slane %v547_v0, 4  ;;  %v569_v61 = vrot.slane %v568_v39, 4 }
  0x9c   : > { %5873 = vst [vmem:[#allocation68_spill] sm:$0xff] %v3935_v24  ;;  %5874 = vst [vmem:[#allocation69_spill] sm:$0xff] %v3938_v52  ;;  %v587_v42 = vadd.f32 %v586_v5, %v3909_v7  ;;  %v3942_v46 = vld [vmem:[%s3466_s25 + $0x168] sm:$0xff]  ;;  %v3947_v13 = vld [vmem:[%s3466_s25 + $0x170] sm:$0xff]  ;;  %p3146_p11 = pnand %p3145_p9, %p3139_p13 }
  0x9d   : > { %1595 = vperm.xlu1 %3069, %v1517_v43   ;;  %1590 = vperm.xlu0 %3068, %v1516_v31   ;;  %v3930_v43 = vld [vmem:[%s3466_s25 + $0x150] sm:$0xff]  ;;  %v607_v31 = vadd.f32 %v606_v29, %v3902_v23  ;;  %5875 = vst [vmem:[#allocation70_spill] sm:$0xff] %v3942_v46  ;;  %v629_v56 = vadd.f32 %v628_v4, %v3919_v45  ;;  %5876 = vst [vmem:[#allocation71_spill] sm:$0xff] %v3947_v13  ;;  %v3950_v29 = vld [vmem:[%s3466_s25 + $0x178] sm:$0xff] }
  0x9e   : > { %5872 = vst [vmem:[#allocation67_spill] sm:$0xff] %v3930_v43  ;;  %5877 = vst [vmem:[#allocation72_spill] sm:$0xff] %v3950_v29  ;;  %v588_v50 = vadd.f32 %v587_v42, %v3930_v43  ;;  %v1167_v5 = vld [vmem:[%s5631_s4 + $0x8] sm:$0xff]  ;;  %v1166_v7 = vld [vmem:[%s5631_s4] sm:$0xff]  ;;  %v528_v4 = vadd.f32 %v527_v53, %v526_v60  ;;  %v549_v45 = vadd.f32 %v548_v33, %v547_v0 }
  0x9f   : > { %v608_v28 = vadd.f32 %v607_v31, %v3916_v59  ;;  %v570_v43 = vadd.f32 %v569_v61, %v568_v39  ;;  %v1025_v32 = vld [vmem:[%s5629_s2 + $0x18] sm:$0xff] }
  0xa0   : > { %v529_v33 = vrot.slane %v528_v4, 2  ;;  %v550_v53 = vrot.slane %v549_v45, 2  ;;  %v1169_v61 = vld [vmem:[%s5631_s4 + $0x18] sm:$0xff] }
  0xa1   : > { %1045 = vperm.xlu1 %3069, %v1023_v11   ;;  %1040 = vperm.xlu0 %3068, %v1022_v14   ;;  %v609_v31 = vadd.f32 %v608_v28, %v3935_v24  ;;  %v630_v11 = vadd.f32 %v629_v56, %v3938_v52  ;;  %v589_v14 = vadd.f32 %v588_v50, %v3942_v46  ;;  %v1024_v28 = vld [vmem:[%s5629_s2 + $0x10] sm:$0xff] }
  0xa3   : > { %v610_v59 = vadd.f32 %v609_v31, %v3947_v13  ;;  %v631_v42 = vadd.f32 %v630_v11, %v3950_v29  ;;  %v590_v23 = vrot.slane %v589_v14, 4  ;;  %v530_v13 = vadd.f32 %v529_v33, %v528_v4 }
  0xa5   : > { %1189 = vperm.xlu1 %3069, %v1167_v5   ;;  %1184 = vperm.xlu0 %3068, %v1166_v7   ;;  %v611_v56 = vrot.slane %v610_v59, 4  ;;  %v632_v50 = vrot.slane %v631_v42, 4  ;;  %v591_v60 = vadd.f32 %v590_v23, %v589_v14  ;;  %v571_v7 = vrot.slane %v570_v43, 2  ;;  %v1168_v5 = vld [vmem:[%s5631_s4 + $0x10] sm:$0xff] }
  0xa6   : > { %v551_v23 = vadd.f32 %v550_v53, %v549_v45 }
  0xa7   : > { %v612_v0 = vadd.f32 %v611_v56, %v610_v59  ;;  %v633_v31 = vadd.f32 %v632_v50, %v631_v42  ;;  %v592_v39 = vrot.slane %v591_v60, 2  ;;  %v1027_v42 = vld [vmem:[%s5629_s2 + $0x28] sm:$0xff]  ;;  %v531_v56 = vrot.slane %v530_v13, 1 }
  0xa8   : > { %v552_v50 = vrot.slane %v551_v23, 1 }
  0xa9   : > { %1055 = vperm.xlu1 %3069, %v1025_v32   ;;  %1050 = vperm.xlu0 %3068, %v1024_v28   ;;  %v613_v11 = vrot.slane %v612_v0, 2  ;;  %v634_v29 = vrot.slane %v633_v31, 2  ;;  %v593_v14 = vadd.f32 %v592_v39, %v591_v60  ;;  %v572_v32 = vadd.f32 %v571_v7, %v570_v43  ;;  %v1026_v28 = vld [vmem:[%s5629_s2 + $0x20] sm:$0xff]  ;;  %v1171_v43 = vld [vmem:[%s5631_s4 + $0x28] sm:$0xff]  ;;  %v1029_v39 = vld [vmem:[%s5629_s2 + $0x38] sm:$0xff] }
  0xaa   : > { %v532_v60 = vadd.f32 %v531_v56, %v530_v13  ;;  %v553_v33 = vadd.f32 %v552_v50, %v551_v23 }
  0xab   : > { %v614_v46 = vadd.f32 %v613_v11, %v612_v0  ;;  %v635_v59 = vadd.f32 %v634_v29, %v633_v31  ;;  %v594_v52 = vrot.slane %v593_v14, 1  ;;  %v573_v45 = vrot.slane %v572_v32, 1  ;;  %v1170_v29 = vld [vmem:[%s5631_s4 + $0x20] sm:$0xff] }
  0xad   : > { %1199 = vperm.xlu1 %3069, %v1169_v61   ;;  %1194 = vperm.xlu0 %3068, %v1168_v5   ;;  %v615_v24 = vrot.slane %v614_v46, 1  ;;  %v636_v4 = vrot.slane %v635_v59, 1  ;;  %v595_v53 = vadd.f32 %v594_v52, %v593_v14  ;;  %v574_v31 = vadd.f32 %v573_v45, %v572_v32  ;;  %v1028_v61 = vld [vmem:[%s5629_s2 + $0x30] sm:$0xff]  ;;  %v1031_v32 = vld [vmem:[%s5629_s2 + $0x48] sm:$0xff] }
  0xaf   : > { %v616_v0 = vadd.f32 %v615_v24, %v614_v46  ;;  %v637_v7 = vadd.f32 %v636_v4, %v635_v59  ;;  %v638_v5 = vadd.f32 %v595_v53, %v532_v60  ;;  %v1173_v46 = vld [vmem:[%s5631_s4 + $0x38] sm:$0xff]  ;;  %v1172_v24 = vld [vmem:[%s5631_s4 + $0x30] sm:$0xff]  ;;  %v1030_v59 = vld [vmem:[%s5629_s2 + $0x40] sm:$0xff] }
  0xb0   : > { %v5917_v53 = vld [vmem:[#allocation34_spill] sm:$0xff] }
  0xb1   : > { %1065 = vperm.xlu1 %3069, %v1027_v42   ;;  %1060 = vperm.xlu0 %3068, %v1026_v28   ;;  %v639_v11 = vadd.f32 %v616_v0, %v553_v33  ;;  %v640_v13 = vadd.f32 %v637_v7, %v574_v31  ;;  %v4000_v52 = vmul.f32 0.00390625, %v638_v5  ;;  %v5915_v33 = vld [vmem:[#allocation31_spill] sm:$0xff]  ;;  %v5919_v0 = vld [vmem:[#allocation38_spill] sm:$0xff]  ;;  %v5921_v31 = vld [vmem:[#allocation40_spill] sm:$0xff] }
  0xb3   : > { %v4002_v23 = vmul.f32 0.00390625, %v639_v11  ;;  %v4004_v14 = vmul.f32 0.00390625, %v640_v13  ;;  %v4014_v42 = vsub.f32 %v3515_v15, %v4000_v52  ;;  %v4022_v56 = vsub.f32 %v3524_v18, %v4000_v52  ;;  %v1175_v18 = vld [vmem:[%s5631_s4 + $0x48] sm:$0xff] }
  0xb4   : > { %v4026_v50 = vsub.f32 %v3533_v21, %v4000_v52  ;;  %v1174_v21 = vld [vmem:[%s5631_s4 + $0x40] sm:$0xff]  ;;  %v4200_v5 = vsub.f32 %v3828_v38, %v4000_v52  ;;  %v5926_v11 = vld [vmem:[#allocation48_spill] sm:$0xff] }
  0xb5   : > { %1209 = vperm.xlu1 %3069, %v1171_v43   ;;  %1204 = vperm.xlu0 %3068, %v1170_v29   ;;  %5878 = vst [vmem:[#allocation73_spill] sm:$0xff] %v4014_v42  ;;  %v4018_v28 = vsub.f32 %v3518_v16, %v4002_v23  ;;  %5880 = vst [vmem:[#allocation75_spill] sm:$0xff] %v4022_v56  ;;  %v4030_v45 = vsub.f32 %v3521_v17, %v4004_v14 }
  0xb6   : > { %5881 = vst [vmem:[#allocation76_spill] sm:$0xff] %v4026_v50  ;;  %v4034_v15 = vsub.f32 %v3527_v19, %v4002_v23  ;;  %v4038_v16 = vsub.f32 %v3530_v20, %v4004_v14  ;;  %v4048_v17 = vsub.f32 %v3536_v22, %v4002_v23  ;;  %v4052_v19 = vsub.f32 %v3543_v25, %v4004_v14 }
  0xb7   : > { %5879 = vst [vmem:[#allocation74_spill] sm:$0xff] %v4018_v28  ;;  %5882 = vst [vmem:[#allocation77_spill] sm:$0xff] %v4030_v45  ;;  %v4056_v20 = vsub.f32 %v3546_v26, %v4000_v52  ;;  %v4060_v4 = vsub.f32 %v3549_v27, %v4002_v23  ;;  %v4064_v43 = vsub.f32 %v3557_v30, %v4004_v14 }
  0xb8   : > { %5883 = vst [vmem:[#allocation78_spill] sm:$0xff] %v4034_v15  ;;  %5884 = vst [vmem:[#allocation79_spill] sm:$0xff] %v4038_v16  ;;  %v4068_v22 = vsub.f32 %v3565_v34, %v4000_v52  ;;  %v4072_v25 = vsub.f32 %v3568_v35, %v4002_v23  ;;  %v4076_v26 = vsub.f32 %v3572_v37, %v4004_v14 }
  0xb9   : > { %1075 = vperm.xlu1 %3069, %v1029_v39   ;;  %1070 = vperm.xlu0 %3068, %v1028_v61   ;;  %5885 = vst [vmem:[#allocation80_spill] sm:$0xff] %v4048_v17  ;;  %5886 = vst [vmem:[#allocation81_spill] sm:$0xff] %v4052_v19  ;;  %v4080_v27 = vsub.f32 %v3577_v40, %v4000_v52  ;;  %v4084_v30 = vsub.f32 %v3580_v41, %v4002_v23  ;;  %v5923_v39 = vld [vmem:[#allocation43_spill] sm:$0xff] }
  0xba   : > { %5887 = vst [vmem:[#allocation82_spill] sm:$0xff] %v4056_v20  ;;  %5888 = vst [vmem:[#allocation83_spill] sm:$0xff] %v4060_v4  ;;  %v4088_v34 = vsub.f32 %v3587_v44, %v4004_v14  ;;  %v4092_v35 = vsub.f32 %v3595_v48, %v4000_v52  ;;  %v4096_v37 = vsub.f32 %v3598_v49, %v4002_v23  ;;  %v1033_v44 = vld [vmem:[%s5629_s2 + $0x58] sm:$0xff]  ;;  %v1032_v48 = vld [vmem:[%s5629_s2 + $0x50] sm:$0xff] }
  0xbb   : > { %5889 = vst [vmem:[#allocation84_spill] sm:$0xff] %v4064_v43  ;;  %5890 = vst [vmem:[#allocation85_spill] sm:$0xff] %v4068_v22  ;;  %v4100_v40 = vsub.f32 %v3602_v51, %v4004_v14  ;;  %v4104_v41 = vsub.f32 %v3607_v54, %v4000_v52  ;;  %v4114_v49 = vsub.f32 %v3610_v55, %v4002_v23 }
  0xbc   : > { %5891 = vst [vmem:[#allocation86_spill] sm:$0xff] %v4072_v25  ;;  %5892 = vst [vmem:[#allocation87_spill] sm:$0xff] %v4076_v26  ;;  %v4118_v51 = vsub.f32 %v3617_v58, %v4004_v14  ;;  %v4122_v54 = vsub.f32 %v3625_v62, %v4000_v52  ;;  %v4126_v29 = vsub.f32 %v3628_v63, %v4002_v23 }
  0xbd   : > { %1219 = vperm.xlu1 %3069, %v1173_v46   ;;  %1214 = vperm.xlu0 %3068, %v1172_v24   ;;  %5893 = vst [vmem:[#allocation88_spill] sm:$0xff] %v4080_v27  ;;  %5894 = vst [vmem:[#allocation89_spill] sm:$0xff] %v4084_v30  ;;  %v4130_v60 = vsub.f32 %v3632_v1, %v4004_v14  ;;  %v4134_v55 = vsub.f32 %v3635_v2, %v4000_v52  ;;  %v5928_v46 = vld [vmem:[#allocation51_spill] sm:$0xff] }
  0xbe   : > { %5895 = vst [vmem:[#allocation90_spill] sm:$0xff] %v4088_v34  ;;  %5896 = vst [vmem:[#allocation91_spill] sm:$0xff] %v4092_v35  ;;  %v4138_v58 = vsub.f32 %v3638_v3, %v4002_v23  ;;  %v4142_v62 = vsub.f32 %v3649_v8, %v4004_v14  ;;  %v4146_v63 = vsub.f32 %v3652_v9, %v4000_v52 }
  0xbf   : > { %5897 = vst [vmem:[#allocation92_spill] sm:$0xff] %v4096_v37  ;;  %5898 = vst [vmem:[#allocation93_spill] sm:$0xff] %v4100_v40  ;;  %v4150_v1 = vsub.f32 %v3655_v10, %v4002_v23  ;;  %v4154_v2 = vsub.f32 %v3659_v12, %v4004_v14  ;;  %v4158_v3 = vsub.f32 %v3698_v47, %v4000_v52  ;;  %v1177_v12 = vld [vmem:[%s5631_s4 + $0x58] sm:$0xff]  ;;  %v1176_v47 = vld [vmem:[%s5631_s4 + $0x50] sm:$0xff] }
  0xc0   : > { %5899 = vst [vmem:[#allocation94_spill] sm:$0xff] %v4104_v41  ;;  %5900 = vst [vmem:[#allocation95_spill] sm:$0xff] %v4114_v49  ;;  %v4162_v8 = vsub.f32 %v3710_v57, %v4002_v23  ;;  %v4166_v9 = vsub.f32 %v3725_v6, %v4004_v14  ;;  %v4170_v10 = vsub.f32 %v3744_v36, %v4000_v52 }
  0xc1   : > { %1085 = vperm.xlu1 %3069, %v1031_v32   ;;  %1080 = vperm.xlu0 %3068, %v1030_v59   ;;  %5901 = vst [vmem:[#allocation96_spill] sm:$0xff] %v4118_v51  ;;  %5902 = vst [vmem:[#allocation97_spill] sm:$0xff] %v4122_v54  ;;  %v4180_v57 = vsub.f32 %v5915_v33, %v4002_v23  ;;  %v4184_v6 = vsub.f32 %v5917_v53, %v4004_v14  ;;  %v5930_v32 = vld [vmem:[#allocation55_spill] sm:$0xff]  ;;  %v5937_v53 = vld [vmem:[#allocation16_spill] sm:$0xff] }
  0xc2   : > { %5903 = vst [vmem:[#allocation98_spill] sm:$0xff] %v4126_v29  ;;  %5904 = vst [vmem:[#allocation99_spill] sm:$0xff] %v4130_v60  ;;  %v4188_v36 = vsub.f32 %v5919_v0, %v4000_v52  ;;  %v4192_v7 = vsub.f32 %v5921_v31, %v4002_v23  ;;  %v4196_v61 = vsub.f32 %v5923_v39, %v4004_v14  ;;  %v5938_v31 = vld [vmem:[#allocation17_spill] sm:$0xff] }
  0xc3   : > { %5905 = vst [vmem:[#allocation100_spill] sm:$0xff] %v4134_v55  ;;  %5906 = vst [vmem:[#allocation101_spill] sm:$0xff] %v4138_v58  ;;  %v4204_v13 = vsub.f32 %v5926_v11, %v4002_v23  ;;  %v4208_v24 = vsub.f32 %v5928_v46, %v4004_v14  ;;  %v4212_v59 = vsub.f32 %v5930_v32, %v4000_v52  ;;  %v5940_v11 = vld [vmem:[#allocation18_spill] sm:$0xff]  ;;  %v1035_v32 = vld [vmem:[%s5629_s2 + $0x68] sm:$0xff] }
  0xc4   : > { %5907 = vst [vmem:[#allocation102_spill] sm:$0xff] %v4142_v62  ;;  %5908 = vst [vmem:[#allocation103_spill] sm:$0xff] %v4146_v63  ;;  %v4228_v0 = vsub.f32 %v5937_v53, %v4002_v23  ;;  %v4232_v39 = vsub.f32 %v5938_v31, %v4004_v14  ;;  %v4236_v46 = vsub.f32 %v5940_v11, %v4000_v52  ;;  %v5946_v53 = vld [vmem:[#allocation21_spill] sm:$0xff]  ;;  %v5948_v11 = vld [vmem:[#allocation22_spill] sm:$0xff] }
  0xc5   : > { %1229 = vperm.xlu1 %3069, %v1175_v18   ;;  %1224 = vperm.xlu0 %3068, %v1174_v21   ;;  %5909 = vst [vmem:[#allocation104_spill] sm:$0xff] %v4150_v1  ;;  %5910 = vst [vmem:[#allocation105_spill] sm:$0xff] %v4154_v2  ;;  %v5932_v18 = vld [vmem:[#allocation57_spill] sm:$0xff]  ;;  %v4254_v31 = vsub.f32 %v5946_v53, %v4000_v52 }
  0xc6   : > { %5911 = vst [vmem:[#allocation106_spill] sm:$0xff] %v4158_v3  ;;  %5912 = vst [vmem:[#allocation107_spill] sm:$0xff] %v4162_v8  ;;  %v4216_v21 = vsub.f32 %v5932_v18, %v4002_v23 }
  0xc7   : > { %5913 = vst [vmem:[#allocation108_spill] sm:$0xff] %v4166_v9  ;;  %5914 = vst [vmem:[#allocation109_spill] sm:$0xff] %v4170_v10 }
  0xc8   : > { %5916 = vst [vmem:[#allocation31_spill] sm:$0xff] %v4180_v57  ;;  %5918 = vst [vmem:[#allocation34_spill] sm:$0xff] %v4184_v6 }
  0xc9   : > { %1095 = vperm.xlu1 %3069, %v1033_v44   ;;  %1090 = vperm.xlu0 %3068, %v1032_v48   ;;  %5920 = vst [vmem:[#allocation38_spill] sm:$0xff] %v4188_v36  ;;  %5922 = vst [vmem:[#allocation40_spill] sm:$0xff] %v4192_v7  ;;  %v5934_v44 = vld [vmem:[#allocation60_spill] sm:$0xff]  ;;  %v5936_v48 = vld [vmem:[#allocation15_spill] sm:$0xff] }
  0xca   : > { %5924 = vst [vmem:[#allocation43_spill] sm:$0xff] %v4196_v61  ;;  %5925 = vst [vmem:[#allocation110_spill] sm:$0xff] %v4200_v5  ;;  %v4220_v38 = vsub.f32 %v5934_v44, %v4004_v14  ;;  %v4224_v33 = vsub.f32 %v5936_v48, %v4000_v52  ;;  %v5944_v44 = vld [vmem:[#allocation20_spill] sm:$0xff] }
  0xcb   : > { %5927 = vst [vmem:[#allocation48_spill] sm:$0xff] %v4204_v13  ;;  %5929 = vst [vmem:[#allocation51_spill] sm:$0xff] %v4208_v24  ;;  %v4250_v48 = vsub.f32 %v5944_v44, %v4004_v14 }
  0xcc   : > { %5931 = vst [vmem:[#allocation55_spill] sm:$0xff] %v4212_v59  ;;  %5933 = vst [vmem:[#allocation57_spill] sm:$0xff] %v4216_v21  ;;  %v5950_v21 = vld [vmem:[#allocation23_spill] sm:$0xff] }
  0xcd   : > { %5935 = vst [vmem:[#allocation60_spill] sm:$0xff] %v4220_v38  ;;  %1239 = vperm.xlu1 %3069, %v1177_v12   ;;  %1234 = vperm.xlu0 %3068, %v1176_v47   ;;  %5939 = vst [vmem:[#allocation15_spill] sm:$0xff] %v4232_v39  ;;  %v1034_v12 = vld [vmem:[%s5629_s2 + $0x60] sm:$0xff]  ;;  %v4258_v38 = vsub.f32 %v5948_v11, %v4002_v23  ;;  %v4262_v39 = vsub.f32 %v5950_v21, %v4004_v14 }
  0xce   : > { %5941 = vst [vmem:[#allocation16_spill] sm:$0xff] %v4236_v46  ;;  %v5942_v47 = vld [vmem:[#allocation19_spill] sm:$0xff]  ;;  %5945 = vst [vmem:[#allocation18_spill] sm:$0xff] %v4250_v48  ;;  %v5952_v46 = vld [vmem:[#allocation24_spill] sm:$0xff] }
  0xcf   : > { %v4246_v18 = vsub.f32 %v5942_v47, %v4002_v23  ;;  %5947 = vst [vmem:[#allocation19_spill] sm:$0xff] %v4254_v31  ;;  %5949 = vst [vmem:[#allocation20_spill] sm:$0xff] %v4258_v38  ;;  %v4266_v47 = vsub.f32 %v5952_v46, %v4000_v52  ;;  %v5956_v48 = vld [vmem:[#allocation26_spill] sm:$0xff]  ;;  %v5958_v31 = vld [vmem:[#allocation27_spill] sm:$0xff] }
  0xd0   : > { %5951 = vst [vmem:[#allocation21_spill] sm:$0xff] %v4262_v39  ;;  %v4274_v53 = vsub.f32 %v5956_v48, %v4004_v14  ;;  %v4278_v11 = vsub.f32 %v5958_v31, %v4000_v52  ;;  %v5960_v38 = vld [vmem:[#allocation28_spill] sm:$0xff]  ;;  %v5962_v39 = vld [vmem:[#allocation29_spill] sm:$0xff] }
  0xd1   : > { %5943 = vst [vmem:[#allocation17_spill] sm:$0xff] %v4246_v18  ;;  %5953 = vst [vmem:[#allocation22_spill] sm:$0xff] %v4266_v47  ;;  %v5954_v18 = vld [vmem:[#allocation25_spill] sm:$0xff]  ;;  %v4282_v21 = vsub.f32 %v5960_v38, %v4002_v23  ;;  %v4286_v46 = vsub.f32 %v5962_v39, %v4004_v14  ;;  %v5964_v47 = vld [vmem:[#allocation30_spill] sm:$0xff]  ;;  %1105 = vperm.xlu1 %3069, %v1035_v32   ;;  %1100 = vperm.xlu0 %3068, %v1034_v12  }
  0xd2   : > { %v4270_v44 = vsub.f32 %v5954_v18, %v4002_v23  ;;  %5957 = vst [vmem:[#allocation24_spill] sm:$0xff] %v4274_v53  ;;  %5959 = vst [vmem:[#allocation25_spill] sm:$0xff] %v4278_v11  ;;  %v4290_v18 = vsub.f32 %v5964_v47, %v4000_v52  ;;  %v5966_v48 = vld [vmem:[#allocation32_spill] sm:$0xff]  ;;  %v5968_v31 = vld [vmem:[#allocation33_spill] sm:$0xff] }
  0xd3   : > { %5961 = vst [vmem:[#allocation26_spill] sm:$0xff] %v4282_v21  ;;  %5963 = vst [vmem:[#allocation27_spill] sm:$0xff] %v4286_v46  ;;  %v4294_v53 = vsub.f32 %v5966_v48, %v4002_v23  ;;  %v4298_v11 = vsub.f32 %v5968_v31, %v4004_v14  ;;  %v5970_v38 = vld [vmem:[#allocation35_spill] sm:$0xff]  ;;  %v1179_v39 = vld [vmem:[%s5631_s4 + $0x68] sm:$0xff] }
  0xd4   : > { %5955 = vst [vmem:[#allocation23_spill] sm:$0xff] %v4270_v44  ;;  %5965 = vst [vmem:[#allocation28_spill] sm:$0xff] %v4290_v18  ;;  %v4302_v21 = vsub.f32 %v5970_v38, %v4000_v52  ;;  %v1178_v32 = vld [vmem:[%s5631_s4 + $0x60] sm:$0xff]  ;;  %v5972_v12 = vld [vmem:[#allocation36_spill] sm:$0xff] }
  0xd5   : > { %5967 = vst [vmem:[#allocation29_spill] sm:$0xff] %v4294_v53  ;;  %5969 = vst [vmem:[#allocation30_spill] sm:$0xff] %v4298_v11  ;;  %v4312_v47 = vsub.f32 %v5972_v12, %v4002_v23  ;;  %v5974_v48 = vld [vmem:[#allocation37_spill] sm:$0xff]  ;;  %v5976_v11 = vld [vmem:[#allocation39_spill] sm:$0xff]  ;;  %1249 = vperm.xlu1 %3069, %v1179_v39   ;;  %1244 = vperm.xlu0 %3068, %v1178_v32  }
  0xd6   : > { %5971 = vst [vmem:[#allocation32_spill] sm:$0xff] %v4302_v21  ;;  %v4316_v31 = vsub.f32 %v5974_v48, %v4004_v14  ;;  %v4320_v38 = vsub.f32 %v5976_v11, %v4000_v52  ;;  %v5978_v21 = vld [vmem:[#allocation41_spill] sm:$0xff]  ;;  %v5980_v18 = vld [vmem:[#allocation42_spill] sm:$0xff]  ;;  %v5982_v44 = vld [vmem:[#allocation44_spill] sm:$0xff] }
  0xd7   : > { %5973 = vst [vmem:[#allocation33_spill] sm:$0xff] %v4312_v47  ;;  %v4324_v53 = vsub.f32 %v5978_v21, %v4002_v23  ;;  %v4328_v46 = vsub.f32 %v5980_v18, %v4004_v14  ;;  %v4332_v12 = vsub.f32 %v5982_v44, %v4000_v52  ;;  %v5984_v47 = vld [vmem:[#allocation45_spill] sm:$0xff]  ;;  %v6002_v32 = vld [vmem:[#allocation58_spill] sm:$0xff] }
  0xd8   : > { %5975 = vst [vmem:[#allocation35_spill] sm:$0xff] %v4316_v31  ;;  %5977 = vst [vmem:[#allocation36_spill] sm:$0xff] %v4320_v38  ;;  %v4336_v48 = vsub.f32 %v5984_v47, %v4002_v23  ;;  %v5986_v31 = vld [vmem:[#allocation46_spill] sm:$0xff]  ;;  %v5988_v38 = vld [vmem:[#allocation47_spill] sm:$0xff] }
  0xd9   : > { %5979 = vst [vmem:[#allocation37_spill] sm:$0xff] %v4324_v53  ;;  %5981 = vst [vmem:[#allocation39_spill] sm:$0xff] %v4328_v46  ;;  %v4340_v11 = vsub.f32 %v5986_v31, %v4004_v14  ;;  %v4344_v21 = vsub.f32 %v5988_v38, %v4000_v52  ;;  %v5990_v53 = vld [vmem:[#allocation49_spill] sm:$0xff]  ;;  %v5992_v46 = vld [vmem:[#allocation50_spill] sm:$0xff] }
  0xda   : > { %5983 = vst [vmem:[#allocation41_spill] sm:$0xff] %v4332_v12  ;;  %5985 = vst [vmem:[#allocation42_spill] sm:$0xff] %v4336_v48  ;;  %v4348_v18 = vsub.f32 %v5990_v53, %v4002_v23  ;;  %v4352_v44 = vsub.f32 %v5992_v46, %v4004_v14  ;;  %v5994_v12 = vld [vmem:[#allocation52_spill] sm:$0xff]  ;;  %v5996_v31 = vld [vmem:[#allocation53_spill] sm:$0xff] }
  0xdb   : > { %5987 = vst [vmem:[#allocation44_spill] sm:$0xff] %v4340_v11  ;;  %5989 = vst [vmem:[#allocation45_spill] sm:$0xff] %v4344_v21  ;;  %v4356_v47 = vsub.f32 %v5994_v12, %v4000_v52  ;;  %v4360_v11 = vsub.f32 %v5996_v31, %v4002_v23  ;;  %v5998_v38 = vld [vmem:[#allocation54_spill] sm:$0xff]  ;;  %v6000_v53 = vld [vmem:[#allocation56_spill] sm:$0xff]  ;;  %v4378_v12 = vsub.f32 %v6002_v32, %v4002_v23 }
  0xdc   : > { %5991 = vst [vmem:[#allocation46_spill] sm:$0xff] %v4348_v18  ;;  %5993 = vst [vmem:[#allocation47_spill] sm:$0xff] %v4352_v44  ;;  %v4364_v21 = vsub.f32 %v5998_v38, %v4004_v14  ;;  %v4368_v18 = vsub.f32 %v6000_v53, %v4000_v52  ;;  %v1037_v46 = vld [vmem:[%s5629_s2 + $0x78] sm:$0xff]  ;;  %v1036_v39 = vld [vmem:[%s5629_s2 + $0x70] sm:$0xff]  ;;  %v741_v44 = vmul.f32 %v4018_v28, %v4018_v28 }
  0xdd   : > { %5995 = vst [vmem:[#allocation49_spill] sm:$0xff] %v4356_v47  ;;  %5997 = vst [vmem:[#allocation50_spill] sm:$0xff] %v4360_v11  ;;  %v6004_v31 = vld [vmem:[#allocation59_spill] sm:$0xff]  ;;  %v740_v47 = vmul.f32 %v4014_v42, %v4014_v42  ;;  %v743_v32 = vmul.f32 %v4022_v56, %v4022_v56  ;;  %v742_v42 = vmul.f32 %v4030_v45, %v4030_v45  ;;  %1115 = vperm.xlu1 %3069, %v1037_v46   ;;  %v6014_v56 = vld [vmem:[#allocation65_spill] sm:$0xff] }
  0xde   : > { %5999 = vst [vmem:[#allocation52_spill] sm:$0xff] %v4364_v21  ;;  %6001 = vst [vmem:[#allocation53_spill] sm:$0xff] %v4368_v18  ;;  %v4382_v38 = vsub.f32 %v6004_v31, %v4004_v14  ;;  %v6006_v21 = vld [vmem:[#allocation61_spill] sm:$0xff]  ;;  %v6008_v18 = vld [vmem:[#allocation62_spill] sm:$0xff]  ;;  %v744_v31 = vmul.f32 %v4034_v15, %v4034_v15  ;;  %v745_v28 = vmul.f32 %v4038_v16, %v4038_v16  ;;  %1110 = vperm.xlu0 %3068, %v1036_v39  }
  0xdf   : > { %6003 = vst [vmem:[#allocation54_spill] sm:$0xff] %v4378_v12  ;;  %v4386_v53 = vsub.f32 %v6006_v21, %v4000_v52  ;;  %v4390_v11 = vsub.f32 %v6008_v18, %v4002_v23  ;;  %v747_v15 = vmul.f32 %v4048_v17, %v4048_v17  ;;  %v1180_v45 = vld [vmem:[%s5631_s4 + $0x70] sm:$0xff]  ;;  %v6016_v46 = vld [vmem:[#allocation66_spill] sm:$0xff]  ;;  %v748_v17 = vmul.f32 %v4052_v19, %v4052_v19 }
  0xe0   : > { %6005 = vst [vmem:[#allocation56_spill] sm:$0xff] %v4382_v38  ;;  %v6010_v38 = vld [vmem:[#allocation63_spill] sm:$0xff]  ;;  %v4428_v39 = vsub.f32 %v6016_v46, %v4004_v14  ;;  %v788_v12 = vadd.f32 %v743_v32, %v740_v47  ;;  %v809_v46 = vadd.f32 %v744_v31, %v741_v44  ;;  %v753_v19 = vmul.f32 %v4072_v25, %v4072_v25  ;;  %v6034_v25 = vld [vmem:[#allocation25_spill] sm:$0xff] }
  0xe1   : > { %6007 = vst [vmem:[#allocation58_spill] sm:$0xff] %v4386_v53  ;;  %6009 = vst [vmem:[#allocation59_spill] sm:$0xff] %v4390_v11  ;;  %v4402_v21 = vsub.f32 %v6010_v38, %v4004_v14  ;;  %v6012_v53 = vld [vmem:[#allocation64_spill] sm:$0xff]  ;;  %v4414_v11 = vsub.f32 %v6014_v56, %v4002_v23  ;;  %v746_v38 = vmul.f32 %v4026_v50, %v4026_v50  ;;  %v6018_v56 = vld [vmem:[#allocation67_spill] sm:$0xff] }
  0xe2   : > { %v4406_v18 = vsub.f32 %v6012_v53, %v4000_v52  ;;  %v1181_v53 = vld [vmem:[%s5631_s4 + $0x78] sm:$0xff]  ;;  %6017 = vst [vmem:[#allocation64_spill] sm:$0xff] %v4428_v39  ;;  %v4432_v16 = vsub.f32 %v6018_v56, %v4000_v52  ;;  %v6020_v50 = vld [vmem:[#allocation68_spill] sm:$0xff]  ;;  %v6022_v39 = vld [vmem:[#allocation69_spill] sm:$0xff]  ;;  %v751_v56 = vmul.f32 %v4064_v43, %v4064_v43  ;;  %1254 = vperm.xlu0 %3068, %v1180_v45  }
  0xe3   : > { %6011 = vst [vmem:[#allocation61_spill] sm:$0xff] %v4402_v21  ;;  %6015 = vst [vmem:[#allocation63_spill] sm:$0xff] %v4414_v11  ;;  %v4436_v11 = vsub.f32 %v6020_v50, %v4002_v23  ;;  %v750_v21 = vmul.f32 %v4060_v4, %v4060_v4  ;;  %v4446_v48 = vsub.f32 %v6022_v39, %v4004_v14  ;;  %1259 = vperm.xlu1 %3069, %v1181_v53   ;;  %v2290_v53 = vld [vmem:[%s5635_s8] sm:$0xff] }
  0xe4   : > { %6013 = vst [vmem:[#allocation62_spill] sm:$0xff] %v4406_v18  ;;  %6019 = vst [vmem:[#allocation65_spill] sm:$0xff] %v4432_v16  ;;  %v749_v18 = vmul.f32 %v4056_v20, %v4056_v20  ;;  %v752_v50 = vmul.f32 %v4068_v22, %v4068_v22  ;;  %v789_v20 = vadd.f32 %v788_v12, %v746_v38 }
  0xe5   : > { %6021 = vst [vmem:[#allocation66_spill] sm:$0xff] %v4436_v11  ;;  %6023 = vst [vmem:[#allocation67_spill] sm:$0xff] %v4446_v48  ;;  %v830_v11 = vadd.f32 %v745_v28, %v742_v42  ;;  %v810_v4 = vadd.f32 %v809_v46, %v747_v15  ;;  %v754_v44 = vmul.f32 %v4076_v26, %v4076_v26  ;;  %v2291_v42 = vld [vmem:[%s5635_s8 + $0x8] sm:$0xff]  ;;  %v5756_v28 = vmov 0.0  }
  0xe6   : > { %v755_v47 = vmul.f32 %v4080_v27, %v4080_v27  ;;  %v756_v32 = vmul.f32 %v4084_v30, %v4084_v30  ;;  %1790 = vmatprep.mubr.f32.mxu1 %v5756_v28  ;;  %v757_v45 = vmul.f32 %v4088_v34, %v4088_v34  ;;  %v758_v15 = vmul.f32 %v4092_v35, %v4092_v35 }
  0xe7   : > { %v831_v31 = vadd.f32 %v830_v11, %v748_v17  ;;  %v790_v12 = vadd.f32 %v789_v20, %v749_v18  ;;  %v811_v38 = vadd.f32 %v810_v4, %v750_v21  ;;  %1742 = vmatprep.mubr.f32.mxu0 %v5756_v28  ;;  %v4472_v17 = vpop.permute.xlu1 %1520  ;;  %v4474_v11 = vpop.permute.xlu0 %1376  ;;  %v759_v39 = vmul.f32 %v4096_v37, %v4096_v37 }
  0xe8   : > { %v760_v46 = vmul.f32 %v4100_v40, %v4100_v40  ;;  %v761_v20 = vmul.f32 %v4104_v41, %v4104_v41  ;;  %v762_v21 = vmul.f32 %v4114_v49, %v4114_v49  ;;  %v763_v18 = vmul.f32 %v4118_v51, %v4118_v51  ;;  %2313 = vperm.xlu1 %3069, %v2291_v42   ;;  %v6032_v49 = vld [vmem:[#allocation23_spill] sm:$0xff] }
  0xe9   : > { %v832_v4 = vadd.f32 %v831_v31, %v751_v56  ;;  %v791_v28 = vadd.f32 %v790_v12, %v752_v50  ;;  %v812_v26 = vadd.f32 %v811_v38, %v753_v19  ;;  %v764_v34 = vmul.f32 %v4122_v54, %v4122_v54  ;;  %2308 = vperm.xlu0 %3068, %v2290_v53   ;;  %v2293_v56 = vld [vmem:[%s5635_s8 + $0x18] sm:$0xff]  ;;  %v2292_v12 = vld [vmem:[%s5635_s8 + $0x10] sm:$0xff] }
  0xea   : > { %v765_v37 = vmul.f32 %v4126_v29, %v4126_v29  ;;  %v766_v40 = vmul.f32 %v4130_v60, %v4130_v60  ;;  %v767_v50 = vmul.f32 %v4134_v55, %v4134_v55  ;;  %v768_v19 = vmul.f32 %v4138_v58, %v4138_v58  ;;  %v6030_v29 = vld [vmem:[#allocation21_spill] sm:$0xff]  ;;  %v6031_v58 = vld [vmem:[#allocation22_spill] sm:$0xff] }
  0xeb   : > { %v833_v35 = vadd.f32 %v832_v4, %v754_v44  ;;  %v792_v31 = vadd.f32 %v791_v28, %v755_v47  ;;  %v813_v42 = vadd.f32 %v812_v26, %v756_v32  ;;  %v769_v44 = vmul.f32 %v4142_v62, %v4142_v62  ;;  %v4508_v60 = vpop.permute.xlu1 %1525  ;;  %v4510_v51 = vpop.permute.xlu0 %1381 }
  0xec   : > { %v770_v38 = vmul.f32 %v4146_v63, %v4146_v63  ;;  %v771_v53 = vmul.f32 %v4150_v1, %v4150_v1  ;;  %v772_v26 = vmul.f32 %v4154_v2, %v4154_v2  ;;  %v773_v47 = vmul.f32 %v4158_v3, %v4158_v3  ;;  %2323 = vperm.xlu1 %3069, %v2293_v56   ;;  %v2295_v2 = vld [vmem:[%s5635_s8 + $0x28] sm:$0xff]  ;;  %v6028_v63 = vld [vmem:[#allocation19_spill] sm:$0xff] }
  0xed   : > { %v834_v4 = vadd.f32 %v833_v35, %v757_v45  ;;  %v793_v32 = vadd.f32 %v792_v31, %v758_v15  ;;  %v814_v28 = vadd.f32 %v813_v42, %v759_v39  ;;  %v774_v62 = vmul.f32 %v4162_v8, %v4162_v8  ;;  %2318 = vperm.xlu0 %3068, %v2292_v12   ;;  %v2294_v42 = vld [vmem:[%s5635_s8 + $0x20] sm:$0xff]  ;;  %v6029_v3 = vld [vmem:[#allocation20_spill] sm:$0xff] }
  0xee   : > { %v775_v1 = vmul.f32 %v4166_v9, %v4166_v9  ;;  %v776_v35 = vmul.f32 %v4170_v10, %v4170_v10  ;;  %v777_v15 = vmul.f32 %v4180_v57, %v4180_v57  ;;  %v778_v39 = vmul.f32 %v4184_v6, %v4184_v6 }
  0xef   : > { %v835_v45 = vadd.f32 %v834_v4, %v760_v46  ;;  %v794_v56 = vadd.f32 %v793_v32, %v761_v20  ;;  %v815_v31 = vadd.f32 %v814_v28, %v762_v21  ;;  %v4534_v46 = vmul.f32 %v4188_v36, %v4188_v36  ;;  %v4544_v6 = vpop.permute.xlu1 %1391  ;;  %v4546_v20 = vpop.permute.xlu0 %1386 }
  0xf0   : > { %v4538_v12 = vmul.f32 %v4192_v7, %v4192_v7  ;;  %v4542_v4 = vmul.f32 %v4196_v61, %v4196_v61  ;;  %v4550_v21 = vmul.f32 %v4200_v5, %v4200_v5  ;;  %v4554_v32 = vmul.f32 %v4204_v13, %v4204_v13  ;;  %2333 = vperm.xlu1 %3069, %v2295_v2   ;;  %v2297_v13 = vld [vmem:[%s5635_s8 + $0x38] sm:$0xff] }
  0xf1   : > { %v836_v57 = vadd.f32 %v835_v45, %v763_v18  ;;  %v795_v28 = vadd.f32 %v794_v56, %v764_v34  ;;  %v816_v10 = vadd.f32 %v815_v31, %v765_v37  ;;  %v4558_v61 = vmul.f32 %v4208_v24, %v4208_v24  ;;  %2328 = vperm.xlu0 %3068, %v2294_v42   ;;  %v6024_v56 = vld [vmem:[#allocation16_spill] sm:$0xff]  ;;  %v6025_v24 = vld [vmem:[#allocation15_spill] sm:$0xff]  ;;  %v6027_v7 = vld [vmem:[#allocation18_spill] sm:$0xff] }
  0xf2   : > { %v4562_v18 = vmul.f32 %v4212_v59, %v4212_v59  ;;  %v851_v5 = vmul.f32 %v4224_v33, %v4224_v33  ;;  %v852_v2 = vmul.f32 %v4228_v0, %v4228_v0  ;;  %v854_v31 = vmul.f32 %v6024_v56, %v6024_v56  ;;  %v6026_v59 = vld [vmem:[#allocation17_spill] sm:$0xff] }
  0xf3   : > { %v837_v45 = vadd.f32 %v836_v57, %v766_v40  ;;  %v796_v34 = vadd.f32 %v795_v28, %v767_v50  ;;  %v817_v37 = vadd.f32 %v816_v10, %v768_v19  ;;  %v2296_v40 = vld [vmem:[%s5635_s8 + $0x30] sm:$0xff]  ;;  %v853_v42 = vmul.f32 %v6025_v24, %v6025_v24  ;;  %v4582_v50 = vpop.permute.xlu1 %1535  ;;  %v4584_v19 = vpop.permute.xlu0 %1530 }
  0xf4   : > { %v855_v9 = vmul.f32 %v6026_v59, %v6026_v59  ;;  %v856_v10 = vmul.f32 %v6027_v7, %v6027_v7  ;;  %v857_v8 = vmul.f32 %v6028_v63, %v6028_v63  ;;  %2343 = vperm.xlu1 %3069, %v2297_v13   ;;  %v859_v54 = vmul.f32 %v6030_v29, %v6030_v29 }
  0xf5   : > { %v838_v57 = vadd.f32 %v837_v45, %v769_v44  ;;  %v797_v28 = vadd.f32 %v796_v34, %v770_v38  ;;  %v818_v36 = vadd.f32 %v817_v37, %v771_v53  ;;  %v858_v44 = vmul.f32 %v6029_v3, %v6029_v3  ;;  %2338 = vperm.xlu0 %3068, %v2296_v40   ;;  %v2299_v38 = vld [vmem:[%s5635_s8 + $0x48] sm:$0xff] }
  0xf6   : > { %v860_v55 = vmul.f32 %v6031_v58, %v6031_v58  ;;  %v861_v41 = vmul.f32 %v6032_v49, %v6032_v49  ;;  %v6033_v37 = vld [vmem:[#allocation24_spill] sm:$0xff]  ;;  %v863_v22 = vmul.f32 %v6034_v25, %v6034_v25  ;;  %v920_v30 = vadd.f32 %v855_v9, %v852_v2  ;;  %v2301_v9 = vld [vmem:[%s5635_s8 + $0x58] sm:$0xff]  ;;  %v6039_v2 = vld [vmem:[#allocation57_spill] sm:$0xff] }
  0xf7   : > { %v839_v45 = vadd.f32 %v838_v57, %v772_v26  ;;  %v798_v53 = vadd.f32 %v797_v28, %v773_v47  ;;  %v819_v34 = vadd.f32 %v818_v36, %v774_v62  ;;  %v862_v13 = vmul.f32 %v6033_v37, %v6033_v37  ;;  %v2298_v57 = vld [vmem:[%s5635_s8 + $0x40] sm:$0xff]  ;;  %v4606_v27 = vpop.permute.xlu1 %1401  ;;  %v4608_v7 = vpop.permute.xlu0 %1396  ;;  %v6037_v62 = vld [vmem:[#allocation26_spill] sm:$0xff] }
  0xf8   : > { %v899_v26 = vadd.f32 %v854_v31, %v851_v5  ;;  %v941_v40 = vadd.f32 %v856_v10, %v853_v42  ;;  %6035 = vst [vmem:[#allocation68_spill] sm:$0xff] %v4606_v27  ;;  %6036 = vst [vmem:[#allocation69_spill] sm:$0xff] %v4608_v7  ;;  %v864_v36 = vmul.f32 %v6037_v62, %v6037_v62  ;;  %v6038_v28 = vld [vmem:[#allocation27_spill] sm:$0xff]  ;;  %2353 = vperm.xlu1 %3069, %v2299_v38   ;;  %v6040_v42 = vld [vmem:[#allocation28_spill] sm:$0xff] }
  0xf9   : > { %v840_v43 = vadd.f32 %v839_v45, %v775_v1  ;;  %v799_v47 = vadd.f32 %v798_v53, %v776_v35  ;;  %v865_v5 = vmul.f32 %v6038_v28, %v6038_v28  ;;  %v820_v37 = vadd.f32 %v819_v34, %v777_v15  ;;  %2348 = vperm.xlu0 %3068, %v2298_v57   ;;  %v6041_v53 = vld [vmem:[#allocation29_spill] sm:$0xff]  ;;  %v6043_v15 = vld [vmem:[#allocation32_spill] sm:$0xff] }
  0xfa   : > { %v900_v31 = vadd.f32 %v899_v26, %v857_v8  ;;  %v921_v45 = vadd.f32 %v920_v30, %v858_v44  ;;  %v942_v24 = vadd.f32 %v941_v40, %v859_v54  ;;  %v786_v35 = vmul.f32 %v6039_v2, %v6039_v2  ;;  %v6042_v30 = vld [vmem:[#allocation30_spill] sm:$0xff]  ;;  %v6044_v40 = vld [vmem:[#allocation33_spill] sm:$0xff] }
  0xfb   : > { %v841_v1 = vadd.f32 %v840_v43, %v778_v39  ;;  %v866_v10 = vmul.f32 %v6040_v42, %v6040_v42  ;;  %v867_v7 = vmul.f32 %v6041_v53, %v6041_v53  ;;  %v2300_v43 = vld [vmem:[%s5635_s8 + $0x50] sm:$0xff]  ;;  %v868_v54 = vmul.f32 %v6042_v30, %v6042_v30  ;;  %v4630_v34 = vpop.permute.xlu1 %1545  ;;  %v4632_v26 = vpop.permute.xlu0 %1540 }
  0xfc   : > { %v901_v8 = vadd.f32 %v900_v31, %v860_v55  ;;  %v869_v39 = vmul.f32 %v6043_v15, %v6043_v15  ;;  %v922_v44 = vadd.f32 %v921_v45, %v861_v41  ;;  %v943_v38 = vadd.f32 %v942_v24, %v862_v13  ;;  %v6045_v31 = vld [vmem:[#allocation35_spill] sm:$0xff]  ;;  %2363 = vperm.xlu1 %3069, %v2301_v9   ;;  %v2303_v13 = vld [vmem:[%s5635_s8 + $0x68] sm:$0xff] }
  0xfd   : > { %v800_v57 = vadd.f32 %v799_v47, %v4534_v46  ;;  %v870_v55 = vmul.f32 %v6044_v40, %v6044_v40  ;;  %v871_v2 = vmul.f32 %v6045_v31, %v6045_v31  ;;  %v821_v30 = vadd.f32 %v820_v37, %v4538_v12  ;;  %2358 = vperm.xlu0 %3068, %v2300_v43   ;;  %v6046_v46 = vld [vmem:[#allocation60_spill] sm:$0xff]  ;;  %v6048_v31 = vld [vmem:[#allocation37_spill] sm:$0xff]  ;;  %v2302_v12 = vld [vmem:[%s5635_s8 + $0x60] sm:$0xff] }
  0xfe   : > { %v902_v27 = vadd.f32 %v901_v8, %v863_v22  ;;  %v842_v15 = vadd.f32 %v841_v1, %v4542_v4  ;;  %v923_v41 = vadd.f32 %v922_v44, %v864_v36  ;;  %v944_v24 = vadd.f32 %v943_v38, %v865_v5  ;;  %v6047_v45 = vld [vmem:[#allocation36_spill] sm:$0xff]  ;;  %v6049_v4 = vld [vmem:[#allocation39_spill] sm:$0xff]  ;;  %v6050_v36 = vld [vmem:[#allocation41_spill] sm:$0xff] }
  0xff   : > { %v787_v47 = vmul.f32 %v6046_v46, %v6046_v46  ;;  %v872_v40 = vmul.f32 %v6047_v45, %v6047_v45  ;;  %v873_v22 = vmul.f32 %v6048_v31, %v6048_v31  ;;  %v874_v37 = vmul.f32 %v6049_v4, %v6049_v4  ;;  %v4657_v43 = vpop.permute.xlu1 %1411  ;;  %v4659_v44 = vpop.permute.xlu0 %1406  ;;  %v6052_v46 = vld [vmem:[#allocation42_spill] sm:$0xff] }
 0x100   : > { %v903_v9 = vadd.f32 %v902_v27, %v866_v10  ;;  %v875_v5 = vmul.f32 %v6050_v36, %v6050_v36  ;;  %v924_v1 = vadd.f32 %v923_v41, %v867_v7  ;;  %v945_v8 = vadd.f32 %v944_v24, %v868_v54  ;;  %6051 = vst [vmem:[#allocation16_spill] sm:$0xff] %v4659_v44  ;;  %v6053_v10 = vld [vmem:[#allocation44_spill] sm:$0xff]  ;;  %v2305_v41 = vld [vmem:[%s5635_s8 + $0x78] sm:$0xff]  ;;  %v6056_v24 = vld [vmem:[#allocation45_spill] sm:$0xff] }
 0x101   : > { %v801_v38 = vadd.f32 %v800_v57, %v4550_v21  ;;  %v876_v27 = vmul.f32 %v6052_v46, %v6052_v46  ;;  %v877_v31 = vmul.f32 %v6053_v10, %v6053_v10  ;;  %2373 = vperm.xlu1 %3069, %v2303_v13   ;;  %v822_v4 = vadd.f32 %v821_v30, %v4554_v32  ;;  %v6054_v21 = vld [vmem:[#allocation70_spill] sm:$0xff] }
 0x102   : > { %v904_v45 = vadd.f32 %v903_v9, %v869_v39  ;;  %v843_v36 = vadd.f32 %v842_v15, %v4558_v61  ;;  %v925_v7 = vadd.f32 %v924_v1, %v870_v55  ;;  %v946_v54 = vadd.f32 %v945_v8, %v871_v2  ;;  %2368 = vperm.xlu0 %3068, %v2302_v12   ;;  %v6057_v39 = vld [vmem:[#allocation46_spill] sm:$0xff]  ;;  %v2304_v61 = vld [vmem:[%s5635_s8 + $0x70] sm:$0xff]  ;;  %v6058_v2 = vld [vmem:[#allocation47_spill] sm:$0xff] }
 0x103   : > { %v4673_v57 = vsub.f32 %v6054_v21, %v4000_v52  ;;  %v878_v10 = vmul.f32 %v6056_v24, %v6056_v24  ;;  %v879_v13 = vmul.f32 %v6057_v39, %v6057_v39  ;;  %v880_v30 = vmul.f32 %v6058_v2, %v6058_v2  ;;  %v6059_v15 = vld [vmem:[#allocation49_spill] sm:$0xff]  ;;  %v4686_v12 = vpop.permute.xlu1 %1555  ;;  %v4688_v1 = vpop.permute.xlu0 %1550  ;;  %v6061_v21 = vld [vmem:[#allocation50_spill] sm:$0xff] }
 0x104   : > { %v905_v32 = vadd.f32 %v904_v45, %v872_v40  ;;  %v881_v55 = vmul.f32 %v6059_v15, %v6059_v15  ;;  %v926_v9 = vadd.f32 %v925_v7, %v873_v22  ;;  %v947_v52 = vadd.f32 %v946_v54, %v874_v37  ;;  %6060 = vst [vmem:[#allocation19_spill] sm:$0xff] %v4688_v1  ;;  %v6062_v45 = vld [vmem:[#allocation52_spill] sm:$0xff]  ;;  %v6063_v22 = vld [vmem:[#allocation71_spill] sm:$0xff]  ;;  %v6065_v7 = vld [vmem:[#allocation53_spill] sm:$0xff] }
 0x105   : > { %6055 = vst [vmem:[#allocation17_spill] sm:$0xff] %v4673_v57  ;;  %v802_v8 = vadd.f32 %v801_v38, %v4562_v18  ;;  %v882_v40 = vmul.f32 %v6061_v21, %v6061_v21  ;;  %v883_v46 = vmul.f32 %v6062_v45, %v6062_v45  ;;  %2383 = vperm.xlu1 %3069, %v2305_v41   ;;  %v6066_v38 = vld [vmem:[#allocation54_spill] sm:$0xff]  ;;  %v6067_v1 = vld [vmem:[#allocation56_spill] sm:$0xff] }
 0x106   : > { %v906_v39 = vadd.f32 %v905_v32, %v875_v5  ;;  %v823_v2 = vadd.f32 %v822_v4, %v786_v35  ;;  %v844_v24 = vadd.f32 %v843_v36, %v787_v47  ;;  %v927_v44 = vadd.f32 %v926_v9, %v876_v27  ;;  %2378 = vperm.xlu0 %3068, %v2304_v61   ;;  %v6068_v41 = vld [vmem:[#allocation58_spill] sm:$0xff]  ;;  %v6069_v27 = vld [vmem:[#allocation59_spill] sm:$0xff]  ;;  %v6070_v61 = vld [vmem:[#allocation61_spill] sm:$0xff] }
 0x107   : > { %v948_v15 = vadd.f32 %v947_v52, %v877_v31  ;;  %v4697_v37 = vsub.f32 %v6063_v22, %v4002_v23  ;;  %v884_v18 = vmul.f32 %v6065_v7, %v6065_v7  ;;  %v885_v54 = vmul.f32 %v6066_v38, %v6066_v38  ;;  %v4707_v4 = vpop.permute.xlu1 %1421  ;;  %v4709_v36 = vpop.permute.xlu0 %1416 }
 0x108   : > { %v907_v21 = vadd.f32 %v906_v39, %v878_v10  ;;  %v886_v5 = vmul.f32 %v6067_v1, %v6067_v1  ;;  %v887_v35 = vmul.f32 %v6068_v41, %v6068_v41  ;;  %v928_v47 = vadd.f32 %v927_v44, %v879_v13  ;;  %v6071_v1 = vld [vmem:[#allocation72_spill] sm:$0xff]  ;;  %v6073_v13 = vld [vmem:[#allocation62_spill] sm:$0xff] }
 0x109   : > { %6064 = vst [vmem:[#allocation20_spill] sm:$0xff] %v4697_v37  ;;  %v949_v31 = vadd.f32 %v948_v15, %v880_v30  ;;  %v803_v23 = vrot.slane %v802_v8, 4  ;;  %v888_v32 = vmul.f32 %v6069_v27, %v6069_v27  ;;  %v889_v9 = vmul.f32 %v6070_v61, %v6070_v61  ;;  %v6074_v15 = vld [vmem:[#allocation63_spill] sm:$0xff]  ;;  %v6075_v27 = vld [vmem:[#allocation64_spill] sm:$0xff] }
 0x10a   : > { %v908_v10 = vadd.f32 %v907_v21, %v881_v55  ;;  %v824_v39 = vrot.slane %v823_v2, 4  ;;  %v845_v52 = vrot.slane %v844_v24, 4  ;;  %v929_v22 = vadd.f32 %v928_v47, %v882_v40 }
 0x10b   : > { %v950_v45 = vadd.f32 %v949_v31, %v883_v46  ;;  %v4717_v44 = vsub.f32 %v6071_v1, %v4004_v14  ;;  %v890_v30 = vmul.f32 %v6073_v13, %v6073_v13  ;;  %v891_v41 = vmul.f32 %v6074_v15, %v6074_v15  ;;  %v4727_v46 = vpop.permute.xlu1 %1565  ;;  %v4729_v47 = vpop.permute.xlu0 %1560  ;;  %v6076_v1 = vld [vmem:[#allocation66_spill] sm:$0xff] }
 0x10c   : > { %v909_v38 = vadd.f32 %v908_v10, %v884_v18  ;;  %v892_v7 = vmul.f32 %v6075_v27, %v6075_v27  ;;  %v893_v55 = vmul.f32 %v4432_v16, %v4432_v16  ;;  %v930_v21 = vadd.f32 %v929_v22, %v885_v54 }
 0x10d   : > { %6072 = vst [vmem:[#allocation21_spill] sm:$0xff] %v4717_v44  ;;  %v951_v40 = vadd.f32 %v950_v45, %v886_v5  ;;  %v804_v14 = vadd.f32 %v803_v23, %v802_v8  ;;  %v894_v31 = vmul.f32 %v6076_v1, %v6076_v1  ;;  %v895_v61 = vmul.f32 %v4446_v48, %v4446_v48 }
 0x10e   : > { %v910_v18 = vadd.f32 %v909_v38, %v887_v35  ;;  %v825_v10 = vadd.f32 %v824_v39, %v823_v2  ;;  %v846_v15 = vadd.f32 %v845_v52, %v844_v24  ;;  %v931_v27 = vadd.f32 %v930_v21, %v888_v32 }
 0x10f   : > { %v952_v13 = vadd.f32 %v951_v40, %v889_v9  ;;  %v896_v54 = vmul.f32 %v4673_v57, %v4673_v57  ;;  %v897_v5 = vmul.f32 %v4697_v37, %v4697_v37  ;;  %v898_v8 = vmul.f32 %v4717_v44, %v4717_v44  ;;  %v4741_v1 = vpop.permute.xlu1 %1431  ;;  %v4743_v48 = vpop.permute.xlu0 %1426 }
 0x110   : > { %v911_v45 = vadd.f32 %v910_v18, %v890_v30  ;;  %v932_v23 = vadd.f32 %v931_v27, %v891_v41  ;;  %v805_v2 = vrot.slane %v804_v14, 2  ;;  %v826_v38 = vrot.slane %v825_v10, 2 }
 0x111   : > { %v953_v22 = vadd.f32 %v952_v13, %v892_v7  ;;  %v847_v35 = vrot.slane %v846_v15, 2 }
 0x112   : > { %v912_v24 = vadd.f32 %v911_v45, %v893_v55  ;;  %v933_v32 = vadd.f32 %v932_v23, %v894_v31  ;;  %v806_v18 = vadd.f32 %v805_v2, %v804_v14  ;;  %v827_v7 = vadd.f32 %v826_v38, %v825_v10 }
 0x113   : > { %v954_v9 = vadd.f32 %v953_v22, %v895_v61  ;;  %v4745_v21 = vpop.permute.xlu1 %1575  ;;  %v4747_v40 = vpop.permute.xlu0 %1570  ;;  %v848_v27 = vadd.f32 %v847_v35, %v846_v15 }
 0x114   : > { %v913_v39 = vadd.f32 %v912_v24, %v896_v54  ;;  %v934_v52 = vadd.f32 %v933_v32, %v897_v5  ;;  %v807_v31 = vrot.slane %v806_v18, 1  ;;  %v828_v5 = vrot.slane %v827_v7, 1 }
 0x115   : > { %v955_v30 = vadd.f32 %v954_v9, %v898_v8  ;;  %v849_v8 = vrot.slane %v848_v27, 1 }
 0x116   : > { %v914_v41 = vrot.slane %v913_v39, 4  ;;  %v935_v13 = vrot.slane %v934_v52, 4  ;;  %v808_v10 = vadd.f32 %v807_v31, %v806_v18  ;;  %v829_v38 = vadd.f32 %v828_v5, %v827_v7 }
 0x117   : > { %v956_v44 = vrot.slane %v955_v30, 4  ;;  %v4749_v45 = vpop.permute.xlu1 %1441  ;;  %v4751_v54 = vpop.permute.xlu0 %1436  ;;  %v850_v35 = vadd.f32 %v849_v8, %v848_v27 }
 0x118   : > { %v915_v16 = vadd.f32 %v914_v41, %v913_v39  ;;  %v936_v37 = vadd.f32 %v935_v13, %v934_v52  ;;  %6077 = vst [vmem:[#allocation22_spill] sm:$0xff] %v4749_v45  ;;  %6078 = vst [vmem:[#allocation23_spill] sm:$0xff] %v4751_v54 }
 0x119   : > { %v957_v55 = vadd.f32 %v956_v44, %v955_v30 }
 0x11a   : > { %v916_v61 = vrot.slane %v915_v16, 2  ;;  %v937_v23 = vrot.slane %v936_v37, 2 }
 0x11b   : > { %v958_v22 = vrot.slane %v957_v55, 2  ;;  %v4753_v44 = vpop.permute.xlu1 %1585  ;;  %v4755_v52 = vpop.permute.xlu0 %1580 }
 0x11c   : > { %v917_v24 = vadd.f32 %v916_v61, %v915_v16  ;;  %v938_v14 = vadd.f32 %v937_v23, %v936_v37 }
 0x11d   : > { %v959_v2 = vadd.f32 %v958_v22, %v957_v55 }
 0x11e   : > { %v918_v15 = vrot.slane %v917_v24, 1  ;;  %v939_v32 = vrot.slane %v938_v14, 1 }
 0x11f   : > { %v960_v9 = vrot.slane %v959_v2, 1  ;;  %v4757_v55 = vpop.permute.xlu1 %1451  ;;  %v4759_v7 = vpop.permute.xlu0 %1446 }
 0x120   : > { %v919_v39 = vadd.f32 %v918_v15, %v917_v24  ;;  %v940_v30 = vadd.f32 %v939_v32, %v938_v14 }
 0x121   : > { %v961_v41 = vadd.f32 %v960_v9, %v959_v2 }
 0x122   : > { %v962_v13 = vadd.f32 %v919_v39, %v808_v10  ;;  %v963_v57 = vadd.f32 %v940_v30, %v829_v38 }
 0x123   : > { %v964_v54 = vadd.f32 %v961_v41, %v850_v35  ;;  %v4761_v61 = vpop.permute.xlu1 %1595  ;;  %v4763_v5 = vpop.permute.xlu0 %1590 }
 0x124   : > { %v965_v45 = vmul.f32 0.00390625, %v962_v13  ;;  %v966_v16 = vmul.f32 0.00390625, %v963_v57 }
 0x125   : > { %v967_v37 = vmul.f32 0.00390625, %v964_v54 }
 0x126   : > { %v968_v18 = vadd.f32 1e-05, %v965_v45  ;;  %v969_v27 = vadd.f32 1e-05, %v966_v16 }
 0x127   : > { %v970_v31 = vadd.f32 1e-05, %v967_v37  ;;  %v4765_v8 = vpop.permute.xlu1 %1045  ;;  %v4769_v57 = vpop.permute.xlu0 %1040 }
 0x128   : > { %3070 = vrsqrt.f32 %v968_v18 }
 0x129   : > { %3072 = vrsqrt.f32 %v969_v27 }
 0x12a   : > { %3074 = vrsqrt.f32 %v970_v31 }
 0x12b   : > { %v4796_v35 = vpop.permute.xlu1 %1189  ;;  %v4802_v9 = vpop.permute.xlu0 %1184 }
 0x132   : > { %v4767_v23 = vpop.eup %3070 }
 0x133   : > { %v4771_v54 = vpop.eup %3072  ;;  %v1310_v45 = vmul.f32 %v4767_v23, %v4224_v33  ;;  %v1313_v22 = vmul.f32 %v4767_v23, %v6024_v56  ;;  %v1319_v24 = vmul.f32 %v4767_v23, %v6031_v58  ;;  %v1316_v15 = vmul.f32 %v4767_v23, %v6028_v63 }
 0x134   : > { %v1311_v14 = vmul.f32 %v4771_v54, %v4228_v0  ;;  %v1314_v2 = vmul.f32 %v4771_v54, %v6026_v59  ;;  %v1320_v10 = vmul.f32 %v4771_v54, %v6032_v49  ;;  %v1317_v33 = vmul.f32 %v4771_v54, %v6029_v3  ;;  %v4789_v38 = vpop.eup %3074 }
 0x135   : > { %v1454_v0 = vmul.f32 %v4474_v11, %v1310_v45  ;;  %v1318_v59 = vmul.f32 %v4789_v38, %v6030_v29  ;;  %v1457_v49 = vmul.f32 %v4510_v51, %v1313_v22  ;;  %v1463_v63 = vmul.f32 %v4544_v6, %v1319_v24 }
 0x136   : > { %v1455_v56 = vmul.f32 %v4474_v11, %v1311_v14  ;;  %v1458_v58 = vmul.f32 %v4510_v51, %v1314_v2  ;;  %v1464_v32 = vmul.f32 %v4544_v6, %v1320_v10  ;;  %v1460_v3 = vmul.f32 %v4546_v20, %v1316_v15  ;;  %v4827_v10 = vpop.permute.xlu1 %1055 }
 0x137   : > { %v1461_v39 = vmul.f32 %v4546_v20, %v1317_v33  ;;  %v1462_v30 = vmul.f32 %v4546_v20, %v1318_v59  ;;  %v1607_v13 = vadd.f32 %v4582_v50, %v1463_v63  ;;  %v1598_v45 = vadd.f32 %v4472_v17, %v1454_v0  ;;  %v6079_v33 = vld [vmem:[#allocation68_spill] sm:$0xff]  ;;  %v6081_v63 = vld [vmem:[#allocation15_spill] sm:$0xff] }
 0x138   : > { %v1599_v41 = vadd.f32 %v4472_v17, %v1455_v56  ;;  %v1602_v29 = vadd.f32 %v4508_v60, %v1458_v58  ;;  %v1608_v16 = vadd.f32 %v4582_v50, %v1464_v32  ;;  %v1604_v18 = vadd.f32 %v4584_v19, %v1460_v3  ;;  %v6080_v58 = vld [vmem:[#allocation69_spill] sm:$0xff] }
 0x139   : > { %v1605_v27 = vadd.f32 %v4584_v19, %v1461_v39  ;;  %v4813_v31 = vadd.f32 %v4584_v19, %v1462_v30  ;;  %v1601_v20 = vadd.f32 %v4508_v60, %v1457_v49  ;;  %v1325_v22 = vmul.f32 %v4767_v23, %v6040_v42  ;;  %v4830_v42 = vpop.permute.xlu0 %1050 }
 0x13a   : > { %v2797_v37 = vpack.c.bf16 %v1602_v29, %v1599_v41  ;;  %v1326_v24 = vmul.f32 %v4771_v54, %v6041_v53  ;;  %v1322_v14 = vmul.f32 %v4767_v23, %v6034_v25  ;;  %v1323_v2 = vmul.f32 %v4771_v54, %v6037_v62  ;;  %v6082_v41 = vld [vmem:[#allocation36_spill] sm:$0xff] }
 0x13b   : > { %v1324_v19 = vmul.f32 %v4789_v38, %v6038_v28  ;;  %v2799_v15 = vpack.c.bf16 %v1601_v20, %v1598_v45  ;;  %v1469_v53 = vmul.f32 %v6079_v33, %v1325_v22  ;;  %v2801_v25 = vpack.c.bf16 %v1608_v16, %v1605_v27  ;;  %v6083_v16 = vld [vmem:[#allocation37_spill] sm:$0xff]  ;;  %v6085_v27 = vld [vmem:[#allocation32_spill] sm:$0xff] }
 0x13c   : > { %2798 = vmatprep.subr.bf16.mxu0 %v2797_v37  ;;  %2925 = vmatprep.subr.bf16.mxu1 %v2797_v37  ;;  %v1470_v56 = vmul.f32 %v6079_v33, %v1326_v24  ;;  %v1467_v0 = vmul.f32 %v6080_v58, %v1323_v2  ;;  %v1466_v62 = vmul.f32 %v6080_v58, %v1322_v14  ;;  %v6086_v20 = vld [vmem:[#allocation33_spill] sm:$0xff]  ;;  %v4854_v14 = vpop.permute.xlu1 %1199  ;;  %v6087_v2 = vld [vmem:[#allocation24_spill] sm:$0xff] }
 0x13d   : > { %v4835_v59 = vmul.f32 %v6080_v58, %v1324_v19  ;;  %2800 = vmatpush1.bf16.msra.mxu0 %v2799_v15  ;;  %2933 = vmatpush1.bf16.msra.mxu1 %v2799_v15  ;;  %v2803_v28 = vpack.c.bf16 %v1607_v13, %v1604_v18  ;;  %v1312_v32 = vmul.f32 %v4789_v38, %v6081_v63  ;;  %v6084_v13 = vld [vmem:[#allocation18_spill] sm:$0xff] }
 0x13e   : > { %v1614_v49 = vadd.f32 %v4630_v34, %v1470_v56  ;;  %2802 = vmatprep.subr.bf16.mxu0 %v2801_v25  ;;  %2926 = vmatprep.subr.bf16.mxu1 %v2801_v25  ;;  %v1611_v3 = vadd.f32 %v4632_v26, %v1467_v0  ;;  %v1613_v39 = vadd.f32 %v4630_v34, %v1469_v53  ;;  %v4860_v53 = vpop.permute.xlu0 %1194  ;;  %v6088_v0 = vld [vmem:[#allocation16_spill] sm:$0xff] }
 0x13f   : > { %v1610_v30 = vadd.f32 %v4632_v26, %v1466_v62  ;;  %v1331_v29 = vmul.f32 %v4767_v23, %v6082_v41  ;;  %v1332_v37 = vmul.f32 %v4771_v54, %v6083_v16  ;;  %v1315_v18 = vmul.f32 %v4789_v38, %v6084_v13  ;;  %v6089_v41 = vld [vmem:[#allocation19_spill] sm:$0xff]  ;;  %v6091_v13 = vld [vmem:[#allocation46_spill] sm:$0xff] }
 0x140   : > { %v1328_v45 = vmul.f32 %v4767_v23, %v6085_v27  ;;  %v1329_v22 = vmul.f32 %v4771_v54, %v6086_v20  ;;  %v2805_v24 = vpack.c.bf16 %v1614_v49, %v1611_v3  ;;  %v1321_v19 = vmul.f32 %v4789_v38, %v6087_v2 }
 0x141   : > { %2804 = vmatpush1.bf16.msra.mxu0 %v2803_v28  ;;  %2934 = vmatpush1.bf16.msra.mxu1 %v2803_v28  ;;  %v1475_v15 = vmul.f32 %v4657_v43, %v1331_v29  ;;  %v1476_v56 = vmul.f32 %v4657_v43, %v1332_v37  ;;  %v1456_v58 = vmul.f32 %v4474_v11, %v1312_v32  ;;  %v6090_v37 = vld [vmem:[#allocation45_spill] sm:$0xff] }
 0x142   : > { %v1472_v25 = vmul.f32 %v6088_v0, %v1328_v45  ;;  %v1473_v62 = vmul.f32 %v6088_v0, %v1329_v22  ;;  %2806 = vmatprep.subr.bf16.mxu0 %v2805_v24  ;;  %2927 = vmatprep.subr.bf16.mxu1 %v2805_v24  ;;  %v2807_v49 = vpack.c.bf16 %v1613_v39, %v1610_v30  ;;  %v6092_v30 = vld [vmem:[#allocation41_spill] sm:$0xff]  ;;  %v4883_v24 = vpop.permute.xlu1 %1065 }
 0x143   : > { %v1619_v63 = vadd.f32 %v4686_v12, %v1475_v15  ;;  %v1620_v3 = vadd.f32 %v4686_v12, %v1476_v56  ;;  %v1459_v28 = vmul.f32 %v4510_v51, %v1315_v18  ;;  %v1337_v11 = vmul.f32 %v4767_v23, %v6090_v37  ;;  %v6093_v18 = vld [vmem:[#allocation42_spill] sm:$0xff] }
 0x144   : > { %v1616_v29 = vadd.f32 %v6089_v41, %v1472_v25  ;;  %v1617_v16 = vadd.f32 %v6089_v41, %v1473_v62  ;;  %v1465_v32 = vmul.f32 %v4544_v6, %v1321_v19  ;;  %v1338_v39 = vmul.f32 %v4771_v54, %v6091_v13  ;;  %v6094_v6 = vld [vmem:[#allocation30_spill] sm:$0xff]  ;;  %v4889_v25 = vpop.permute.xlu0 %1060 }
 0x145   : > { %2808 = vmatpush1.bf16.msra.mxu0 %v2807_v49  ;;  %2935 = vmatpush1.bf16.msra.mxu1 %v2807_v49  ;;  %v1334_v27 = vmul.f32 %v4767_v23, %v6092_v30  ;;  %v4878_v45 = vadd.f32 %v4472_v17, %v1456_v58  ;;  %v1481_v51 = vmul.f32 %v4707_v4, %v1337_v11  ;;  %v6095_v49 = vld [vmem:[#allocation39_spill] sm:$0xff]  ;;  %v6097_v11 = vld [vmem:[#allocation54_spill] sm:$0xff] }
 0x146   : > { %v1335_v20 = vmul.f32 %v4771_v54, %v6093_v18  ;;  %v2809_v22 = vpack.c.bf16 %v1620_v3, %v1617_v16  ;;  %v1327_v2 = vmul.f32 %v4789_v38, %v6094_v6  ;;  %v1482_v19 = vmul.f32 %v4707_v4, %v1338_v39  ;;  %v6098_v30 = vld [vmem:[#allocation35_spill] sm:$0xff] }
 0x147   : > { %v1478_v15 = vmul.f32 %v4709_v36, %v1334_v27  ;;  %v2811_v56 = vpack.c.bf16 %v1619_v63, %v1616_v29  ;;  %v4892_v17 = vadd.f32 %v4508_v60, %v1459_v28  ;;  %v1625_v62 = vadd.f32 %v4727_v46, %v1481_v51  ;;  %v6096_v28 = vld [vmem:[#allocation53_spill] sm:$0xff] }
 0x148   : > { %v1479_v58 = vmul.f32 %v4709_v36, %v1335_v20  ;;  %2810 = vmatprep.subr.bf16.mxu0 %v2809_v22  ;;  %2928 = vmatprep.subr.bf16.mxu1 %v2809_v22  ;;  %v1333_v3 = vmul.f32 %v4789_v38, %v6095_v49  ;;  %v1626_v16 = vadd.f32 %v4727_v46, %v1482_v19  ;;  %v6099_v51 = vld [vmem:[#allocation49_spill] sm:$0xff]  ;;  %v6100_v20 = vld [vmem:[#allocation50_spill] sm:$0xff]  ;;  %v4925_v49 = vpop.permute.xlu0 %1204 }
 0x149   : > { %2812 = vmatpush1.bf16.msra.mxu0 %v2811_v56  ;;  %2936 = vmatpush1.bf16.msra.mxu1 %v2811_v56  ;;  %v1622_v63 = vadd.f32 %v4729_v47, %v1478_v15  ;;  %v4901_v29 = vadd.f32 %v4582_v50, %v1465_v32  ;;  %v1343_v37 = vmul.f32 %v4767_v23, %v6096_v28  ;;  %v4917_v15 = vpop.permute.xlu1 %1209 }
 0x14a   : > { %v1623_v60 = vadd.f32 %v4729_v47, %v1479_v58  ;;  %v1344_v13 = vmul.f32 %v4771_v54, %v6097_v11  ;;  %v1471_v39 = vmul.f32 %v6079_v33, %v1327_v2  ;;  %v1330_v27 = vmul.f32 %v4789_v38, %v6098_v30  ;;  %v6102_v11 = vld [vmem:[#allocation47_spill] sm:$0xff] }
 0x14b   : > { %v1340_v18 = vmul.f32 %v4767_v23, %v6099_v51  ;;  %v1341_v50 = vmul.f32 %v4771_v54, %v6100_v20  ;;  %v1487_v32 = vmul.f32 %v4741_v1, %v1343_v37  ;;  %v2815_v19 = vpack.c.bf16 %v1625_v62, %v1622_v63  ;;  %v6101_v62 = vld [vmem:[#allocation62_spill] sm:$0xff]  ;;  %v6106_v20 = vld [vmem:[#allocation59_spill] sm:$0xff] }
 0x14c   : > { %v1488_v22 = vmul.f32 %v4741_v1, %v1344_v13  ;;  %v2813_v6 = vpack.c.bf16 %v1626_v16, %v1623_v60  ;;  %v4920_v56 = vadd.f32 %v4630_v34, %v1471_v39  ;;  %v1477_v33 = vmul.f32 %v4657_v43, %v1333_v3  ;;  %v6103_v39 = vld [vmem:[#allocation63_spill] sm:$0xff]  ;;  %v6104_v51 = vld [vmem:[#allocation22_spill] sm:$0xff] }
 0x14d   : > { %v1484_v2 = vmul.f32 %v4743_v48, %v1340_v18  ;;  %v1485_v58 = vmul.f32 %v4743_v48, %v1341_v50  ;;  %v1631_v28 = vadd.f32 %v4745_v21, %v1487_v32  ;;  %v1349_v63 = vmul.f32 %v4767_v23, %v6101_v62 }
 0x14e   : > { %2814 = vmatprep.subr.bf16.mxu0 %v2813_v6  ;;  %2929 = vmatprep.subr.bf16.mxu1 %v2813_v6  ;;  %v1632_v16 = vadd.f32 %v4745_v21, %v1488_v22  ;;  %v4933_v34 = vadd.f32 %v4632_v26, %v4835_v59  ;;  %v1474_v60 = vmul.f32 %v6088_v0, %v1330_v27  ;;  %v6105_v59 = vld [vmem:[#allocation58_spill] sm:$0xff] }
 0x14f   : > { %2816 = vmatpush1.bf16.msra.mxu0 %v2815_v19  ;;  %2937 = vmatpush1.bf16.msra.mxu1 %v2815_v19  ;;  %v1628_v43 = vadd.f32 %v4747_v40, %v1484_v2  ;;  %v1629_v3 = vadd.f32 %v4747_v40, %v1485_v58  ;;  %v4939_v37 = vadd.f32 %v4686_v12, %v1477_v33  ;;  %v6107_v12 = vld [vmem:[#allocation44_spill] sm:$0xff]  ;;  %v4956_v19 = vpop.permute.xlu1 %1075  ;;  %v6108_v33 = vld [vmem:[#allocation23_spill] sm:$0xff] }
 0x150   : > { %v1339_v13 = vmul.f32 %v4789_v38, %v6102_v11  ;;  %v1350_v30 = vmul.f32 %v4771_v54, %v6103_v39  ;;  %v1493_v26 = vmul.f32 %v6104_v51, %v1349_v63  ;;  %v1346_v18 = vmul.f32 %v4767_v23, %v6105_v59 }
 0x151   : > { %v1347_v50 = vmul.f32 %v4771_v54, %v6106_v20  ;;  %v2817_v32 = vpack.c.bf16 %v1632_v16, %v1629_v3  ;;  %v4951_v0 = vadd.f32 %v6089_v41, %v1474_v60  ;;  %v1336_v27 = vmul.f32 %v4789_v38, %v6107_v12  ;;  %v4961_v16 = vpop.permute.xlu0 %1070  ;;  %v6109_v41 = vld [vmem:[#allocation56_spill] sm:$0xff]  ;;  %v6114_v12 = vld [vmem:[#allocation66_spill] sm:$0xff] }
 0x152   : > { %v1494_v22 = vmul.f32 %v6104_v51, %v1350_v30  ;;  %v2819_v6 = vpack.c.bf16 %v1631_v28, %v1628_v43  ;;  %v1490_v2 = vmul.f32 %v6108_v33, %v1346_v18  ;;  %v1637_v62 = vadd.f32 %v4753_v44, %v1493_v26  ;;  %v6110_v28 = vld [vmem:[#allocation17_spill] sm:$0xff]  ;;  %v6111_v30 = vld [vmem:[#allocation20_spill] sm:$0xff] }
 0x153   : > { %v1491_v58 = vmul.f32 %v6108_v33, %v1347_v50  ;;  %2818 = vmatprep.subr.bf16.mxu0 %v2817_v32  ;;  %2930 = vmatprep.subr.bf16.mxu1 %v2817_v32  ;;  %v1345_v63 = vmul.f32 %v4789_v38, %v6109_v41  ;;  %v1355_v43 = vmul.f32 %v4767_v23, %v6110_v28  ;;  %v6112_v18 = vld [vmem:[#allocation52_spill] sm:$0xff]  ;;  %v6113_v50 = vld [vmem:[#allocation65_spill] sm:$0xff]  ;;  %v4988_v28 = vpop.permute.xlu1 %1219 }
 0x154   : > { %2820 = vmatpush1.bf16.msra.mxu0 %v2819_v6  ;;  %2938 = vmatpush1.bf16.msra.mxu1 %v2819_v6  ;;  %v1638_v3 = vadd.f32 %v4753_v44, %v1494_v22  ;;  %v1483_v60 = vmul.f32 %v4707_v4, %v1339_v13  ;;  %v1634_v11 = vadd.f32 %v4755_v52, %v1490_v2 }
 0x155   : > { %v1635_v39 = vadd.f32 %v4755_v52, %v1491_v58  ;;  %v1356_v26 = vmul.f32 %v4771_v54, %v6111_v30  ;;  %v1480_v59 = vmul.f32 %v4709_v36, %v1336_v27  ;;  %v1342_v20 = vmul.f32 %v4789_v38, %v6112_v18 }
 0x156   : > { %v1352_v32 = vmul.f32 %v4767_v23, %v6113_v50  ;;  %v1353_v22 = vmul.f32 %v4771_v54, %v6114_v12  ;;  %v1499_v4 = vmul.f32 %v4757_v55, %v1355_v43  ;;  %v2823_v2 = vpack.c.bf16 %v1637_v62, %v1634_v11  ;;  %v6117_v50 = vld [vmem:[#allocation78_spill] sm:$0xff]  ;;  %v6118_v12 = vld [vmem:[#allocation61_spill] sm:$0xff] }
 0x157   : > { %v1500_v13 = vmul.f32 %v4757_v55, %v1356_v26  ;;  %v2821_v6 = vpack.c.bf16 %v1638_v3, %v1635_v39  ;;  %v4983_v58 = vadd.f32 %v4727_v46, %v1483_v60  ;;  %v1489_v36 = vmul.f32 %v4741_v1, %v1345_v63  ;;  %v6115_v26 = vld [vmem:[#allocation75_spill] sm:$0xff]  ;;  %v4994_v3 = vpop.permute.xlu0 %1214  ;;  %v6116_v39 = vld [vmem:[#allocation64_spill] sm:$0xff] }
 0x158   : > { %v1496_v27 = vmul.f32 %v4759_v7, %v1352_v32  ;;  %v1497_v41 = vmul.f32 %v4759_v7, %v1353_v22  ;;  %v1643_v30 = vadd.f32 %v4761_v61, %v1499_v4  ;;  %v977_v62 = vmul.f32 %v4767_v23, %v6115_v26  ;;  %v6120_v4 = vld [vmem:[#allocation74_spill] sm:$0xff]  ;;  %v5024_v26 = vpop.permute.xlu1 %1085 }
 0x159   : > { %2822 = vmatprep.subr.bf16.mxu0 %v2821_v6  ;;  %2931 = vmatprep.subr.bf16.mxu1 %v2821_v6  ;;  %v1644_v43 = vadd.f32 %v4761_v61, %v1500_v13  ;;  %v4997_v46 = vadd.f32 %v4729_v47, %v1480_v59  ;;  %v1486_v60 = vmul.f32 %v4743_v48, %v1342_v20  ;;  %v6119_v59 = vld [vmem:[#allocation73_spill] sm:$0xff] }
 0x15a   : > { %2824 = vmatpush1.bf16.msra.mxu0 %v2823_v2  ;;  %2939 = vmatpush1.bf16.msra.mxu1 %v2823_v2  ;;  %v1640_v1 = vadd.f32 %v4763_v5, %v1496_v27  ;;  %v1641_v63 = vadd.f32 %v4763_v5, %v1497_v41  ;;  %v5003_v11 = vadd.f32 %v4745_v21, %v1489_v36 }
 0x15b   : > { %v1351_v18 = vmul.f32 %v4789_v38, %v6116_v39  ;;  %v978_v32 = vmul.f32 %v4771_v54, %v6117_v50  ;;  %v1348_v47 = vmul.f32 %v4789_v38, %v6118_v12  ;;  %v974_v22 = vmul.f32 %v4767_v23, %v6119_v59  ;;  %v6124_v59 = vld [vmem:[#allocation76_spill] sm:$0xff] }
 0x15c   : > { %v975_v13 = vmul.f32 %v4771_v54, %v6120_v4  ;;  %v2825_v6 = vpack.c.bf16 %v1644_v43, %v1641_v63  ;;  %v5016_v48 = vadd.f32 %v4747_v40, %v1486_v60  ;;  %v1121_v21 = vmul.f32 %v4765_v8, %v977_v62  ;;  %v6121_v60 = vld [vmem:[#allocation21_spill] sm:$0xff] }
 0x15d   : > { %v1122_v20 = vmul.f32 %v4765_v8, %v978_v32  ;;  %v2827_v2 = vpack.c.bf16 %v1643_v30, %v1640_v1  ;;  %v1118_v36 = vmul.f32 %v4769_v57, %v974_v22  ;;  %v2829_v41 = vpack.c.bf16 %v4892_v17, %v4878_v45  ;;  %v5032_v30 = vld [vmem:[%s5634_s7 + $0x40] sm:$0xff]  ;;  %v5034_v1 = vpop.permute.xlu0 %1080 }
 0x15e   : > { %v1119_v27 = vmul.f32 %v4769_v57, %v975_v13  ;;  %2826 = vmatprep.subr.bf16.mxu0 %v2825_v6  ;;  %2932 = vmatprep.subr.bf16.mxu1 %v2825_v6  ;;  %v1495_v43 = vmul.f32 %v6104_v51, %v1351_v18  ;;  %v1265_v40 = vadd.f32 %v4796_v35, %v1121_v21  ;;  %v6122_v18 = vld [vmem:[#allocation82_spill] sm:$0xff]  ;;  %v6123_v32 = vld [vmem:[#allocation83_spill] sm:$0xff]  ;;  %v6126_v13 = vld [vmem:[#allocation80_spill] sm:$0xff] }
 0x15f   : > { %2828 = vmatpush1.bf16.msra.mxu0 %v2827_v2  ;;  %2940 = vmatpush1.bf16.msra.mxu1 %v2827_v2  ;;  %v1266_v62 = vadd.f32 %v4796_v35, %v1122_v20  ;;  %v1492_v63 = vmul.f32 %v6108_v33, %v1348_v47  ;;  %v1262_v45 = vadd.f32 %v4802_v9, %v1118_v36  ;;  %v6125_v47 = vld [vmem:[#allocation67_spill] sm:$0xff] }
 0x160   : > { %2830 = vmatprep.subr.bf16.mxu1 %v2829_v41  ;;  %v1263_v17 = vadd.f32 %v4802_v9, %v1119_v27  ;;  %v2833_v51 = vpack.c.bf16 %v4901_v29, %v4813_v31  ;;  %v1357_v39 = vmul.f32 %v4789_v38, %v6121_v60  ;;  %v983_v50 = vmul.f32 %v4767_v23, %v6122_v18  ;;  %v5057_v6 = vld [vmem:[%s5634_s7] sm:$0xff]  ;;  %v5070_v27 = vld [vmem:[%s5634_s7 + $0x48] sm:$0xff] }
 0x161   : > { %v984_v12 = vmul.f32 %v4771_v54, %v6123_v32  ;;  %v980_v33 = vmul.f32 %v4767_v23, %v6124_v59  ;;  %v1354_v22 = vmul.f32 %v4789_v38, %v6125_v47  ;;  %v2863_v4 = vpack.c.bf16 %v1265_v40, %v1262_v45  ;;  %v6128_v18 = vld [vmem:[#allocation79_spill] sm:$0xff]  ;;  %v6130_v32 = vld [vmem:[#allocation89_spill] sm:$0xff] }
 0x162   : > { %1791 = vmatmul.mubr.f32.vlgmr.msra.gmra.mrb[0].mxu1 %v5032_v30  ;;  %v981_v31 = vmul.f32 %v4771_v54, %v6126_v13  ;;  %v2861_v29 = vpack.c.bf16 %v1266_v62, %v1263_v17  ;;  %v5060_v21 = vadd.f32 %v4753_v44, %v1495_v43  ;;  %v5063_v20 = vadd.f32 %v4755_v52, %v1492_v63  ;;  %v5083_v17 = vpop.permute.xlu0 %1224  ;;  %v6133_v13 = vld [vmem:[#allocation77_spill] sm:$0xff] }
 0x163   : > { %2832 = vmatpush3.bf16.msra.mxu1 %v2829_v41  ;;  %v1127_v2 = vmul.f32 %v4827_v10, %v983_v50  ;;  %v1128_v36 = vmul.f32 %v4827_v10, %v984_v12  ;;  %v1124_v40 = vmul.f32 %v4830_v42, %v980_v33  ;;  %v6127_v44 = vmov 0.0   ;;  %v5077_v41 = vpop.permute.xlu1 %1229  ;;  %1743 = vmatmul.mubr.f32.vlgmr.msra.gmra.mrb[0].mxu0 %v5057_v6  ;;  %v6129_v50 = vld [vmem:[#allocation88_spill] sm:$0xff] }
 0x164   : > { %2834 = vmatprep.subr.bf16.mxu1 %v2833_v51  ;;  %v1125_v62 = vmul.f32 %v4830_v42, %v981_v31  ;;  %1796 = vmatprep.mubr.f32.mxu1 %v6127_v44  ;;  %v2837_v52 = vpack.c.bf16 %v4920_v56, %v4933_v34  ;;  %v1501_v43 = vmul.f32 %v4757_v55, %v1357_v39  ;;  %v5095_v39 = vld [vmem:[%s5634_s7 + $0x50] sm:$0xff] }
 0x165   : > { %2862 = vmatprep.subr.bf16.mxu0 %v2861_v29  ;;  %v1271_v63 = vadd.f32 %v4854_v14, %v1127_v2  ;;  %v1272_v45 = vadd.f32 %v4854_v14, %v1128_v36  ;;  %v1498_v60 = vmul.f32 %v4759_v7, %v1354_v22  ;;  %v1268_v56 = vadd.f32 %v4860_v53, %v1124_v40  ;;  %v6132_v22 = vld [vmem:[#allocation86_spill] sm:$0xff] }
 0x166   : > { %1797 = vmatmul.mubr.f32.gmra.mrb[2].mxu1 %v5070_v27  ;;  %2864 = vmatpush1.bf16.msra.mxu0 %v2863_v4  ;;  %v1269_v34 = vadd.f32 %v4860_v53, %v1125_v62  ;;  %v979_v55 = vmul.f32 %v4789_v38, %v6128_v18  ;;  %v989_v7 = vmul.f32 %v4767_v23, %v6129_v50 }
 0x167   : > { %2836 = vmatpush3.bf16.msra.mxu1 %v2833_v51  ;;  %1802 = vmatprep.mubr.f32.mxu1 %v6127_v44  ;;  %v990_v12 = vmul.f32 %v4771_v54, %v6130_v32  ;;  %v5102_v59 = vadd.f32 %v4761_v61, %v1501_v43  ;;  %v5105_v33 = vadd.f32 %v4763_v5, %v1498_v60  ;;  %v6131_v51 = vld [vmem:[#allocation85_spill] sm:$0xff]  ;;  %v5121_v43 = vpop.permute.xlu1 %1095  ;;  %v6134_v60 = vld [vmem:[#allocation84_spill] sm:$0xff] }
 0x168   : > { %2838 = vmatprep.subr.bf16.mxu1 %v2837_v52  ;;  %v986_v47 = vmul.f32 %v4767_v23, %v6131_v51  ;;  %v987_v4 = vmul.f32 %v4771_v54, %v6132_v22  ;;  %v976_v31 = vmul.f32 %v4789_v38, %v6133_v13  ;;  %v2867_v29 = vpack.c.bf16 %v1271_v63, %v1268_v56  ;;  %v5133_v56 = vpop.permute.xlu0 %1090  ;;  %v6139_v13 = vld [vmem:[#allocation92_spill] sm:$0xff] }
 0x169   : > { %v1133_v2 = vmul.f32 %v4883_v24, %v989_v7  ;;  %v2865_v36 = vpack.c.bf16 %v1272_v45, %v1269_v34  ;;  %1748 = vmatprep.mubr.f32.mxu0 %v6127_v44  ;;  %v2841_v61 = vpack.c.bf16 %v4939_v37, %v4951_v0  ;;  %v1134_v5 = vmul.f32 %v4883_v24, %v990_v12  ;;  %v5130_v37 = vld [vmem:[%s5634_s7 + $0x58] sm:$0xff]  ;;  %v6137_v12 = vld [vmem:[#allocation95_spill] sm:$0xff] }
 0x16a   : > { %1803 = vmatmul.mubr.f32.gmra.mrb[4].mxu1 %v5095_v39  ;;  %v1130_v40 = vmul.f32 %v4889_v25, %v986_v47  ;;  %v1131_v62 = vmul.f32 %v4889_v25, %v987_v4  ;;  %v1123_v63 = vmul.f32 %v4765_v8, %v979_v55  ;;  %v985_v45 = vmul.f32 %v4789_v38, %v6134_v60  ;;  %v6135_v55 = vld [vmem:[#allocation81_spill] sm:$0xff]  ;;  %v6136_v7 = vld [vmem:[#allocation94_spill] sm:$0xff]  ;;  %v6138_v4 = vld [vmem:[#allocation91_spill] sm:$0xff] }
 0x16b   : > { %2840 = vmatpush3.bf16.msra.mxu1 %v2837_v52  ;;  %1808 = vmatprep.mubr.f32.mxu1 %v6127_v44  ;;  %v1277_v0 = vadd.f32 %v4917_v15, %v1133_v2  ;;  %v1278_v34 = vadd.f32 %v4917_v15, %v1134_v5  ;;  %v1120_v52 = vmul.f32 %v4769_v57, %v976_v31 }
 0x16c   : > { %2842 = vmatprep.subr.bf16.mxu1 %v2841_v61  ;;  %2866 = vmatprep.subr.bf16.mxu0 %v2865_v36  ;;  %v1274_v8 = vadd.f32 %v4925_v49, %v1130_v40  ;;  %v1275_v18 = vadd.f32 %v4925_v49, %v1131_v62  ;;  %v982_v50 = vmul.f32 %v4789_v38, %v6135_v55 }
 0x16d   : > { %2868 = vmatpush1.bf16.msra.mxu0 %v2867_v29  ;;  %v995_v32 = vmul.f32 %v4767_v23, %v6136_v7  ;;  %v996_v51 = vmul.f32 %v4771_v54, %v6137_v12  ;;  %v5146_v47 = vadd.f32 %v4796_v35, %v1123_v63  ;;  %v2845_v22 = vpack.c.bf16 %v4983_v58, %v4997_v46  ;;  %v5160_v35 = vld [vmem:[%s5634_s7 + $0x60] sm:$0xff]  ;;  %v6140_v63 = vld [vmem:[#allocation90_spill] sm:$0xff] }
 0x16e   : > { %1809 = vmatmul.mubr.f32.gmra.mrb[6].mxu1 %v5130_v37  ;;  %v992_v57 = vmul.f32 %v4767_v23, %v6138_v4  ;;  %v993_v31 = vmul.f32 %v4771_v54, %v6139_v13  ;;  %v1129_v29 = vmul.f32 %v4827_v10, %v985_v45  ;;  %v2871_v2 = vpack.c.bf16 %v1277_v0, %v1274_v8  ;;  %v5169_v10 = vld [vmem:[%s5634_s7 + $0x8] sm:$0xff]  ;;  %v6142_v12 = vld [vmem:[#allocation87_spill] sm:$0xff]  ;;  %v6144_v4 = vld [vmem:[#allocation97_spill] sm:$0xff] }
 0x16f   : > { %2844 = vmatpush3.bf16.msra.mxu1 %v2841_v61  ;;  %1814 = vmatprep.mubr.f32.mxu1 %v6127_v44  ;;  %v1139_v36 = vmul.f32 %v4956_v19, %v995_v32  ;;  %v1140_v58 = vmul.f32 %v4956_v19, %v996_v51  ;;  %v2869_v40 = vpack.c.bf16 %v1278_v34, %v1275_v18  ;;  %v5171_v61 = vpop.permute.xlu1 %1239  ;;  %v5180_v34 = vpop.permute.xlu0 %1234  ;;  %v6145_v13 = vld [vmem:[#allocation98_spill] sm:$0xff] }
 0x170   : > { %2846 = vmatprep.subr.bf16.mxu1 %v2845_v22  ;;  %v1136_v46 = vmul.f32 %v4961_v16, %v992_v57  ;;  %v1137_v5 = vmul.f32 %v4961_v16, %v993_v31  ;;  %v1126_v62 = vmul.f32 %v4830_v42, %v982_v50  ;;  %v991_v60 = vmul.f32 %v4789_v38, %v6140_v63  ;;  %v6141_v50 = vld [vmem:[#allocation100_spill] sm:$0xff] }
 0x171   : > { %v2849_v45 = vpack.c.bf16 %v5003_v11, %v5016_v48  ;;  %v1283_v0 = vadd.f32 %v4988_v28, %v1139_v36  ;;  %1749 = vmatmul.mubr.f32.gmra.mrb[2].mxu0 %v5169_v10  ;;  %2870 = vmatprep.subr.bf16.mxu0 %v2869_v40  ;;  %v1284_v8 = vadd.f32 %v4988_v28, %v1140_v58  ;;  %v5196_v48 = vld [vmem:[%s5634_s7 + $0x68] sm:$0xff] }
 0x172   : > { %1815 = vmatmul.mubr.f32.gmra.mrb[8].mxu1 %v5160_v35  ;;  %v1280_v18 = vadd.f32 %v4994_v3, %v1136_v46  ;;  %v1281_v42 = vadd.f32 %v4994_v3, %v1137_v5  ;;  %v5187_v55 = vadd.f32 %v4802_v9, %v1120_v52  ;;  %v5190_v11 = vadd.f32 %v4854_v14, %v1129_v29  ;;  %v6143_v14 = vld [vmem:[#allocation101_spill] sm:$0xff] }
 0x173   : > { %2848 = vmatpush3.bf16.msra.mxu1 %v2845_v22  ;;  %1820 = vmatprep.mubr.f32.mxu1 %v6127_v44  ;;  %v1001_v7 = vmul.f32 %v4767_v23, %v6141_v50  ;;  %v5201_v32 = vadd.f32 %v4860_v53, %v1126_v62  ;;  %v988_v9 = vmul.f32 %v4789_v38, %v6142_v12  ;;  %v6146_v53 = vld [vmem:[#allocation96_spill] sm:$0xff]  ;;  %v5219_v58 = vpop.permute.xlu1 %1105  ;;  %v5225_v46 = vld [vmem:[%s5634_s7 + $0x70] sm:$0xff] }
 0x174   : > { %2850 = vmatprep.subr.bf16.mxu1 %v2849_v45  ;;  %2872 = vmatpush1.bf16.msra.mxu0 %v2871_v2  ;;  %v1002_v52 = vmul.f32 %v4771_v54, %v6143_v14  ;;  %v1135_v51 = vmul.f32 %v4883_v24, %v991_v60  ;;  %v2875_v22 = vpack.c.bf16 %v1283_v0, %v1280_v18  ;;  %v6147_v60 = vld [vmem:[#allocation93_spill] sm:$0xff] }
 0x175   : > { %v998_v57 = vmul.f32 %v4767_v23, %v6144_v4  ;;  %v999_v31 = vmul.f32 %v4771_v54, %v6145_v13  ;;  %1754 = vmatprep.mubr.f32.mxu0 %v6127_v44  ;;  %v997_v29 = vmul.f32 %v4789_v38, %v6146_v53  ;;  %v2853_v2 = vpack.c.bf16 %v5060_v21, %v5063_v20  ;;  %v5230_v21 = vpop.permute.xlu0 %1100  ;;  %v1664_v13 = vld [vmem:[%s5634_s7 + $0x10] sm:$0xff] }
 0x176   : > { %1821 = vmatmul.mubr.f32.gmra.mrb[10].mxu1 %v5196_v48  ;;  %v1145_v36 = vmul.f32 %v5024_v26, %v1001_v7  ;;  %v2873_v24 = vpack.c.bf16 %v1284_v8, %v1281_v42  ;;  %v1146_v5 = vmul.f32 %v5024_v26, %v1002_v52  ;;  %v1132_v20 = vmul.f32 %v4889_v25, %v988_v9  ;;  %v6149_v7 = vld [vmem:[#allocation107_spill] sm:$0xff] }
 0x177   : > { %2852 = vmatpush3.bf16.msra.mxu1 %v2849_v45  ;;  %1826 = vmatprep.mubr.f32.mxu1 %v6127_v44  ;;  %v1142_v40 = vmul.f32 %v5034_v1, %v998_v57  ;;  %v1143_v62 = vmul.f32 %v5034_v1, %v999_v31  ;;  %v5234_v63 = vadd.f32 %v4917_v15, %v1135_v51  ;;  %v6148_v15 = vld [vmem:[#allocation106_spill] sm:$0xff]  ;;  %v6150_v9 = vld [vmem:[#allocation103_spill] sm:$0xff]  ;;  %v5270_v31 = vpop.permute.xlu1 %1249 }
 0x178   : > { %v994_v45 = vmul.f32 %v4789_v38, %v6147_v60  ;;  %2854 = vmatprep.subr.bf16.mxu1 %v2853_v2  ;;  %2874 = vmatprep.subr.bf16.mxu0 %v2873_v24  ;;  %v1289_v0 = vadd.f32 %v5077_v41, %v1145_v36  ;;  %v1290_v8 = vadd.f32 %v5077_v41, %v1146_v5 }
 0x179   : > { %2876 = vmatpush1.bf16.msra.mxu0 %v2875_v22  ;;  %v1286_v18 = vadd.f32 %v5083_v17, %v1142_v40  ;;  %v1287_v42 = vadd.f32 %v5083_v17, %v1143_v62  ;;  %v2857_v25 = vpack.c.bf16 %v5102_v59, %v5105_v33  ;;  %v1007_v50 = vmul.f32 %v4767_v23, %v6148_v15  ;;  %v5259_v59 = vld [vmem:[%s5634_s7 + $0x78] sm:$0xff]  ;;  %v6151_v33 = vld [vmem:[#allocation104_spill] sm:$0xff]  ;;  %v5276_v36 = vpop.permute.xlu0 %1244 }
 0x17a   : > { %1827 = vmatmul.mubr.f32.gmra.mrb[12].mxu1 %v5225_v46  ;;  %v1008_v12 = vmul.f32 %v4771_v54, %v6149_v7  ;;  %v1004_v14 = vmul.f32 %v4767_v23, %v6150_v9  ;;  %v5252_v52 = vadd.f32 %v4925_v49, %v1132_v20  ;;  %v1141_v51 = vmul.f32 %v4956_v19, %v997_v29  ;;  %v6152_v20 = vld [vmem:[#allocation102_spill] sm:$0xff]  ;;  %v6156_v15 = vld [vmem:[#allocation108_spill] sm:$0xff]  ;;  %v6158_v7 = vld [vmem:[#allocation31_spill] sm:$0xff] }
 0x17b   : > { %2856 = vmatpush3.bf16.msra.mxu1 %v2853_v2  ;;  %1832 = vmatprep.mubr.f32.mxu1 %v6127_v44  ;;  %v1005_v22 = vmul.f32 %v4771_v54, %v6151_v33  ;;  %v1138_v4 = vmul.f32 %v4961_v16, %v994_v45  ;;  %v1151_v57 = vmul.f32 %v5121_v43, %v1007_v50  ;;  %v5306_v33 = vpop.permute.xlu1 %1115 }
 0x17c   : > { %2858 = vmatprep.subr.bf16.mxu1 %v2857_v25  ;;  %v1152_v49 = vmul.f32 %v5121_v43, %v1008_v12  ;;  %v1148_v19 = vmul.f32 %v5133_v56, %v1004_v14  ;;  %v5273_v53 = vadd.f32 %v4988_v28, %v1141_v51  ;;  %v2879_v29 = vpack.c.bf16 %v1289_v0, %v1286_v18  ;;  %v6153_v0 = vld [vmem:[#allocation99_spill] sm:$0xff]  ;;  %v6155_v18 = vld [vmem:[#allocation40_spill] sm:$0xff] }
 0x17d   : > { %v1149_v2 = vmul.f32 %v5133_v56, %v1005_v22  ;;  %v2877_v16 = vpack.c.bf16 %v1290_v8, %v1287_v42  ;;  %1755 = vmatmul.mubr.f32.gmra.mrb[4].mxu0 %v1664_v13  ;;  %v2893_v24 = vpack.c.bf16 %v5146_v47, %v5187_v55  ;;  %v1295_v5 = vadd.f32 %v5171_v61, %v1151_v57  ;;  %v6154_v47 = vld [vmem:[#allocation38_spill] sm:$0xff] }
 0x17e   : > { %1833 = vmatmul.mubr.f32.gmra.mrb[14].mxu1 %v5259_v59  ;;  %v1296_v40 = vadd.f32 %v5171_v61, %v1152_v49  ;;  %v1292_v62 = vadd.f32 %v5180_v34, %v1148_v19  ;;  %v1282_v28 = vadd.f32 %v4994_v3, %v1138_v4  ;;  %v1003_v60 = vmul.f32 %v4789_v38, %v6152_v20  ;;  %v5314_v4 = vpop.permute.xlu0 %1110  ;;  %v6159_v19 = vld [vmem:[#allocation105_spill] sm:$0xff] }
 0x17f   : > { %2860 = vmatpush3.bf16.msra.mxu1 %v2857_v25  ;;  %2717 = vmatprep.mubr.f32.mxu1 %v5057_v6  ;;  %v1293_v45 = vadd.f32 %v5180_v34, %v1149_v2  ;;  %v1000_v8 = vmul.f32 %v4789_v38, %v6153_v0  ;;  %v1013_v55 = vmul.f32 %v4767_v23, %v6154_v47  ;;  %v6157_v6 = vld [vmem:[#allocation109_spill] sm:$0xff] }
 0x180   : > { %2894 = vmatprep.subr.bf16.mxu1 %v2893_v24  ;;  %2878 = vmatprep.subr.bf16.mxu0 %v2877_v16  ;;  %v1014_v42 = vmul.f32 %v4771_v54, %v6155_v18  ;;  %v2897_v3 = vpack.c.bf16 %v5190_v11, %v5201_v32  ;;  %v1009_v25 = vmul.f32 %v4789_v38, %v6156_v15  ;;  %v1665_v11 = vld [vmem:[%s5634_s7 + $0x18] sm:$0xff]  ;;  %v6161_v0 = vld [vmem:[#allocation57_spill] sm:$0xff] }
 0x181   : > { %2880 = vmatpush1.bf16.msra.mxu0 %v2879_v29  ;;  %v1010_v50 = vmul.f32 %v4767_v23, %v6157_v6  ;;  %v1011_v12 = vmul.f32 %v4771_v54, %v6158_v7  ;;  %v2883_v9 = vpack.c.bf16 %v1295_v5, %v1292_v62  ;;  %v1157_v14 = vmul.f32 %v5219_v58, %v1013_v55  ;;  %v1666_v29 = vld [vmem:[%s5634_s7 + $0x20] sm:$0xff]  ;;  %v1260_v55 = vpop.permute.xlu1 %1259  ;;  %v1669_v7 = vld [vmem:[%s5634_s7 + $0x38] sm:$0xff] }
 0x182   : > { %2718 = vmatmul.mubr.f32.vlgmr.msra.gmra.mrb[16].mxu1 %v5169_v10  ;;  %1760 = vmatprep.mubr.f32.mxu0 %v6127_v44  ;;  %v2881_v51 = vpack.c.bf16 %v1296_v40, %v1293_v45  ;;  %v1158_v32 = vmul.f32 %v5219_v58, %v1014_v42  ;;  %v1147_v57 = vmul.f32 %v5024_v26, %v1003_v60  ;;  %v6160_v40 = vld [vmem:[#allocation55_spill] sm:$0xff]  ;;  %v1667_v45 = vld [vmem:[%s5634_s7 + $0x28] sm:$0xff]  ;;  %v1255_v15 = vpop.permute.xlu0 %1254 }
 0x183   : > { %2896 = vmatpush3.bf16.msra.mxu1 %v2893_v24  ;;  %2720 = vmatprep.mubr.f32.mxu1 %v1664_v13  ;;  %v1154_v22 = vmul.f32 %v5230_v21, %v1010_v50  ;;  %v1155_v10 = vmul.f32 %v5230_v21, %v1011_v12  ;;  %v1144_v49 = vmul.f32 %v5034_v1, %v1000_v8 }
 0x184   : > { %2898 = vmatprep.subr.bf16.mxu1 %v2897_v3  ;;  %v1006_v13 = vmul.f32 %v4789_v38, %v6159_v19  ;;  %1761 = vmatmul.mubr.f32.gmra.mrb[6].mxu0 %v1665_v11  ;;  %v1301_v2 = vadd.f32 %v5270_v31, %v1157_v14  ;;  %v1302_v16 = vadd.f32 %v5270_v31, %v1158_v32 }
 0x185   : > { %2882 = vmatprep.subr.bf16.mxu0 %v2881_v51  ;;  %v1298_v24 = vadd.f32 %v5276_v36, %v1154_v22  ;;  %v1299_v26 = vadd.f32 %v5276_v36, %v1155_v10  ;;  %v1291_v1 = vadd.f32 %v5077_v41, %v1147_v57  ;;  %v2901_v5 = vpack.c.bf16 %v5234_v63, %v5252_v52  ;;  %v1668_v63 = vld [vmem:[%s5634_s7 + $0x30] sm:$0xff]  ;;  %v6163_v52 = vld [vmem:[#allocation48_spill] sm:$0xff] }
 0x186   : > { %2721 = vmatmul.mubr.f32.gmra.mrb[18].mxu1 %v1665_v11  ;;  %2884 = vmatpush1.bf16.msra.mxu0 %v2883_v9  ;;  %v1019_v62 = vmul.f32 %v4767_v23, %v6160_v40  ;;  %v1288_v20 = vadd.f32 %v5083_v17, %v1144_v49  ;;  %v1153_v60 = vmul.f32 %v5121_v43, %v1009_v25  ;;  %v6162_v17 = vld [vmem:[#allocation110_spill] sm:$0xff]  ;;  %v6166_v10 = vld [vmem:[#allocation60_spill] sm:$0xff]  ;;  %v6167_v49 = vld [vmem:[#allocation51_spill] sm:$0xff] }
 0x187   : > { %2900 = vmatpush3.bf16.msra.mxu1 %v2897_v3  ;;  %2723 = vmatprep.mubr.f32.mxu1 %v1666_v29  ;;  %v1020_v41 = vmul.f32 %v4771_v54, %v6161_v0  ;;  %v1150_v8 = vmul.f32 %v5133_v56, %v1006_v13  ;;  %v1016_v43 = vmul.f32 %v4767_v23, %v6162_v17  ;;  %v6164_v23 = vld [vmem:[#allocation43_spill] sm:$0xff] }
 0x188   : > { %2902 = vmatprep.subr.bf16.mxu1 %v2901_v5  ;;  %1766 = vmatprep.mubr.f32.mxu0 %v6127_v44  ;;  %v1017_v47 = vmul.f32 %v4771_v54, %v6163_v52  ;;  %v2905_v18 = vpack.c.bf16 %v5273_v53, %v1282_v28  ;;  %v2887_v42 = vpack.c.bf16 %v1301_v2, %v1298_v24  ;;  %v6165_v53 = vld [vmem:[#allocation34_spill] sm:$0xff]  ;;  %v1658_v40 = vld [vmem:[%s5633_s6 + $0x60] sm:$0xff] }
 0x189   : > { %1767 = vmatmul.mubr.f32.gmra.mrb[8].mxu0 %v1666_v29  ;;  %v1164_v56 = vmul.f32 %v5306_v33, %v1020_v41  ;;  %v2885_v3 = vpack.c.bf16 %v1302_v16, %v1299_v26  ;;  %v1163_v25 = vmul.f32 %v5306_v33, %v1019_v62  ;;  %v1160_v6 = vmul.f32 %v5314_v4, %v1016_v43  ;;  %v1655_v26 = vld [vmem:[%s5633_s6 + $0x48] sm:$0xff] }
 0x18a   : > { %2724 = vmatmul.mubr.f32.gmra.mrb[20].mxu1 %v1667_v45  ;;  %v1161_v50 = vmul.f32 %v5314_v4, %v1017_v47  ;;  %1772 = vmatprep.mubr.f32.mxu0 %v6127_v44  ;;  %v1015_v54 = vmul.f32 %v4789_v38, %v6164_v23  ;;  %v1012_v28 = vmul.f32 %v4789_v38, %v6165_v53  ;;  %v1659_v62 = vld [vmem:[%s5633_s6 + $0x68] sm:$0xff] }
 0x18b   : > { %2904 = vmatpush3.bf16.msra.mxu1 %v2901_v5  ;;  %2726 = vmatprep.mubr.f32.mxu1 %v1668_v63  ;;  %v1308_v12 = vadd.f32 %v1260_v55, %v1164_v56  ;;  %v1307_v9 = vadd.f32 %v1260_v55, %v1163_v25  ;;  %v1304_v14 = vadd.f32 %v1255_v15, %v1160_v6  ;;  %v1657_v5 = vld [vmem:[%s5633_s6 + $0x58] sm:$0xff]  ;;  %v2314_v25 = vpop.permute.xlu1 %2313  ;;  %v2309_v6 = vpop.permute.xlu0 %2308 }
 0x18c   : > { %2906 = vmatprep.subr.bf16.mxu1 %v2905_v18  ;;  %2886 = vmatprep.subr.bf16.mxu0 %v2885_v3  ;;  %v1305_v51 = vadd.f32 %v1255_v15, %v1161_v50  ;;  %v1297_v11 = vadd.f32 %v5171_v61, %v1153_v60  ;;  %v1294_v32 = vadd.f32 %v5180_v34, %v1150_v8  ;;  %v1661_v60 = vld [vmem:[%s5633_s6 + $0x78] sm:$0xff] }
 0x18d   : > { %v2909_v22 = vpack.c.bf16 %v1291_v1, %v1288_v20  ;;  %1773 = vmatmul.mubr.f32.gmra.mrb[10].mxu0 %v1667_v45  ;;  %v1021_v57 = vmul.f32 %v4789_v38, %v6166_v10  ;;  %v1018_v19 = vmul.f32 %v4789_v38, %v6167_v49  ;;  %v1159_v29 = vmul.f32 %v5219_v58, %v1015_v54  ;;  %v1656_v1 = vld [vmem:[%s5633_s6 + $0x50] sm:$0xff] }
 0x18e   : > { %2727 = vmatmul.mubr.f32.gmra.mrb[22].mxu1 %v1669_v7  ;;  %2888 = vmatpush1.bf16.msra.mxu0 %v2887_v42  ;;  %v2889_v13 = vpack.c.bf16 %v1308_v12, %v1305_v51  ;;  %v1156_v2 = vmul.f32 %v5230_v21, %v1012_v28  ;;  %v2891_v61 = vpack.c.bf16 %v1307_v9, %v1304_v14  ;;  %v1660_v20 = vld [vmem:[%s5633_s6 + $0x70] sm:$0xff] }
 0x18f   : > { %2908 = vmatpush3.bf16.msra.mxu1 %v2905_v18  ;;  %2729 = vmatprep.mubr.f32.mxu1 %v5032_v30  ;;  %v1303_v34 = vadd.f32 %v5270_v31, %v1159_v29  ;;  %v2913_v38 = vpack.c.bf16 %v1297_v11, %v1294_v32  ;;  %v1165_v58 = vmul.f32 %v5306_v33, %v1021_v57  ;;  %v1653_v33 = vld [vmem:[%s5633_s6 + $0x38] sm:$0xff]  ;;  %v2324_v50 = vpop.permute.xlu1 %2323  ;;  %v2319_v28 = vpop.permute.xlu0 %2318 }
 0x190   : > { %2910 = vmatprep.subr.bf16.mxu1 %v2909_v22  ;;  %1778 = vmatprep.mubr.f32.mxu0 %v6127_v44  ;;  %v1300_v16 = vadd.f32 %v5276_v36, %v1156_v2  ;;  %v1162_v21 = vmul.f32 %v5314_v4, %v1018_v19  ;;  %v1654_v4 = vld [vmem:[%s5633_s6 + $0x40] sm:$0xff] }
 0x191   : > { %1779 = vmatmul.mubr.f32.gmra.mrb[12].mxu0 %v1668_v63  ;;  %2890 = vmatprep.subr.bf16.mxu0 %v2889_v13  ;;  %v1309_v30 = vadd.f32 %v1260_v55, %v1165_v58 }
 0x192   : > { %2730 = vmatmul.mubr.f32.gmra.mrb[24].mxu1 %v5070_v27  ;;  %1784 = vmatprep.mubr.f32.mxu0 %v6127_v44  ;;  %v1306_v24 = vadd.f32 %v1255_v15, %v1162_v21  ;;  %v2917_v31 = vpack.c.bf16 %v1303_v34, %v1300_v16  ;;  %v1646_v27 = vld [vmem:[%s5633_s6] sm:$0xff] }
 0x193   : > { %2912 = vmatpush3.bf16.msra.mxu1 %v2909_v22  ;;  %2732 = vmatprep.mubr.f32.mxu1 %v5095_v39  ;;  %v1647_v39 = vld [vmem:[%s5633_s6 + $0x8] sm:$0xff]  ;;  %v2334_v51 = vpop.permute.xlu1 %2333  ;;  %v2329_v32 = vpop.permute.xlu0 %2328 }
 0x194   : > { %2914 = vmatprep.subr.bf16.mxu1 %v2913_v38  ;;  %2892 = vmatpush1.bf16.msra.mxu0 %v2891_v61  ;;  %v2921_v36 = vpack.c.bf16 %v1309_v30, %v1306_v24 }
 0x195   : > { %1785 = vmatmul.mubr.f32.gmra.mrb[14].mxu0 %v1669_v7 }
 0x196   : > { %2733 = vmatmul.mubr.f32.gmra.mrb[26].mxu1 %v5130_v37  ;;  %2048 = vmatprep.mubr.f32.mxu0 %v6127_v44  ;;  %v1648_v37 = vld [vmem:[%s5633_s6 + $0x10] sm:$0xff] }
 0x197   : > { %2916 = vmatpush3.bf16.msra.mxu1 %v2913_v38  ;;  %2735 = vmatprep.mubr.f32.mxu1 %v5160_v35  ;;  %v1649_v35 = vld [vmem:[%s5633_s6 + $0x18] sm:$0xff]  ;;  %v5487_v61 = vpop.permute.xlu1 %2343  ;;  %v2339_v21 = vpop.permute.xlu0 %2338 }
 0x198   : > { %2918 = vmatprep.subr.bf16.mxu1 %v2917_v31 }
 0x199   : > { %2049 = vmatmul.mubr.f32.vlgmr.msra.gmra.mrb[0].mxu0 %v1646_v27 }
 0x19a   : > { %2736 = vmatmul.mubr.f32.gmra.mrb[28].mxu1 %v5196_v48  ;;  %2054 = vmatprep.mubr.f32.mxu0 %v6127_v44  ;;  %v1650_v48 = vld [vmem:[%s5633_s6 + $0x20] sm:$0xff] }
 0x19b   : > { %2920 = vmatpush3.bf16.msra.mxu1 %v2917_v31  ;;  %2738 = vmatprep.mubr.f32.mxu1 %v5225_v46  ;;  %v1651_v46 = vld [vmem:[%s5633_s6 + $0x28] sm:$0xff] }
 0x19c   : > { %2922 = vmatprep.subr.bf16.mxu1 %v2921_v36 }
 0x19d   : > { %2055 = vmatmul.mubr.f32.gmra.mrb[2].mxu0 %v1647_v39 }
 0x19e   : > { %2739 = vmatmul.mubr.f32.gmra.mrb[30].mxu1 %v5259_v59  ;;  %2060 = vmatprep.mubr.f32.mxu0 %v6127_v44  ;;  %v1652_v59 = vld [vmem:[%s5633_s6 + $0x30] sm:$0xff] }
 0x19f   : > { %2924 = vmatpush3.bf16.msra.mxu1 %v2921_v36  ;;  %2773 = vmatprep.mubr.f32.mxu1 %v1646_v27 }
 0x1a1   : > { %2061 = vmatmul.mubr.f32.gmra.mrb[4].mxu0 %v1648_v37 }
 0x1a2   : > { %2774 = vmatmul.mubr.f32.vlgmr.msra.gmra.mrb[16].mxu1 %v1647_v39  ;;  %2066 = vmatprep.mubr.f32.mxu0 %v6127_v44 }
 0x1a3   : > { %2776 = vmatprep.mubr.f32.mxu1 %v1648_v37 }
 0x1a5   : > { %2067 = vmatmul.mubr.f32.gmra.mrb[6].mxu0 %v1649_v35 }
 0x1a6   : > { %2777 = vmatmul.mubr.f32.gmra.mrb[18].mxu1 %v1649_v35  ;;  %2072 = vmatprep.mubr.f32.mxu0 %v6127_v44 }
 0x1a7   : > { %2779 = vmatprep.mubr.f32.mxu1 %v1650_v48 }
 0x1a9   : > { %2073 = vmatmul.mubr.f32.gmra.mrb[8].mxu0 %v1650_v48  ;;  %v5496_v48 = vpop.permute.xlu1 %2353 }
 0x1aa   : > { %2780 = vmatmul.mubr.f32.gmra.mrb[20].mxu1 %v1651_v46  ;;  %2078 = vmatprep.mubr.f32.mxu0 %v6127_v44 }
 0x1ab   : > { %2782 = vmatprep.mubr.f32.mxu1 %v1652_v59 }
 0x1ad   : > { %2079 = vmatmul.mubr.f32.gmra.mrb[10].mxu0 %v1651_v46 }
 0x1ae   : > { %2783 = vmatmul.mubr.f32.gmra.mrb[22].mxu1 %v1653_v33  ;;  %2084 = vmatprep.mubr.f32.mxu0 %v6127_v44 }
 0x1af   : > { %2785 = vmatprep.mubr.f32.mxu1 %v1654_v4 }
 0x1b1   : > { %2085 = vmatmul.mubr.f32.gmra.mrb[12].mxu0 %v1652_v59 }
 0x1b2   : > { %2786 = vmatmul.mubr.f32.gmra.mrb[24].mxu1 %v1655_v26  ;;  %2090 = vmatprep.mubr.f32.mxu0 %v6127_v44 }
 0x1b3   : > { %2788 = vmatprep.mubr.f32.mxu1 %v1656_v1 }
 0x1b5   : > { %2091 = vmatmul.mubr.f32.gmra.mrb[14].mxu0 %v1653_v33 }
 0x1b6   : > { %2789 = vmatmul.mubr.f32.gmra.mrb[26].mxu1 %v1657_v5  ;;  %2096 = vmatprep.mubr.f32.mxu0 %v6127_v44 }
 0x1b7   : > { %2791 = vmatprep.mubr.f32.mxu1 %v1658_v40 }
 0x1b9   : > { %2097 = vmatmul.mubr.f32.gmra.mrb[16].mxu0 %v1654_v4 }
 0x1ba   : > { %2792 = vmatmul.mubr.f32.gmra.mrb[28].mxu1 %v1659_v62  ;;  %2102 = vmatprep.mubr.f32.mxu0 %v6127_v44 }
 0x1bb   : > { %2794 = vmatprep.mubr.f32.mxu1 %v1660_v20 }
 0x1bd   : > { %2103 = vmatmul.mubr.f32.gmra.mrb[18].mxu0 %v1655_v26  ;;  %v2349_v26 = vpop.permute.xlu0 %2348 }
 0x1be   : > { %2795 = vmatmul.mubr.f32.gmra.mrb[30].mxu1 %v1661_v60  ;;  %2108 = vmatprep.mubr.f32.mxu0 %v6127_v44 }
 0x1c1   : > { %2109 = vmatmul.mubr.f32.gmra.mrb[20].mxu0 %v1656_v1 }
 0x1c2   : > { %2114 = vmatprep.mubr.f32.mxu0 %v6127_v44 }
 0x1c5   : > { %2115 = vmatmul.mubr.f32.gmra.mrb[22].mxu0 %v1657_v5 }
 0x1c6   : > { %2120 = vmatprep.mubr.f32.mxu0 %v6127_v44 }
 0x1c9   : > { %2121 = vmatmul.mubr.f32.gmra.mrb[24].mxu0 %v1658_v40 }
 0x1ca   : > { %2126 = vmatprep.mubr.f32.mxu0 %v6127_v44 }
 0x1cd   : > { %2127 = vmatmul.mubr.f32.gmra.mrb[26].mxu0 %v1659_v62 }
 0x1ce   : > { %2132 = vmatprep.mubr.f32.mxu0 %v6127_v44 }
 0x1d1   : > { %2133 = vmatmul.mubr.f32.gmra.mrb[28].mxu0 %v1660_v20 }
 0x1d2   : > { %2138 = vmatprep.mubr.f32.mxu0 %v6127_v44 }
 0x1d5   : > { %2139 = vmatmul.mubr.f32.gmra.mrb[30].mxu0 %v1661_v60 }
 0x235   : > { %v5447_v45 = vpop.f32.mrb[0].mxu1 }
 0x236   : > { %v5449_v0 = vpop.f32.mrb[1].mxu1 }
 0x239   : > { %v5451_v41 = vpop.f32.mrb[2].mxu1 }
 0x23a   : > { %v5453_v8 = vpop.f32.mrb[3].mxu1 }
 0x23d   : > { %v5455_v63 = vpop.f32.mrb[4].mxu1 }
 0x23e   : > { %v5457_v17 = vpop.f32.mrb[5].mxu1 }
 0x241   : > { %v5459_v43 = vpop.f32.mrb[6].mxu1 }
 0x242   : > { %v5461_v52 = vpop.f32.mrb[7].mxu1 }
 0x245   : > { %v5463_v47 = vpop.f32.mrb[8].mxu1 }
 0x246   : > { %v5465_v44 = vpop.f32.mrb[9].mxu1 }
 0x249   : > { %v5467_v55 = vpop.f32.mrb[10].mxu1 }
 0x24a   : > { %v5469_v18 = vpop.f32.mrb[11].mxu1 }
 0x24d   : > { %v5471_v42 = vpop.f32.mrb[12].mxu1 }
 0x24e   : > { %v5473_v56 = vpop.f32.mrb[13].mxu1 }
 0x251   : > { %v5475_v3 = vpop.f32.mrb[14].mxu1 }
 0x252   : > { %v5477_v15 = vpop.f32.mrb[15].mxu1 }
 0x26c   : > { %v2050_v23 = vpop.f32.mrb[0].mxu0 }
 0x26d   : > { %v2386_v54 = vadd.f32 %v2309_v6, %v2050_v23  ;;  %v2052_v53 = vpop.f32.mrb[1].mxu0 }
 0x26e   : > { %v2387_v7 = vadd.f32 %v2309_v6, %v2052_v53 }
 0x26f   : > { %2434 = vst [vmem:[%s5480_s20] sm:$0xff] %v2386_v54 }
 0x270   : > { %2435 = vst [vmem:[%s5480_s20 + $0x8] sm:$0xff] %v2387_v7  ;;  %v2056_v12 = vpop.f32.mrb[2].mxu0  ;;  %v2359_v7 = vpop.permute.xlu0 %2358 }
 0x271   : > { %v2389_v9 = vadd.f32 %v2314_v25, %v2056_v12  ;;  %v2058_v14 = vpop.f32.mrb[3].mxu0 }
 0x272   : > { %v2390_v11 = vadd.f32 %v2314_v25, %v2058_v14 }
 0x273   : > { %2437 = vst [vmem:[%s5480_s20 + $0x18] sm:$0xff] %v2389_v9 }
 0x274   : > { %2438 = vst [vmem:[%s5480_s20 + $0x20] sm:$0xff] %v2390_v11  ;;  %v2062_v22 = vpop.f32.mrb[4].mxu0 }
 0x275   : > { %v2775_v10 = vpop.f32.mrb[16].mxu1  ;;  %v2392_v57 = vadd.f32 %v2319_v28, %v2062_v22  ;;  %v2064_v49 = vpop.f32.mrb[5].mxu0 }
 0x276   : > { %v2391_v19 = vadd.f32 %v2775_v10, %v2314_v25  ;;  %v2211_v13 = vpop.f32.mrb[17].mxu1  ;;  %v2393_v29 = vadd.f32 %v2319_v28, %v2064_v49 }
 0x277   : > { %v2388_v2 = vadd.f32 %v2309_v6, %v2211_v13  ;;  %2440 = vst [vmem:[%s5480_s20 + $0x30] sm:$0xff] %v2392_v57 }
 0x278   : > { %2439 = vst [vmem:[%s5480_s20 + $0x28] sm:$0xff] %v2391_v19  ;;  %2441 = vst [vmem:[%s5480_s20 + $0x38] sm:$0xff] %v2393_v29  ;;  %v2068_v34 = vpop.f32.mrb[6].mxu0 }
 0x279   : > { %2436 = vst [vmem:[%s5480_s20 + $0x10] sm:$0xff] %v2388_v2  ;;  %v2778_v16 = vpop.f32.mrb[18].mxu1  ;;  %v2395_v38 = vadd.f32 %v2324_v50, %v2068_v34  ;;  %v2070_v58 = vpop.f32.mrb[7].mxu0 }
 0x27a   : > { %v2397_v30 = vadd.f32 %v2778_v16, %v2324_v50  ;;  %v2221_v24 = vpop.f32.mrb[19].mxu1  ;;  %v2396_v31 = vadd.f32 %v2324_v50, %v2070_v58  ;;  %v5504_v50 = vpop.permute.xlu1 %2363 }
 0x27b   : > { %v2394_v27 = vadd.f32 %v2319_v28, %v2221_v24  ;;  %2443 = vst [vmem:[%s5480_s20 + $0x48] sm:$0xff] %v2395_v38  ;;  %v2369_v2 = vpop.permute.xlu0 %2368 }
 0x27c   : > { %2445 = vst [vmem:[%s5480_s20 + $0x58] sm:$0xff] %v2397_v30  ;;  %2444 = vst [vmem:[%s5480_s20 + $0x50] sm:$0xff] %v2396_v31  ;;  %v2074_v36 = vpop.f32.mrb[8].mxu0 }
 0x27d   : > { %2442 = vst [vmem:[%s5480_s20 + $0x40] sm:$0xff] %v2394_v27  ;;  %v2781_v39 = vpop.f32.mrb[20].mxu1  ;;  %v2398_v37 = vadd.f32 %v2329_v32, %v2074_v36  ;;  %v2076_v35 = vpop.f32.mrb[9].mxu0 }
 0x27e   : > { %v2403_v46 = vadd.f32 %v2781_v39, %v2334_v51  ;;  %v2231_v59 = vpop.f32.mrb[21].mxu1  ;;  %v2399_v33 = vadd.f32 %v2329_v32, %v2076_v35  ;;  %v5515_v57 = vpop.permute.xlu1 %2373 }
 0x27f   : > { %v2400_v4 = vadd.f32 %v2329_v32, %v2231_v59  ;;  %2446 = vst [vmem:[%s5480_s20 + $0x60] sm:$0xff] %v2398_v37 }
 0x280   : > { %2451 = vst [vmem:[%s5480_s20 + $0x88] sm:$0xff] %v2403_v46  ;;  %2447 = vst [vmem:[%s5480_s20 + $0x68] sm:$0xff] %v2399_v33  ;;  %v2080_v1 = vpop.f32.mrb[10].mxu0  ;;  %v2379_v46 = vpop.permute.xlu0 %2378 }
 0x281   : > { %2448 = vst [vmem:[%s5480_s20 + $0x70] sm:$0xff] %v2400_v4  ;;  %v2784_v5 = vpop.f32.mrb[22].mxu1  ;;  %v2401_v40 = vadd.f32 %v2334_v51, %v2080_v1  ;;  %v2082_v62 = vpop.f32.mrb[11].mxu0 }
 0x282   : > { %v2409_v20 = vadd.f32 %v2784_v5, %v5487_v61  ;;  %v2241_v60 = vpop.f32.mrb[23].mxu1  ;;  %v2402_v25 = vadd.f32 %v2334_v51, %v2082_v62  ;;  %v5526_v27 = vpop.permute.xlu1 %2383 }
 0x283   : > { %v2406_v6 = vadd.f32 %v2339_v21, %v2241_v60  ;;  %2449 = vst [vmem:[%s5480_s20 + $0x78] sm:$0xff] %v2401_v40 }
 0x284   : > { %2457 = vst [vmem:[%s5480_s20 + $0xb8] sm:$0xff] %v2409_v20  ;;  %2450 = vst [vmem:[%s5480_s20 + $0x80] sm:$0xff] %v2402_v25  ;;  %v2086_v23 = vpop.f32.mrb[12].mxu0 }
 0x285   : > { %2454 = vst [vmem:[%s5480_s20 + $0xa0] sm:$0xff] %v2406_v6  ;;  %v2787_v54 = vpop.f32.mrb[24].mxu1  ;;  %v2404_v53 = vadd.f32 %v2339_v21, %v2086_v23  ;;  %v2088_v28 = vpop.f32.mrb[13].mxu0 }
 0x286   : > { %v2415_v12 = vadd.f32 %v2787_v54, %v5496_v48  ;;  %v2251_v9 = vpop.f32.mrb[25].mxu1  ;;  %v2405_v14 = vadd.f32 %v2339_v21, %v2088_v28 }
 0x287   : > { %v2412_v51 = vadd.f32 %v2349_v26, %v2251_v9  ;;  %2452 = vst [vmem:[%s5480_s20 + $0x90] sm:$0xff] %v2404_v53 }
 0x288   : > { %2463 = vst [vmem:[%s5480_s20 + $0xe8] sm:$0xff] %v2415_v12  ;;  %2453 = vst [vmem:[%s5480_s20 + $0x98] sm:$0xff] %v2405_v14  ;;  %v2092_v11 = vpop.f32.mrb[14].mxu0 }
 0x289   : > { %2460 = vst [vmem:[%s5480_s20 + $0xd0] sm:$0xff] %v2412_v51  ;;  %v2790_v32 = vpop.f32.mrb[26].mxu1  ;;  %v2407_v22 = vadd.f32 %v5487_v61, %v2092_v11  ;;  %v2094_v10 = vpop.f32.mrb[15].mxu0 }
 0x28a   : > { %v2421_v49 = vadd.f32 %v2790_v32, %v5504_v50  ;;  %v2261_v19 = vpop.f32.mrb[27].mxu1  ;;  %v2408_v13 = vadd.f32 %v5487_v61, %v2094_v10 }
 0x28b   : > { %v2418_v29 = vadd.f32 %v2359_v7, %v2261_v19  ;;  %2455 = vst [vmem:[%s5480_s20 + $0xa8] sm:$0xff] %v2407_v22 }
 0x28c   : > { %2469 = vst [vmem:[%s5480_s20 + $0x118] sm:$0xff] %v2421_v49  ;;  %2456 = vst [vmem:[%s5480_s20 + $0xb0] sm:$0xff] %v2408_v13  ;;  %v2098_v34 = vpop.f32.mrb[16].mxu0 }
 0x28d   : > { %2466 = vst [vmem:[%s5480_s20 + $0x100] sm:$0xff] %v2418_v29  ;;  %v2793_v16 = vpop.f32.mrb[28].mxu1  ;;  %v2099_v38 = vadd.f32 %v2098_v34, %v5447_v45  ;;  %v2100_v58 = vpop.f32.mrb[17].mxu0 }
 0x28e   : > { %v2427_v21 = vadd.f32 %v2793_v16, %v5515_v57  ;;  %v2271_v30 = vpop.f32.mrb[29].mxu1  ;;  %v2101_v61 = vadd.f32 %v2100_v58, %v5449_v0 }
 0x28f   : > { %v2424_v24 = vadd.f32 %v2369_v2, %v2271_v30  ;;  %v2410_v31 = vadd.f32 %v2349_v26, %v2099_v38 }
 0x290   : > { %2475 = vst [vmem:[%s5480_s20 + $0x148] sm:$0xff] %v2427_v21  ;;  %v2411_v36 = vadd.f32 %v2349_v26, %v2101_v61  ;;  %v2104_v39 = vpop.f32.mrb[18].mxu0 }
 0x291   : > { %2472 = vst [vmem:[%s5480_s20 + $0x130] sm:$0xff] %v2424_v24  ;;  %v2796_v37 = vpop.f32.mrb[30].mxu1  ;;  %2458 = vst [vmem:[%s5480_s20 + $0xc0] sm:$0xff] %v2410_v31  ;;  %v2105_v45 = vadd.f32 %v2104_v39, %v5451_v41  ;;  %v2106_v35 = vpop.f32.mrb[19].mxu0 }
 0x292   : > { %v2433_v0 = vadd.f32 %v2796_v37, %v5526_v27  ;;  %v2281_v59 = vpop.f32.mrb[31].mxu1  ;;  %2459 = vst [vmem:[%s5480_s20 + $0xc8] sm:$0xff] %v2411_v36  ;;  %v2107_v33 = vadd.f32 %v2106_v35, %v5453_v8 }
 0x293   : > { %v2430_v4 = vadd.f32 %v2379_v46, %v2281_v59  ;;  %v2413_v26 = vadd.f32 %v5496_v48, %v2105_v45 }
 0x294   : > { %2481 = vst [vmem:[%s5480_s20 + $0x178] sm:$0xff] %v2433_v0  ;;  %v2414_v1 = vadd.f32 %v5496_v48, %v2107_v33  ;;  %v2110_v5 = vpop.f32.mrb[20].mxu0 }
 0x295   : > { %2478 = vst [vmem:[%s5480_s20 + $0x160] sm:$0xff] %v2430_v4  ;;  %2461 = vst [vmem:[%s5480_s20 + $0xd8] sm:$0xff] %v2413_v26  ;;  %v2111_v41 = vadd.f32 %v2110_v5, %v5455_v63  ;;  %v2112_v40 = vpop.f32.mrb[21].mxu0 }
 0x296   : > { %2462 = vst [vmem:[%s5480_s20 + $0xe0] sm:$0xff] %v2414_v1  ;;  %v2113_v62 = vadd.f32 %v2112_v40, %v5457_v17 }
 0x297   : > { %v2416_v20 = vadd.f32 %v2359_v7, %v2111_v41 }
 0x298   : > { %v2417_v8 = vadd.f32 %v2359_v7, %v2113_v62  ;;  %v2116_v60 = vpop.f32.mrb[22].mxu0 }
 0x299   : > { %2464 = vst [vmem:[%s5480_s20 + $0xf0] sm:$0xff] %v2416_v20  ;;  %v2117_v25 = vadd.f32 %v2116_v60, %v5459_v43  ;;  %v2118_v6 = vpop.f32.mrb[23].mxu0 }
 0x29a   : > { %2465 = vst [vmem:[%s5480_s20 + $0xf8] sm:$0xff] %v2417_v8  ;;  %v2119_v48 = vadd.f32 %v2118_v6, %v5461_v52 }
 0x29b   : > { %v2419_v23 = vadd.f32 %v5504_v50, %v2117_v25 }
 0x29c   : > { %v2420_v63 = vadd.f32 %v5504_v50, %v2119_v48  ;;  %v2122_v54 = vpop.f32.mrb[24].mxu0 }
 0x29d   : > { %2467 = vst [vmem:[%s5480_s20 + $0x108] sm:$0xff] %v2419_v23  ;;  %v2123_v17 = vadd.f32 %v2122_v54, %v5463_v47  ;;  %v2124_v53 = vpop.f32.mrb[25].mxu0 }
 0x29e   : > { %2468 = vst [vmem:[%s5480_s20 + $0x110] sm:$0xff] %v2420_v63  ;;  %v2125_v28 = vadd.f32 %v2124_v53, %v5465_v44 }
 0x29f   : > { %v2422_v43 = vadd.f32 %v2369_v2, %v2123_v17 }
 0x2a0   : > { %v2423_v7 = vadd.f32 %v2369_v2, %v2125_v28  ;;  %v2128_v12 = vpop.f32.mrb[26].mxu0 }
 0x2a1   : > { %2470 = vst [vmem:[%s5480_s20 + $0x120] sm:$0xff] %v2422_v43  ;;  %v2129_v52 = vadd.f32 %v2128_v12, %v5467_v55  ;;  %v2130_v9 = vpop.f32.mrb[27].mxu0 }
 0x2a2   : > { %2471 = vst [vmem:[%s5480_s20 + $0x128] sm:$0xff] %v2423_v7  ;;  %v2131_v50 = vadd.f32 %v2130_v9, %v5469_v18 }
 0x2a3   : > { %v2425_v47 = vadd.f32 %v5515_v57, %v2129_v52 }
 0x2a4   : > { %v2426_v14 = vadd.f32 %v5515_v57, %v2131_v50  ;;  %v2134_v51 = vpop.f32.mrb[28].mxu0 }
 0x2a5   : > { %2473 = vst [vmem:[%s5480_s20 + $0x138] sm:$0xff] %v2425_v47  ;;  %v2135_v44 = vadd.f32 %v2134_v51, %v5471_v42  ;;  %v2136_v11 = vpop.f32.mrb[29].mxu0 }
 0x2a6   : > { %2474 = vst [vmem:[%s5480_s20 + $0x140] sm:$0xff] %v2426_v14  ;;  %v2137_v55 = vadd.f32 %v2136_v11, %v5473_v56 }
 0x2a7   : > { %v2428_v32 = vadd.f32 %v2379_v46, %v2135_v44 }
 0x2a8   : > { %v2429_v18 = vadd.f32 %v2379_v46, %v2137_v55  ;;  %v2140_v22 = vpop.f32.mrb[30].mxu0 }
 0x2a9   : > { %2476 = vst [vmem:[%s5480_s20 + $0x150] sm:$0xff] %v2428_v32  ;;  %v2141_v10 = vadd.f32 %v2140_v22, %v5475_v3  ;;  %v2142_v57 = vpop.f32.mrb[31].mxu0 }
 0x2aa   : > { %2477 = vst [vmem:[%s5480_s20 + $0x158] sm:$0xff] %v2429_v18  ;;  %v2143_v42 = vadd.f32 %v2142_v57, %v5477_v15 }
 0x2ab   : > { %v2431_v49 = vadd.f32 %v5526_v27, %v2141_v10 }
 0x2ac   : > { %v2432_v56 = vadd.f32 %v5526_v27, %v2143_v42 }
 0x2ad   : > { %2479 = vst [vmem:[%s5480_s20 + $0x168] sm:$0xff] %v2431_v49 }
 0x2ae   : > { %2480 = vst [vmem:[%s5480_s20 + $0x170] sm:$0xff] %v2432_v56 }
 0x2af   : > { %3149 = shalt.err (!%p3146_p11)
}
 0x2b0   : > { %s3150_s0 = scalar_lea.hbm %s5573_s23, 6144  ;;  %s3154_s21 = scalar_lea.hbm %s5636_s9, 12288 }
 0x2b1   : > { %p3151_p1 = scmp.ne.s32.totalorder %s5573_s23, %s3150_s0  ;;  %p3155_p4 = scmp.lt.u32.totalorder %s5573_s23, %s5636_s9 }
 0x2b2   : > { %p3156_p6 = scmp.lt.u32.totalorder %s3154_s21, %s3150_s0  ;;  %p3158_p0 = scmp.lt.u32.totalorder %s3150_s0, %s5573_s23 }
 0x2b3   : > { %p3152_p5 = pnand %p3151_p1, %p6168_p3 }
 0x2b4   : > { %p3157_p8 = por %p3156_p6, %p3155_p4 }
 0x2b5   : > { %p3153_p2 = pneg %p3152_p5 }
 0x2b6   : > { %p3159_p12 = por %p3158_p0, %p3157_p8 }
 0x2b8   : > { %p3160_p13 = pnand %p3159_p12, %p3153_p2 }
 0x2ba   : > { %3163 = shalt.err (!%p3160_p13)
}
 0x2bb   : > { %s3231_s18 = smov 384   ;;  %s3232_s25 = smov 24  }
 0x2bc   : > { %2999 = dma.vmem_to_hbm [thread:$0]  (%p6168_p3), %s5576_s28, 6144, %s5573_s23, %s2483_s12, %s3231_s18, %s3231_s18, %s3232_s25  }
 0x2bd PF: > { %s6169_s24 = sld [smem:[#allocation14_spill]]  ;;  %s2513_s15 = sand.u32 1, %s3202_s30  }
 0x2be   : > { %p6171_p10 = scmp.ge.s32.totalorder %s3222_s14, 2  ;;  %s2514_s11 = scalar_lea.sflag [#allocation4], %s2513_s15 }
 0x2c3   : > { %p6170_p7 = scmp.ne.s32.totalorder %s6169_s24, 0 }
 0x2c5   : > { %p3009_p9 = pnand %p6171_p10, %p6170_p7 }
 0x2c7   : > { %3197 = dma.done.wait (!%p3009_p9), %s2514_s11, 6144  }
 0x2c8   : > { %3199 = vsyncadd (!%p3009_p9), %s2514_s11, 4294961152  ;;  %s28_s14 = sadd.s32 1, %s3222_s14   ;;  %s6172_s16 = sld [smem:[#allocation11_spill]] }
 0x2c9   : > { %p25_p11 = scmp.ge.s32.totalorder %s28_s14, 4   ;;  %s6173_s11 = sld [smem:[#allocation13_spill]] }
 0x2ca   : > { %s6174_s22 = sld [smem:[#allocation12_spill]]  ;;  %s6175_s30 = smov %s3206_s10 }
 0x2cb   : > { %s6177_s12 = smov %s3218_s13  ;;  %27 = sbr.rel (!%p25_p11) target bundleno = 10 (0xa), region = 114 }
 0x2ce   : > { %s6176_s10 = smov %s6172_s16 }
 0x2d0   : > { %s6178_s13 = smov %s6174_s22 }
 0x2d2   :  { %2519 = vsyncpa [#allocation3], 1 }
 0x2d3   :  { %2521 = vsyncpa [#allocation3 + $0x1], 1 }
 0x2d4   :  { %2522 = vsyncpa [#allocation6], 1 }
 0x2d5   :  { %2524 = vsyncpa [#allocation6 + $0x1], 1 }
 0x2d6   :  { %2525 = vsyncpa [#allocation4], 1 }
 0x2d7   :  { %2527 = vsyncpa [#allocation4 + $0x1], 1 }

</bundles_post_ra>
